<compile_context>
chip_gen: v7x
topology: tpu7x:2x2x1
jax: 0.10.0
libtpu: 0.0.40
codegen_flags: <defaults>
</compile_context>

<pallas_src>
import functools
import math

import numpy as np
import jax
import jax.numpy as jnp
from jax.experimental import pallas as pl
from jax.experimental.pallas import tpu as pltpu

LANE = 128


def _round_up(x, m):
    return (x + m - 1) // m * m


# -----------------------------------------------------------------------------
# Hash-grid encoder + positional encoding (plain JAX).
# TODO(synk): the GridEncoder hash-table lookup is a data-dependent gather and
# is kept as an XLA gather (torch-ngp style hashing); only the dense MLP stack
# is a Pallas kernel.
# -----------------------------------------------------------------------------

_PRIMES = np.array([1, 2654435761, 805459861], dtype=np.uint32)
_CORNERS = np.array(
    [[i, j, k] for i in (0, 1) for j in (0, 1) for k in (0, 1)], dtype=np.uint32
)


def grid_resolutions(num_levels, base_resolution, desired_resolution):
    if num_levels > 1:
        s = math.exp(math.log(desired_resolution / base_resolution) / (num_levels - 1))
    else:
        s = 1.0
    return [int(math.floor(base_resolution * (s ** l))) for l in range(num_levels)]


def hash_grid_encode(x, table, resolutions, hashmap_size):
    """x: (N, 3) in [0, 1]; table: (L, T, C)  ->  (N, L*C)."""
    primes = jnp.asarray(_PRIMES)
    corners = jnp.asarray(_CORNERS)                                 # (8, 3) u32
    corners_f = corners.astype(jnp.float32)
    feats = []
    for l, res in enumerate(resolutions):
        pos = x * float(res - 1) + 0.5
        pos_grid = jnp.floor(pos)
        frac = pos - pos_grid                                       # (N, 3)
        pg = pos_grid.astype(jnp.uint32)
        cc = pg[:, None, :] + corners[None, :, :]                   # (N, 8, 3)
        hashed = cc * primes[None, None, :]
        idx = (hashed[..., 0] ^ hashed[..., 1] ^ hashed[..., 2]) & jnp.uint32(
            hashmap_size - 1
        )                                                           # (N, 8)
        w = jnp.where(
            corners_f[None, :, :] == 1.0, frac[:, None, :], 1.0 - frac[:, None, :]
        )
        w = jnp.prod(w, axis=-1)                                    # (N, 8)
        feats.append(
            jnp.sum(table[l][idx.astype(jnp.int32)] * w[..., None], axis=1)
        )                                                           # (N, C)
    return jnp.concatenate(feats, axis=-1)


def gamma_encode(x, freq):
    """MLPTransformerRHINO.gamma: [sin(pi*2^k*x)... , cos(pi*2^k*x)...]."""
    scales = (np.pi * (2.0 ** np.arange(freq))).astype(np.float32)  # (freq,)
    ang = (x[:, None, :] * scales[None, :, None]).reshape(
        x.shape[0], freq * x.shape[1]
    )
    return jnp.concatenate([jnp.sin(ang), jnp.cos(ang)], axis=-1)   # (N, 2*3*freq)


# -----------------------------------------------------------------------------
# Parameter init (PyTorch nn.Linear-style uniform bounds).
# -----------------------------------------------------------------------------

def init_ingp_params(
    key, *, input_dim=3, feat_dim=3, num_levels=16, level_dim=2,
    log2_hashmap_size=19, base_resolution=10, desired_resolution=2048, freq=9,
    num_layers=5, hidden_dim=256, hidden_dim_last=256, skips=(4,),
):
    enc_dim = num_levels * level_dim
    g_dim = 2 * input_dim * freq
    t_dim = input_dim
    in_dim = feat_dim + enc_dim + t_dim

    keys = jax.random.split(key, 2 + num_layers)
    table = jax.random.uniform(
        keys[0], (num_levels, 2 ** log2_hashmap_size, level_dim), jnp.float32,
        minval=-1e-4, maxval=1e-4)

    def linear(k, fan_in, fan_out):
        kw, kb = jax.random.split(k)
        bound = 1.0 / math.sqrt(fan_in)
        w = jax.random.uniform(kw, (fan_out, fan_in), jnp.float32, -bound, bound)
        b = jax.random.uniform(kb, (fan_out,), jnp.float32, -bound, bound)
        return w, b

    # Transformer with transformer_num_layers == 1: a single Linear(g_dim -> 3).
    # TODO(synk): transformer_num_layers > 1 (hidden relu layers) not implemented
    # (the linear fold below requires a single-layer, purely linear transformer).
    wt, bt = linear(keys[1], g_dim, t_dim)

    backbone = []
    prev_out = in_dim
    for l in range(num_layers):
        if l == 0:
            fin = in_dim
        elif l in skips:
            # Sized to match the forward's concatenation cat(prev_hidden, h, t).
            fin = prev_out + enc_dim + t_dim
        else:
            fin = prev_out
        if l == num_layers - 1:
            fout = 1
        elif l == num_layers - 2:
            fout = hidden_dim_last
        else:
            fout = hidden_dim
        backbone.append(linear(keys[2 + l], fin, fout))
        prev_out = fout

    cfg = dict(
        input_dim=input_dim, feat_dim=feat_dim, enc_dim=enc_dim, g_dim=g_dim,
        t_dim=t_dim, in_dim=in_dim, hashmap_size=2 ** log2_hashmap_size,
        resolutions=grid_resolutions(num_levels, base_resolution, desired_resolution),
        freq=freq, num_layers=num_layers, skips=tuple(skips),
    )
    params = dict(table=table, wt=wt, bt=bt, backbone=backbone)
    return params, cfg


# -----------------------------------------------------------------------------
# One-time prep: pad / transpose / fold / cast parameters into kernel operands.
# -----------------------------------------------------------------------------

def prepare_fused_model(params, cfg, *, compute_dtype=jnp.bfloat16):
    """Build kernel-ready VMEM-resident weight blocks (transformer folded in).

    bf16 is the recommended compute dtype on all generations (v5e's 128^2 MXU
    is native bf16 too); biases stay f32 for the f32 epilogue.
    """
    feat_dim, enc_dim, g_dim, t_dim = (
        cfg["feat_dim"], cfg["enc_dim"], cfg["g_dim"], cfg["t_dim"])
    num_layers, skips = cfg["num_layers"], cfg["skips"]
    hp = jax.lax.Precision.HIGHEST

    g_off = feat_dim + enc_dim
    din = g_off + g_dim
    din_pad = _round_up(din, LANE)

    wt_T = params["wt"].T.astype(jnp.float32)        # (g_dim, t_dim)
    bt = params["bt"].astype(jnp.float32)            # (t_dim,)

    flat = []
    plan = []
    prev_out = None
    prev_pad = None
    for l, (w, b) in enumerate(params["backbone"]):
        fout = w.shape[0]
        out_pad = _round_up(fout, LANE)
        if l == 0:
            # input = cat(feat, h, t); fold the linear transformer into g rows.
            w_t = w[:, g_off:].T                                    # (t_dim, fout)
            wk = jnp.zeros((din_pad, out_pad), jnp.float32)
            wk = wk.at[:g_off, :fout].set(w[:, :g_off].T)
            wk = wk.at[g_off:g_off + g_dim, :fout].set(
                jnp.dot(wt_T, w_t, precision=hp))
            bias = b + jnp.dot(bt, w_t, precision=hp)
            plan.append("in")
        elif l in skips:
            # input = cat(prev_hidden, h, t); ONE stacked-K weight so the layer
            # is a single MXU dot on concat([z, inp]) (fills K=256 on v6e/v7x).
            w_hid = w[:, :prev_out].T                               # (prev_out, fout)
            w_h = w[:, prev_out:prev_out + enc_dim].T               # (enc_dim, fout)
            w_t = w[:, prev_out + enc_dim:].T                       # (t_dim, fout)
            wk = jnp.zeros((prev_pad + din_pad, out_pad), jnp.float32)
            wk = wk.at[:prev_out, :fout].set(w_hid)
            wk = wk.at[prev_pad + feat_dim:prev_pad + feat_dim + enc_dim,
                       :fout].set(w_h)
            wk = wk.at[prev_pad + g_off:prev_pad + g_off + g_dim, :fout].set(
                jnp.dot(wt_T, w_t, precision=hp))
            bias = b + jnp.dot(bt, w_t, precision=hp)
            plan.append("skip")
        else:
            wk = jnp.zeros((prev_pad, out_pad), jnp.float32)
            wk = wk.at[:prev_out, :fout].set(w.T)
            bias = b
            plan.append("hid")
        flat.append(wk.astype(compute_dtype))
        flat.append(jnp.zeros((1, out_pad), jnp.float32).at[0, :fout].set(bias))
        prev_out, prev_pad = fout, out_pad

    return dict(
        plan=tuple(plan), flat=tuple(flat), din=din, din_pad=din_pad,
        out_pad=prev_pad, num_layers=num_layers, compute_dtype=compute_dtype,
        table=params["table"], cfg=cfg,
    )


# -----------------------------------------------------------------------------
# The fused MLP kernel: full backbone (transformer pre-folded) in one pallas_call.
# -----------------------------------------------------------------------------

def _fused_mlp_kernel(plan, num_layers, *refs):
    inp_ref = refs[0]
    out_ref = refs[-1]
    prm = iter(refs[1:-1])

    inp = inp_ref[...]                                  # (TM, din_pad) compute dtype
    cdt = inp.dtype

    z = None                                            # previous layer activation
    for l, kind in enumerate(plan):
        w = next(prm)[...]                              # compute-dtype weight
        b = next(prm)[...]                              # f32 bias (1, out_pad)
        if kind == "in":
            op = inp
        elif kind == "skip":
            # Lane-aligned concat (both widths are multiples of 128): one
            # stacked-K MXU dot instead of multiple K=128 split dots.
            op = jnp.concatenate([z, inp], axis=-1)
        else:
            op = z
        acc = jnp.dot(op, w, preferred_element_type=jnp.float32) + b   # f32 epilogue
        if l != num_layers - 1:
            z = jnp.maximum(acc, 0.0).astype(cdt)       # relu
        else:
            # Lane-dense store: stable sigmoid (tanh form, EUP) over the whole
            # 128-lane padded block; the wrapper takes column 0.
            out_ref[...] = (0.5 * jnp.tanh(0.5 * acc) + 0.5).astype(out_ref.dtype)


def ingp_forward(model, feat, x, *, tile_m=1024, interpret=False):
    """Pallas forward of INGPNetworkRHINO: returns sigmoid(last_layer[:, 0])."""
    cfg = model["cfg"]
    x = x.reshape(-1, cfg["input_dim"])
    n = x.shape[0]

    # Encodings (gather + elementwise) in plain JAX, then one fused MLP kernel.
    h = hash_grid_encode(x, model["table"], cfg["resolutions"], cfg["hashmap_size"])
    g = gamma_encode(x, cfg["freq"])
    base = jnp.concatenate([feat, h, g], axis=-1)          # (N, din)

    din_pad = model["din_pad"]
    out_pad = model["out_pad"]
    inp = jnp.pad(base, ((0, 0), (0, din_pad - base.shape[1])))
    inp = inp.astype(model["compute_dtype"])

    # Big tiles amortize the ~0.35us/step pipeline overhead, but keep >= 2 grid
    # blocks when the batch allows so v7x can shard the batch over both TCs.
    tile_m = max(LANE, min(tile_m, _round_up(pl.cdiv(n, 2), LANE)))
    n_pad = _round_up(max(n, tile_m), tile_m)              # pad ragged batch to tile
    if n_pad != n:
        inp = jnp.pad(inp, ((0, n_pad - n), (0, 0)))
    grid = (n_pad // tile_m,)

    flat = model["flat"]
    in_specs = [pl.BlockSpec((tile_m, din_pad), lambda i: (i, 0))]
    for p in flat:
        # Constant-index weight/bias blocks: fetched once, resident in VMEM.
        # TODO(synk): for much larger configs on v7x (64 MiB VMEM) single-buffer
        # these with pipeline_mode=pl.Buffered(1); here the whole weight set is
        # far below the scoped VMEM limit so double-buffering costs nothing.
        in_specs.append(pl.BlockSpec(p.shape, lambda i: (0, 0)))

    # Advisory cost so XLA overlaps neighbouring HLO with the fused call.
    flops = 0
    for p in flat:
        if p.ndim == 2 and p.shape[0] > 1:
            flops += 2 * n_pad * p.shape[0] * p.shape[1]
    bytes_accessed = (
        n_pad * din_pad * inp.dtype.itemsize
        + n_pad * out_pad * 4
        + sum(int(p.size) * p.dtype.itemsize for p in flat)
    )
    cost = pl.CostEstimate(
        flops=int(flops), transcendentals=int(n_pad * out_pad),
        bytes_accessed=int(bytes_accessed),
    )

    kernel = functools.partial(_fused_mlp_kernel, model["plan"], model["num_layers"])
    out = pl.pallas_call(
        kernel,
        out_shape=jax.ShapeDtypeStruct((n_pad, out_pad), jnp.float32),
        grid_spec=pltpu.PrefetchScalarGridSpec(
            num_scalar_prefetch=0,
            grid=grid,
            in_specs=in_specs,
            out_specs=pl.BlockSpec((tile_m, out_pad), lambda i: (i, 0)),
        ),
        compiler_params=pltpu.CompilerParams(
            dimension_semantics=("parallel",),
            vmem_limit_bytes=32 * 1024 * 1024,
        ),
        cost_estimate=cost,
        interpret=interpret,
    )(inp, *flat)
    return out[:n, 0]


# -----------------------------------------------------------------------------
# Pure-JAX reference (mirrors the PyTorch forward, unfolded / unfused).
# -----------------------------------------------------------------------------

def ingp_reference(params, cfg, feat, x):
    x = x.reshape(-1, cfg["input_dim"])
    h = hash_grid_encode(x, params["table"], cfg["resolutions"], cfg["hashmap_size"])
    g = gamma_encode(x, cfg["freq"])
    hp = jax.lax.Precision.HIGHEST
    t = jnp.dot(g, params["wt"].T, precision=hp) + params["bt"]
    cf = jnp.concatenate([feat, h, t], axis=-1)
    for l, (w, b) in enumerate(params["backbone"]):
        cf = jnp.dot(cf, w.T, precision=hp) + b
        if l != cfg["num_layers"] - 1:
            cf = jnp.maximum(cf, 0.0)
            if (l + 1) in cfg["skips"]:
                cf = jnp.concatenate([cf, h, t], axis=-1)
    return jax.nn.sigmoid(cf[:, 0])


if __name__ == "__main__":
    key = jax.random.PRNGKey(0)
    k_params, k_feat, k_x = jax.random.split(key, 3)

    # Small but structure-faithful INGPNetworkRHINO configuration.
    params, cfg = init_ingp_params(
        k_params,
        input_dim=3, feat_dim=3,
        num_levels=8, level_dim=2, log2_hashmap_size=12,
        base_resolution=10, desired_resolution=64,
        freq=9,
        num_layers=5, hidden_dim=128, hidden_dim_last=128,
        skips=(4,),          # default skips=[4, 8] clipped to the 5-layer range
    )

    n = 1024
    x = jax.random.uniform(k_x, (n, 3), jnp.float32, minval=0.0, maxval=1.0)
    feat = jax.random.uniform(k_feat, (n, 3), jnp.float32, minval=-1.0, maxval=1.0)

    ref = ingp_reference(params, cfg, feat, x)

    # f32 matmul operands: tight check against the reference (transformer fold
    # is computed with HIGHEST precision so the f32 path stays near-exact).
    model_f32 = prepare_fused_model(params, cfg, compute_dtype=jnp.float32)
    out_f32 = jax.block_until_ready(ingp_forward(model_f32, feat, x, tile_m=1024))
    assert out_f32.shape == (n,)
    assert bool(jnp.all(jnp.isfinite(out_f32)))
    assert float(jnp.max(jnp.abs(out_f32 - ref))) < 2e-4, "f32 kernel mismatch"

    # bf16 matmul operands (MXU path on v5e/v6e/v7x), f32 bias/relu/sigmoid epilogue.
    model_bf16 = prepare_fused_model(params, cfg, compute_dtype=jnp.bfloat16)
    out_bf16 = jax.block_until_ready(ingp_forward(model_bf16, feat, x, tile_m=1024))
    assert out_bf16.shape == (n,)
    assert float(jnp.max(jnp.abs(out_bf16 - ref))) < 5e-2, "bf16 kernel mismatch"

    print("KERNEL_OK")
</pallas_src>

<mosaic_0001>
module attributes {stable_mosaic.version = 11 : i64} {
  func.func @_fused_mlp_kernel(%arg0: i32, %arg1: memref<512x128xf32, #tpu.memory_space<vmem>>, %arg2: memref<128x128xf32, #tpu.memory_space<vmem>>, %arg3: memref<1x128xf32, #tpu.memory_space<vmem>>, %arg4: memref<128x128xf32, #tpu.memory_space<vmem>>, %arg5: memref<1x128xf32, #tpu.memory_space<vmem>>, %arg6: memref<128x128xf32, #tpu.memory_space<vmem>>, %arg7: memref<1x128xf32, #tpu.memory_space<vmem>>, %arg8: memref<128x128xf32, #tpu.memory_space<vmem>>, %arg9: memref<1x128xf32, #tpu.memory_space<vmem>>, %arg10: memref<256x128xf32, #tpu.memory_space<vmem>>, %arg11: memref<1x128xf32, #tpu.memory_space<vmem>>, %arg12: memref<512x128xf32, #tpu.memory_space<vmem>>) attributes {dimension_semantics = [#tpu.dimension_semantics<parallel>], iteration_bounds = array<i64: 2>, scalar_prefetch = 0 : i64, scratch_operands = 0 : i64, tpu.core_type = #tpu.core_type<tc>, window_params = [{transform_indices = @transform_0, window_bounds = array<i64: 512, 128>}, {pipeline_mode = #tpu.pipeline_mode<synchronous>, transform_indices = @transform_1, window_bounds = array<i64: 128, 128>}, {pipeline_mode = #tpu.pipeline_mode<synchronous>, transform_indices = @transform_2, window_bounds = array<i64: 1, 128>}, {pipeline_mode = #tpu.pipeline_mode<synchronous>, transform_indices = @transform_3, window_bounds = array<i64: 128, 128>}, {pipeline_mode = #tpu.pipeline_mode<synchronous>, transform_indices = @transform_4, window_bounds = array<i64: 1, 128>}, {pipeline_mode = #tpu.pipeline_mode<synchronous>, transform_indices = @transform_5, window_bounds = array<i64: 128, 128>}, {pipeline_mode = #tpu.pipeline_mode<synchronous>, transform_indices = @transform_6, window_bounds = array<i64: 1, 128>}, {pipeline_mode = #tpu.pipeline_mode<synchronous>, transform_indices = @transform_7, window_bounds = array<i64: 128, 128>}, {pipeline_mode = #tpu.pipeline_mode<synchronous>, transform_indices = @transform_8, window_bounds = array<i64: 1, 128>}, {pipeline_mode = #tpu.pipeline_mode<synchronous>, transform_indices = @transform_9, window_bounds = array<i64: 256, 128>}, {pipeline_mode = #tpu.pipeline_mode<synchronous>, transform_indices = @transform_10, window_bounds = array<i64: 1, 128>}, {transform_indices = @transform_11, window_bounds = array<i64: 512, 128>}]} {
    %c0 = arith.constant 0 : index
    %c0_0 = arith.constant 0 : index
    %0 = vector.load %arg1[%c0, %c0_0] : memref<512x128xf32, #tpu.memory_space<vmem>>, vector<512x128xf32>
    %c0_1 = arith.constant 0 : index
    %c0_2 = arith.constant 0 : index
    %1 = vector.load %arg2[%c0_1, %c0_2] : memref<128x128xf32, #tpu.memory_space<vmem>>, vector<128x128xf32>
    %c0_3 = arith.constant 0 : index
    %c0_4 = arith.constant 0 : index
    %2 = vector.load %arg3[%c0_3, %c0_4] : memref<1x128xf32, #tpu.memory_space<vmem>>, vector<1x128xf32>
    %cst = arith.constant dense<0.000000e+00> : vector<512x128xf32>
    %3 = tpu.matmul %0, %1, %cst {dimension_numbers = #tpu.dot_dimension_numbers<[1], [0], [0], [1], [0, 0, 1, 1], [], []>} : vector<512x128xf32>, vector<128x128xf32>, vector<512x128xf32> -> vector<512x128xf32>
    %4 = vector.broadcast %2 : vector<1x128xf32> to vector<512x128xf32>
    %5 = arith.addf %3, %4 : vector<512x128xf32>
    %cst_5 = arith.constant 0.000000e+00 : f32
    %6 = vector.broadcast %cst_5 : f32 to vector<512x128xf32>
    %7 = arith.maximumf %5, %6 : vector<512x128xf32>
    %c0_6 = arith.constant 0 : index
    %c0_7 = arith.constant 0 : index
    %8 = vector.load %arg4[%c0_6, %c0_7] : memref<128x128xf32, #tpu.memory_space<vmem>>, vector<128x128xf32>
    %c0_8 = arith.constant 0 : index
    %c0_9 = arith.constant 0 : index
    %9 = vector.load %arg5[%c0_8, %c0_9] : memref<1x128xf32, #tpu.memory_space<vmem>>, vector<1x128xf32>
    %cst_10 = arith.constant dense<0.000000e+00> : vector<512x128xf32>
    %10 = tpu.matmul %7, %8, %cst_10 {dimension_numbers = #tpu.dot_dimension_numbers<[1], [0], [0], [1], [0, 0, 1, 1], [], []>} : vector<512x128xf32>, vector<128x128xf32>, vector<512x128xf32> -> vector<512x128xf32>
    %11 = vector.broadcast %9 : vector<1x128xf32> to vector<512x128xf32>
    %12 = arith.addf %10, %11 : vector<512x128xf32>
    %cst_11 = arith.constant 0.000000e+00 : f32
    %13 = vector.broadcast %cst_11 : f32 to vector<512x128xf32>
    %14 = arith.maximumf %12, %13 : vector<512x128xf32>
    %c0_12 = arith.constant 0 : index
    %c0_13 = arith.constant 0 : index
    %15 = vector.load %arg6[%c0_12, %c0_13] : memref<128x128xf32, #tpu.memory_space<vmem>>, vector<128x128xf32>
    %c0_14 = arith.constant 0 : index
    %c0_15 = arith.constant 0 : index
    %16 = vector.load %arg7[%c0_14, %c0_15] : memref<1x128xf32, #tpu.memory_space<vmem>>, vector<1x128xf32>
    %cst_16 = arith.constant dense<0.000000e+00> : vector<512x128xf32>
    %17 = tpu.matmul %14, %15, %cst_16 {dimension_numbers = #tpu.dot_dimension_numbers<[1], [0], [0], [1], [0, 0, 1, 1], [], []>} : vector<512x128xf32>, vector<128x128xf32>, vector<512x128xf32> -> vector<512x128xf32>
    %18 = vector.broadcast %16 : vector<1x128xf32> to vector<512x128xf32>
    %19 = arith.addf %17, %18 : vector<512x128xf32>
    %cst_17 = arith.constant 0.000000e+00 : f32
    %20 = vector.broadcast %cst_17 : f32 to vector<512x128xf32>
    %21 = arith.maximumf %19, %20 : vector<512x128xf32>
    %c0_18 = arith.constant 0 : index
    %c0_19 = arith.constant 0 : index
    %22 = vector.load %arg8[%c0_18, %c0_19] : memref<128x128xf32, #tpu.memory_space<vmem>>, vector<128x128xf32>
    %c0_20 = arith.constant 0 : index
    %c0_21 = arith.constant 0 : index
    %23 = vector.load %arg9[%c0_20, %c0_21] : memref<1x128xf32, #tpu.memory_space<vmem>>, vector<1x128xf32>
    %cst_22 = arith.constant dense<0.000000e+00> : vector<512x128xf32>
    %24 = tpu.matmul %21, %22, %cst_22 {dimension_numbers = #tpu.dot_dimension_numbers<[1], [0], [0], [1], [0, 0, 1, 1], [], []>} : vector<512x128xf32>, vector<128x128xf32>, vector<512x128xf32> -> vector<512x128xf32>
    %25 = vector.broadcast %23 : vector<1x128xf32> to vector<512x128xf32>
    %26 = arith.addf %24, %25 : vector<512x128xf32>
    %cst_23 = arith.constant 0.000000e+00 : f32
    %27 = vector.broadcast %cst_23 : f32 to vector<512x128xf32>
    %28 = arith.maximumf %26, %27 : vector<512x128xf32>
    %c0_24 = arith.constant 0 : index
    %c0_25 = arith.constant 0 : index
    %29 = vector.load %arg10[%c0_24, %c0_25] : memref<256x128xf32, #tpu.memory_space<vmem>>, vector<256x128xf32>
    %c0_26 = arith.constant 0 : index
    %c0_27 = arith.constant 0 : index
    %30 = vector.load %arg11[%c0_26, %c0_27] : memref<1x128xf32, #tpu.memory_space<vmem>>, vector<1x128xf32>
    %31 = tpu.concatenate %28, %0 in 1 : vector<512x128xf32>, vector<512x128xf32> -> vector<512x256xf32>
    %cst_28 = arith.constant dense<0.000000e+00> : vector<512x128xf32>
    %32 = tpu.matmul %31, %29, %cst_28 {dimension_numbers = #tpu.dot_dimension_numbers<[1], [0], [0], [1], [0, 0, 1, 1], [], []>} : vector<512x256xf32>, vector<256x128xf32>, vector<512x128xf32> -> vector<512x128xf32>
    %33 = vector.broadcast %30 : vector<1x128xf32> to vector<512x128xf32>
    %34 = arith.addf %32, %33 : vector<512x128xf32>
    %cst_29 = arith.constant 5.000000e-01 : f32
    %35 = vector.broadcast %cst_29 : f32 to vector<512x128xf32>
    %36 = arith.mulf %35, %34 : vector<512x128xf32>
    %37 = math.tanh %36 : vector<512x128xf32>
    %cst_30 = arith.constant 5.000000e-01 : f32
    %38 = vector.broadcast %cst_30 : f32 to vector<512x128xf32>
    %39 = arith.mulf %38, %37 : vector<512x128xf32>
    %cst_31 = arith.constant 5.000000e-01 : f32
    %40 = vector.broadcast %cst_31 : f32 to vector<512x128xf32>
    %41 = arith.addf %39, %40 : vector<512x128xf32>
    %c0_32 = arith.constant 0 : index
    %c0_33 = arith.constant 0 : index
    %42 = vector.load %arg12[%c0_32, %c0_33] : memref<512x128xf32, #tpu.memory_space<vmem>>, vector<512x128xf32>
    tpu.vector_store %arg12[%c0_32, %c0_33], %41 {strides = array<i32>} : memref<512x128xf32, #tpu.memory_space<vmem>>, vector<512x128xf32>,
    return
  }
  func.func @transform_0(%arg0: i32) -> (i32, i32) {
    %c0_i32 = arith.constant 0 : i32
    %c0_i32_0 = arith.constant 0 : i32
    return %arg0, %c0_i32 : i32, i32
  }
  func.func @transform_1(%arg0: i32) -> (i32, i32) {
    %c0_i32 = arith.constant 0 : i32
    %c0_i32_0 = arith.constant 0 : i32
    %c0_i32_1 = arith.constant 0 : i32
    return %c0_i32, %c0_i32_0 : i32, i32
  }
  func.func @transform_2(%arg0: i32) -> (i32, i32) {
    %c0_i32 = arith.constant 0 : i32
    %c0_i32_0 = arith.constant 0 : i32
    %c0_i32_1 = arith.constant 0 : i32
    return %c0_i32, %c0_i32_0 : i32, i32
  }
  func.func @transform_3(%arg0: i32) -> (i32, i32) {
    %c0_i32 = arith.constant 0 : i32
    %c0_i32_0 = arith.constant 0 : i32
    %c0_i32_1 = arith.constant 0 : i32
    return %c0_i32, %c0_i32_0 : i32, i32
  }
  func.func @transform_4(%arg0: i32) -> (i32, i32) {
    %c0_i32 = arith.constant 0 : i32
    %c0_i32_0 = arith.constant 0 : i32
    %c0_i32_1 = arith.constant 0 : i32
    return %c0_i32, %c0_i32_0 : i32, i32
  }
  func.func @transform_5(%arg0: i32) -> (i32, i32) {
    %c0_i32 = arith.constant 0 : i32
    %c0_i32_0 = arith.constant 0 : i32
    %c0_i32_1 = arith.constant 0 : i32
    return %c0_i32, %c0_i32_0 : i32, i32
  }
  func.func @transform_6(%arg0: i32) -> (i32, i32) {
    %c0_i32 = arith.constant 0 : i32
    %c0_i32_0 = arith.constant 0 : i32
    %c0_i32_1 = arith.constant 0 : i32
    return %c0_i32, %c0_i32_0 : i32, i32
  }
  func.func @transform_7(%arg0: i32) -> (i32, i32) {
    %c0_i32 = arith.constant 0 : i32
    %c0_i32_0 = arith.constant 0 : i32
    %c0_i32_1 = arith.constant 0 : i32
    return %c0_i32, %c0_i32_0 : i32, i32
  }
  func.func @transform_8(%arg0: i32) -> (i32, i32) {
    %c0_i32 = arith.constant 0 : i32
    %c0_i32_0 = arith.constant 0 : i32
    %c0_i32_1 = arith.constant 0 : i32
    return %c0_i32, %c0_i32_0 : i32, i32
  }
  func.func @transform_9(%arg0: i32) -> (i32, i32) {
    %c0_i32 = arith.constant 0 : i32
    %c0_i32_0 = arith.constant 0 : i32
    %c0_i32_1 = arith.constant 0 : i32
    return %c0_i32, %c0_i32_0 : i32, i32
  }
  func.func @transform_10(%arg0: i32) -> (i32, i32) {
    %c0_i32 = arith.constant 0 : i32
    %c0_i32_0 = arith.constant 0 : i32
    %c0_i32_1 = arith.constant 0 : i32
    return %c0_i32, %c0_i32_0 : i32, i32
  }
  func.func @transform_11(%arg0: i32) -> (i32, i32) {
    %c0_i32 = arith.constant 0 : i32
    %c0_i32_0 = arith.constant 0 : i32
    return %arg0, %c0_i32 : i32, i32
  }
}

</mosaic_0001>

<bundles_post_ra>
// kernel: tpu_custom_call.1
= control target key start
LH: loop header
LB: loop body
LE: loop exit
PB: predicated region body
PF: predicated region fallthrough
CT: control target
= control target key end

     0   :  { %s5988_s0 = inlined_call_operand.hbm [shape: f32[1024,128], index: 0, kind: input, shape index: {}]   ;;  %s5989_s1 = inlined_call_operand.hbm [shape: f32[128,128], index: 1, kind: input, shape index: {}]   ;;  %s5990_s2 = inlined_call_operand.vmem [shape: f32[1,128], index: 2, kind: input, shape index: {}]   ;;  %s5991_s3 = inlined_call_operand.hbm [shape: f32[128,128], index: 3, kind: input, shape index: {}]   ;;  %s5992_s4 = inlined_call_operand.vmem [shape: f32[1,128], index: 4, kind: input, shape index: {}]   ;;  %s5993_s5 = inlined_call_operand.hbm [shape: f32[128,128], index: 5, kind: input, shape index: {}]   ;;  %s5994_s6 = inlined_call_operand.vmem [shape: f32[1,128], index: 6, kind: input, shape index: {}]   ;;  %s5995_s7 = inlined_call_operand.hbm [shape: f32[128,128], index: 7, kind: input, shape index: {}]   ;;  %s5996_s8 = inlined_call_operand.vmem [shape: f32[1,128], index: 8, kind: input, shape index: {}]   ;;  %s5997_s9 = inlined_call_operand.hbm [shape: f32[256,128], index: 9, kind: input, shape index: {}]   ;;  %s5998_s10 = inlined_call_operand.vmem [shape: f32[1,128], index: 10, kind: input, shape index: {}]   ;;  %s5999_s11 = inlined_call_operand.hbm [shape: f32[1024,128], index: 11, kind: output, shape index: {}]  }
   0x1   :  { %6006 = sst [smem:[#allocation19_spill]] %s5989_s1 }
   0x2   :  { %6007 = sst [smem:[#allocation20_spill]] %s5996_s8 }
   0x3   :  { %6008 = sst [smem:[#allocation21_spill]] %s5998_s10 }
   0x4   :  { %6009 = sst [smem:[#allocation22_spill]] %s5999_s11 }
   0x5   :  { %16 = vsyncpa [#allocation3], 0 }
   0x6   :  { %18 = vsyncpa [#allocation3 + $0x1], 0 }
   0x7   :  { %19 = vsyncpa [#allocation6], 0 }
   0x8   :  { %20 = vsyncpa [#allocation9], 0 }
   0x9   :  { %21 = vsyncpa [#allocation12], 0 }
   0xa   :  { %22 = vsyncpa [#allocation4], 0 }
   0xb   :  { %24 = vsyncpa [#allocation4 + $0x1], 0  ;;  %s4967_s17 = smov 0   ;;  %s4969_s18 = smov 0  }
   0xc   :  { %s4971_s19 = smov 0   ;;  %s4973_s20 = smov 0  }
   0xd LB: > { %s4895_s21 = smov [#allocation5]   ;;  %s4988_s23 = sadd.s32 4294967295, %s4893_s20   ;;  %s4893_s20 = sphi %s4973_s20, %s6036_s20   ;;  %s4889_s19 = sphi %s4971_s19, %s6035_s19   ;;  %s4885_s18 = sphi %s4969_s18, %s6034_s18   ;;  %s4881_s17 = sphi %s4967_s17, %s6033_s17  }
   0xe   : > { %s309_s22 = sshll.u32 %s4895_s21, 4  ;;  %p3312_p0 = scmp.ge.s32.totalorder %s4893_s20, 1  ;;  %s4993_s22 = int_to_ptr.vmem [resolvable:$true] %s309_s22 }
   0xf   : > { %p6002_p1 = scmp.eq.s32.totalorder %s4988_s23, 0  ;;  %p297_p2 = scmp.lt.s32.totalorder %s4893_s20, 3 }
  0x10   : > { %s4896_s25 = smov [#allocation8]   ;;  %s4897_s28 = smov [#allocation7]  }
  0x11   : > { %p4995_p3 = pnand %p3312_p0, %p297_p2  ;;  %s341_s26 = sshll.u32 %s4896_s25, 4  ;;  %s5008_s26 = int_to_ptr.vmem [resolvable:$true] %s341_s26 }
  0x12   : > { %s325_s29 = sshll.u32 %s4897_s28, 4  ;;  %s6012_s1 = sld [smem:[#allocation19_spill]]  ;;  %s5010_s29 = int_to_ptr.vmem [resolvable:$true] %s325_s29 }
  0x13   : > { %s6010_s24 = scalar_select %p4995_p3, 1, 0 }
  0x14   : > { %p4374_p5 = pneg %p4995_p3 }
  0x16   : > { %p5004_p6 = pnand %p4374_p5, %p6002_p1 }
  0x18   : > { %s4645_s13 = scalar_lea.hbm %s6012_s1, 2048  ;;  %p5020_p8 = pneg %p5004_p6 }
  0x19   : > { %p4646_p7 = scmp.ne.s32.totalorder %s6012_s1, %s4645_s13  ;;  %p4652_p11 = scmp.lt.u32.totalorder %s4645_s13, %s6012_s1 }
  0x1b   : > { %p4648_p9 = pnand %p5020_p8, %p4646_p7 }
  0x1d   : > { %p4649_p10 = pneg %p4648_p9 }
  0x1f   : > { %p4654_p12 = pnand %p4652_p11, %p4649_p10 }
  0x21   : > { %4657 = shalt.err (!%p4654_p12)
}
  0x22   : > { %s4658_s28 = scalar_lea.vmem %s4993_s22, 2048  ;;  %p4666_p5 = scmp.lt.s32.totalorder %s4993_s22, %s4993_s22 }
  0x23   : > { %p4659_p13 = scmp.ne.s32.totalorder %s4993_s22, %s4658_s28  ;;  %p4667_p4 = scmp.lt.s32.totalorder %s4658_s28, %s4658_s28 }
  0x25   : > { %p4661_p0 = pnand %p4659_p13, %p5020_p8  ;;  %p4668_p7 = por %p4667_p4, %p4666_p5 }
  0x27   : > { %p4662_p2 = pneg %p4661_p0 }
  0x29   : > { %p4669_p9 = pnand %p4668_p7, %p4662_p2 }
  0x2b   : > { %4672 = shalt.err (!%p4669_p9)
}
  0x2c   : > { %s6004_s30 = smov 128   ;;  %s4899_s12 = smov 8  }
  0x2d   : > { %4377 = dma.hbm_to_vmem [thread:$0]  (!%p5004_p6), %s6012_s1, 2048, %s4993_s22, [#allocation6], %s6004_s30, %s6004_s30, %s4899_s12  }
  0x2e   : > { %s4673_s25 = scalar_lea.hbm %s5993_s5, 2048 }
  0x2f   : > { %p4674_p4 = scmp.ne.s32.totalorder %s5993_s5, %s4673_s25  ;;  %p4680_p12 = scmp.lt.u32.totalorder %s4673_s25, %s5993_s5 }
  0x31   : > { %p4676_p10 = pnand %p4674_p4, %p5020_p8 }
  0x33   : > { %p4677_p11 = pneg %p4676_p10 }
  0x35   : > { %p4682_p13 = pnand %p4680_p12, %p4677_p11 }
  0x37   : > { %4685 = shalt.err (!%p4682_p13)
}
  0x38   : > { %s4686_s22 = scalar_lea.vmem %s5008_s26, 2048  ;;  %p4694_p7 = scmp.lt.s32.totalorder %s5008_s26, %s5008_s26 }
  0x39   : > { %p4687_p0 = scmp.ne.s32.totalorder %s5008_s26, %s4686_s22  ;;  %p4695_p9 = scmp.lt.s32.totalorder %s4686_s22, %s4686_s22 }
  0x3b   : > { %p4689_p2 = pnand %p4687_p0, %p5020_p8  ;;  %p4696_p4 = por %p4695_p9, %p4694_p7 }
  0x3d   : > { %p4690_p5 = pneg %p4689_p2 }
  0x3f   : > { %p4697_p10 = pnand %p4696_p4, %p4690_p5 }
  0x41   : > { %4700 = shalt.err (!%p4697_p10)
}
  0x42   : > { %4383 = dma.hbm_to_vmem [thread:$0]  (!%p5004_p6), %s5993_s5, 2048, %s5008_s26, [#allocation9], %s6004_s30, %s6004_s30, %s4899_s12  }
  0x43   : > { %s4701_s14 = scalar_lea.hbm %s5991_s3, 2048 }
  0x44   : > { %p4702_p11 = scmp.ne.s32.totalorder %s5991_s3, %s4701_s14  ;;  %p4708_p0 = scmp.lt.u32.totalorder %s4701_s14, %s5991_s3 }
  0x46   : > { %p4704_p12 = pnand %p4702_p11, %p5020_p8 }
  0x48   : > { %p4705_p13 = pneg %p4704_p12 }
  0x4a   : > { %p4710_p2 = pnand %p4708_p0, %p4705_p13 }
  0x4c   : > { %4713 = shalt.err (!%p4710_p2)
}
  0x4d   : > { %s4714_s26 = scalar_lea.vmem %s5010_s29, 2048  ;;  %p4722_p4 = scmp.lt.s32.totalorder %s5010_s29, %s5010_s29 }
  0x4e   : > { %p4715_p5 = scmp.ne.s32.totalorder %s5010_s29, %s4714_s26  ;;  %p4723_p10 = scmp.lt.s32.totalorder %s4714_s26, %s4714_s26 }
  0x50   : > { %p4717_p7 = pnand %p4715_p5, %p5020_p8  ;;  %p4724_p11 = por %p4723_p10, %p4722_p4 }
  0x52   : > { %p4718_p9 = pneg %p4717_p7 }
  0x54   : > { %p4725_p12 = pnand %p4724_p11, %p4718_p9 }
  0x56   : > { %4728 = shalt.err (!%p4725_p12)
}
  0x57   : > { %4380 = dma.hbm_to_vmem [thread:$0]  (!%p5004_p6), %s5991_s3, 2048, %s5010_s29, [#allocation6], %s6004_s30, %s6004_s30, %s4899_s12  }
  0x58   : > { %s4900_s10 = smov [#allocation10]   ;;  %s4901_s13 = smov [#allocation11]  }
  0x59   : > { %s357_s11 = sshll.u32 %s4900_s10, 4  ;;  %s373_s14 = sshll.u32 %s4901_s13, 4  ;;  %s358_s11 = int_to_ptr.vmem [resolvable:$true] %s357_s11  ;;  %s374_s14 = int_to_ptr.vmem [resolvable:$true] %s373_s14 }
  0x5a   : > { %s4729_s25 = scalar_lea.hbm %s5995_s7, 2048 }
  0x5b   : > { %p4730_p13 = scmp.ne.s32.totalorder %s5995_s7, %s4729_s25  ;;  %p4736_p5 = scmp.lt.u32.totalorder %s4729_s25, %s5995_s7 }
  0x5d   : > { %p4732_p0 = pnand %p4730_p13, %p5020_p8 }
  0x5f   : > { %p4733_p2 = pneg %p4732_p0 }
  0x61   : > { %p4738_p7 = pnand %p4736_p5, %p4733_p2 }
  0x63   : > { %4741 = shalt.err (!%p4738_p7)
}
  0x64   : > { %s4742_s29 = scalar_lea.vmem %s358_s11, 2048  ;;  %p4750_p11 = scmp.lt.s32.totalorder %s358_s11, %s358_s11 }
  0x65   : > { %p4743_p9 = scmp.ne.s32.totalorder %s358_s11, %s4742_s29  ;;  %p4751_p12 = scmp.lt.s32.totalorder %s4742_s29, %s4742_s29 }
  0x67   : > { %p4745_p4 = pnand %p4743_p9, %p5020_p8  ;;  %p4752_p1 = por %p4751_p12, %p4750_p11 }
  0x69   : > { %p4746_p10 = pneg %p4745_p4 }
  0x6b   : > { %p4753_p3 = pnand %p4752_p1, %p4746_p10 }
  0x6d   : > { %4756 = shalt.err (!%p4753_p3)
}
  0x6e   : > { %4386 = dma.hbm_to_vmem [thread:$0]  (!%p5004_p6), %s5995_s7, 2048, %s358_s11, [#allocation9], %s6004_s30, %s6004_s30, %s4899_s12  }
  0x6f   : > { %s4757_s15 = scalar_lea.hbm %s5997_s9, 4096 }
  0x70   : > { %p4758_p1 = scmp.ne.s32.totalorder %s5997_s9, %s4757_s15  ;;  %p4764_p0 = scmp.lt.u32.totalorder %s4757_s15, %s5997_s9 }
  0x72   : > { %p4760_p3 = pnand %p4758_p1, %p5020_p8 }
  0x74   : > { %p4761_p13 = pneg %p4760_p3 }
  0x76   : > { %p4766_p2 = pnand %p4764_p0, %p4761_p13 }
  0x78   : > { %4769 = shalt.err (!%p4766_p2)
}
  0x79   : > { %s4770_s22 = scalar_lea.vmem %s374_s14, 4096  ;;  %p4778_p4 = scmp.lt.s32.totalorder %s374_s14, %s374_s14 }
  0x7a   : > { %p4771_p5 = scmp.ne.s32.totalorder %s374_s14, %s4770_s22  ;;  %p4779_p10 = scmp.lt.s32.totalorder %s4770_s22, %s4770_s22 }
  0x7c   : > { %p4773_p7 = pnand %p4771_p5, %p5020_p8  ;;  %p4780_p11 = por %p4779_p10, %p4778_p4 }
  0x7e   : > { %p4774_p9 = pneg %p4773_p7 }
  0x80   : > { %p4781_p12 = pnand %p4780_p11, %p4774_p9 }
  0x82   : > { %4784 = shalt.err (!%p4781_p12)
}
  0x83   : > { %4389 = dma.hbm_to_vmem [thread:$0]  (!%p5004_p6), %s5997_s9, 4096, %s374_s14, [#allocation12], %s6004_s30, %s6004_s30, %s4899_s12  }
  0x84   : > { %s3311_s27 = sadd.s32 4294967294, %s4893_s20   ;;  %s5140_s16 = sadd.s32 1, %s4893_s20  }
  0x85   : > { %s37_s1 = sadd.s32 1, %s4889_s19  ;;  %s34_s8 = ssub.s32 %s4893_s20, %s5140_s16 }
  0x86   : > { %p44_p8 = scmp.ne.s32.totalorder %s4889_s19, %s4885_s18  ;;  %p35_p1 = scmp.eq.s32.totalorder %s34_s8, 0 }
  0x87   : > { %p45_p3 = scmp.eq.s32.totalorder %s4893_s20, 0  ;;  %p50_p13 = scmp.ne.s32.totalorder %s4885_s18, %s4881_s17 }
  0x88   : > { %p284_p0 = scmp.eq.s32.totalorder %s4988_s23, 1  ;;  %p6014_p5 = scmp.eq.s32.totalorder %s4988_s23, 0 }
  0x89   : > { %s5152_s10 = scalar_select %p35_p1, %s4889_s19, %s37_s1  }
  0x8a   : > { %p46_p2 = por %p45_p3, %p44_p8  ;;  %p5156_p7 = por %p6014_p5, %p50_p13 }
  0x8b   : > { %p5160_p6 = por %p284_p0, %p44_p8  ;;  %p290_p9 = scmp.eq.s32.totalorder %s3311_s27, 1 }
  0x8c   : > { %p4403_p4 = scmp.lt.s32.totalorder %s4893_s20, 2  ;;  %s390_s15 = sand.u32 1, %s4889_s19  }
  0x8d   : > { %s6016_s14 = scalar_select %p5160_p6, 1, 0 }
  0x8e   : > { %p5166_p10 = por %p290_p9, %p50_p13  ;;  %s3319_s25 = sshll.u32 %s390_s15, 9 }
  0x8f   : > { %s3340_s28 = sshll.u32 %s4893_s20, 13  ;;  %s394_s29 = scalar_lea.vmem [#allocation2], %s3319_s25 }
  0x90   : > { %s6017_s21 = scalar_select %p5166_p10, 1, 0 }
  0x91   : > { %s5174_s11 = scalar_lea.hbm %s5988_s0, %s3340_s28  ;;  %s401_s1 = sshll.u32 %s394_s29, 4  ;;  %s5180_s1 = int_to_ptr.vmem [resolvable:$true] %s401_s1 }
  0x92   : > { %p5176_p11 = pnand %p4403_p4, %p46_p2  ;;  %s5182_s8 = scalar_lea.sflag [#allocation3], %s390_s15 }
  0x93   : > { %s4785_s30 = scalar_lea.hbm %s5174_s11, 8192  ;;  %s4790_s26 = scalar_lea.hbm %s5988_s0, 16384 }
  0x94   : > { %p4786_p12 = scmp.ne.s32.totalorder %s5174_s11, %s4785_s30  ;;  %p4787_p8 = pneg %p5176_p11 }
  0x95   : > { %p4791_p13 = scmp.lt.u32.totalorder %s5174_s11, %s5988_s0  ;;  %p4792_p0 = scmp.lt.u32.totalorder %s4790_s26, %s4785_s30 }
  0x96   : > { %p4788_p1 = pnand %p4787_p8, %p4786_p12  ;;  %p4794_p5 = scmp.lt.u32.totalorder %s4785_s30, %s5174_s11 }
  0x97   : > { %p4793_p2 = por %p4792_p0, %p4791_p13 }
  0x98   : > { %p4789_p3 = pneg %p4788_p1 }
  0x99   : > { %p4795_p9 = por %p4794_p5, %p4793_p2 }
  0x9b   : > { %p4796_p4 = pnand %p4795_p9, %p4789_p3 }
  0x9d   : > { %4799 = shalt.err (!%p4796_p4)
}
  0x9e   : > { %s4800_s15 = scalar_lea.vmem %s5180_s1, 8192  ;;  %s4902_s25 = smov [#allocation2]  }
  0x9f   : > { %p4801_p12 = scmp.ne.s32.totalorder %s5180_s1, %s4800_s15  ;;  %s4805_s28 = sshll.u32 %s4902_s25, 4  ;;  %s4806_s28 = int_to_ptr.vmem [resolvable:$false] %s4805_s28 }
  0xa0   : > { %s4807_s22 = scalar_lea.vmem %s4806_s28, 16384  ;;  %p4808_p6 = scmp.lt.s32.totalorder %s5180_s1, %s4806_s28 }
  0xa1   : > { %p4803_p1 = pnand %p4801_p12, %p4787_p8  ;;  %p4809_p13 = scmp.lt.s32.totalorder %s4807_s22, %s4800_s15 }
  0xa3   : > { %p4804_p10 = pneg %p4803_p1  ;;  %p4810_p0 = por %p4809_p13, %p4808_p6 }
  0xa5   : > { %p4811_p2 = pnand %p4810_p0, %p4804_p10 }
  0xa7   : > { %4814 = shalt.err (!%p4811_p2)
}
  0xa8   : > { %s6019_s30 = smov 128   ;;  %p6020_p8 = scmp.ne.s32.totalorder %s6010_s24, 0 }
  0xa9   : > { %4393 = dma.hbm_to_vmem [thread:$0]  (!%p5176_p11), %s5174_s11, 8192, %s5180_s1, %s5182_s8, %s6019_s30, %s6019_s30, %s4899_s12  }
  0xaa   : > { %413 = sbr.rel (%p6020_p8) target bundleno = 1592 (0x638), region = 64  ;;  %s5216_s26 = sand.u32 (!%p6020_p8), 1, %s4885_s18  }
  0xab   : > { %s3323_s29 = sshll.u32 (!%p6020_p8), %s5216_s26, 9  ;;  %s416_s15 = scalar_lea.sflag (!%p6020_p8), [#allocation3], %s5216_s26 }
  0xac   : > { %s5222_s27 = scalar_lea.vmem (!%p6020_p8), [#allocation2], %s3323_s29 }
  0xb1   : > { %4860 = dma.done.wait (%p5156_p7), %s416_s15, 8192  }
  0xb2   : > { %4862 = vsyncadd (%p5156_p7), %s416_s15, 4294959104  ;;  %p6021_p6 = scmp.eq.s32.totalorder %s4988_s23, 0 }
  0xb4   : > { %4864 = dma.done.wait (%p6021_p6), [#allocation6], 4096   ;;  %p6022_p10 = pmov %p6021_p6 }
  0xb5   : > { %p6023_p11 = pmov %p6021_p6 }
  0xb6   : > { %4866 = vsyncadd (%p6022_p10), [#allocation6], 4294963200 }
  0xb7   : > { %4868 = dma.done.wait (%p6023_p11), [#allocation9], 4096   ;;  %p6024_p3 = pmov %p6021_p6 }
  0xb9   : > { %4870 = vsyncadd (%p6024_p3), [#allocation9], 4294963200  ;;  %p6025_p5 = pmov %p6024_p3 }
  0xba   : > { %p6026_p9 = pmov %p6024_p3 }
  0xbb   : > { %4872 = dma.done.wait (%p6025_p5), [#allocation12], 4096  }
  0xbc   : > { %4874 = vsyncadd (%p6026_p9), [#allocation12], 4294963200  ;;  %v544_v0 = vld [vmem:[#allocation5] sm:$0xff]  ;;  %v545_v1 = vld [vmem:[#allocation5 + $0x8] sm:$0xff]  ;;  %s6027_s22 = sld [smem:[#allocation20_spill]]  ;;  %s6028_s24 = sld [smem:[#allocation21_spill]] }
  0xbd   : > { %v546_v2 = vld [vmem:[#allocation5 + $0x10] sm:$0xff]  ;;  %v4174_v3 = vpack.c.bf16 %v545_v1, %v544_v0  ;;  %v547_v4 = vld [vmem:[#allocation5 + $0x18] sm:$0xff]  ;;  %v548_v6 = vld [vmem:[#allocation5 + $0x20] sm:$0xff]  ;;  %s5794_s12 = scalar_lea.vmem [#allocation13], %s3323_s29  ;;  %s3341_s13 = sshll.u32 %s4988_s23, 13 }
  0xbe   : > { %v4178_v5 = vpack.c.bf16 %v547_v4, %v546_v2  ;;  %v549_v7 = vld [vmem:[#allocation5 + $0x28] sm:$0xff]  ;;  %v480_v9 = vld [vmem:[%s5222_s27] sm:$0xff]  ;;  %v550_v10 = vld [vmem:[#allocation5 + $0x30] sm:$0xff]  ;;  %s3190_s11 = sshll.u32 %s5794_s12, 4  ;;  %s6029_s25 = sld [smem:[#allocation22_spill]]  ;;  %s5943_s11 = int_to_ptr.vmem [resolvable:$true] %s3190_s11 }
  0xbf   : > { %4175 = vmatprep.subr.bf16.mxu1 %v4174_v3  ;;  %v4182_v8 = vpack.c.bf16 %v549_v7, %v548_v6  ;;  %v551_v11 = vld [vmem:[#allocation5 + $0x38] sm:$0xff]  ;;  %3694 = vmatprep.mubr.f32.mxu1 %v480_v9  ;;  %v552_v13 = vld [vmem:[#allocation5 + $0x40] sm:$0xff]  ;;  %v553_v14 = vld [vmem:[#allocation5 + $0x48] sm:$0xff]  ;;  %s4815_s30 = scalar_lea.vmem %s5943_s11, 8192  ;;  %p6030_p4 = scmp.ne.s32.totalorder %s6016_s14, 0 }
  0xc0   : > { %4177 = vmatpush3.bf16.msra.mxu1 %v4174_v3  ;;  %v4186_v12 = vpack.c.bf16 %v551_v11, %v550_v10  ;;  %v4190_v15 = vpack.c.bf16 %v553_v14, %v552_v13  ;;  %v554_v16 = vld [vmem:[#allocation5 + $0x50] sm:$0xff]  ;;  %v555_v17 = vld [vmem:[#allocation5 + $0x58] sm:$0xff]  ;;  %v556_v19 = vld [vmem:[#allocation5 + $0x60] sm:$0xff]  ;;  %p4816_p7 = scmp.ne.s32.totalorder %s5943_s11, %s4815_s30  ;;  %s4904_s23 = smov [#allocation13]  }
  0xc1   : > { %4179 = vmatprep.subr.bf16.mxu1 %v4178_v5  ;;  %v4194_v18 = vpack.c.bf16 %v555_v17, %v554_v16  ;;  %v557_v20 = vld [vmem:[#allocation5 + $0x68] sm:$0xff]  ;;  %v558_v22 = vld [vmem:[#allocation5 + $0x70] sm:$0xff]  ;;  %v559_v23 = vld [vmem:[#allocation5 + $0x78] sm:$0xff]  ;;  %s4819_s15 = sshll.u32 %s4904_s23, 4  ;;  %s4820_s15 = int_to_ptr.vmem [resolvable:$false] %s4819_s15 }
  0xc2   : > { %v4198_v21 = vpack.c.bf16 %v557_v20, %v556_v19  ;;  %v4202_v24 = vpack.c.bf16 %v559_v23, %v558_v22  ;;  %v1016_v25 = vld [vmem:[#allocation7] sm:$0xff]  ;;  %v1017_v26 = vld [vmem:[#allocation7 + $0x8] sm:$0xff]  ;;  %v1018_v28 = vld [vmem:[#allocation7 + $0x10] sm:$0xff]  ;;  %p4817_p12 = pnand %p4816_p7, %p6030_p4  ;;  %s4821_s29 = scalar_lea.vmem %s4820_s15, 16384 }
  0xc3   : > { %v4206_v27 = vpack.c.bf16 %v1017_v26, %v1016_v25  ;;  %v1019_v29 = vld [vmem:[#allocation7 + $0x18] sm:$0xff]  ;;  %v481_v30 = vld [vmem:[%s5222_s27 + $0x8] sm:$0xff]  ;;  %v482_v31 = vld [vmem:[%s5222_s27 + $0x10] sm:$0xff]  ;;  %p4822_p13 = scmp.lt.s32.totalorder %s5943_s11, %s4820_s15  ;;  %p4823_p0 = scmp.lt.s32.totalorder %s4821_s29, %s4815_s30 }
  0xc4   : > { %4181 = vmatpush3.bf16.msra.mxu1 %v4178_v5  ;;  %v4210_v32 = vpack.c.bf16 %v1019_v29, %v1018_v28  ;;  %v1020_v33 = vld [vmem:[#allocation7 + $0x20] sm:$0xff]  ;;  %v1021_v34 = vld [vmem:[#allocation7 + $0x28] sm:$0xff]  ;;  %v483_v35 = vld [vmem:[%s5222_s27 + $0x18] sm:$0xff]  ;;  %s5941_s28 = scalar_lea.hbm %s6029_s25, %s3341_s13  ;;  %p4818_p1 = pneg %p4817_p12 }
  0xc5   : > { %4183 = vmatprep.subr.bf16.mxu1 %v4182_v8  ;;  %v484_v36 = vld [vmem:[%s5222_s27 + $0x20] sm:$0xff]  ;;  %v4214_v37 = vpack.c.bf16 %v1021_v34, %v1020_v33  ;;  %v1022_v38 = vld [vmem:[#allocation7 + $0x30] sm:$0xff]  ;;  %v1023_v39 = vld [vmem:[#allocation7 + $0x38] sm:$0xff]  ;;  %p4824_p2 = por %p4823_p0, %p4822_p13 }
  0xc6   : > { %v485_v40 = vld [vmem:[%s5222_s27 + $0x28] sm:$0xff]  ;;  %v486_v41 = vld [vmem:[%s5222_s27 + $0x30] sm:$0xff]  ;;  %v4218_v42 = vpack.c.bf16 %v1023_v39, %v1022_v38  ;;  %v1024_v43 = vld [vmem:[#allocation7 + $0x40] sm:$0xff] }
  0xc7   : > { %v1025_v44 = vld [vmem:[#allocation7 + $0x48] sm:$0xff]  ;;  %v487_v45 = vld [vmem:[%s5222_s27 + $0x38] sm:$0xff]  ;;  %v488_v46 = vld [vmem:[%s5222_s27 + $0x40] sm:$0xff]  ;;  %p4825_p8 = pnand %p4824_p2, %p4818_p1 }
  0xc8   : > { %4185 = vmatpush3.bf16.msra.mxu1 %v4182_v8  ;;  %v4222_v47 = vpack.c.bf16 %v1025_v44, %v1024_v43  ;;  %v1026_v48 = vld [vmem:[#allocation7 + $0x50] sm:$0xff]  ;;  %v1027_v49 = vld [vmem:[#allocation7 + $0x58] sm:$0xff]  ;;  %v489_v50 = vld [vmem:[%s5222_s27 + $0x48] sm:$0xff] }
  0xc9   : > { %4187 = vmatprep.subr.bf16.mxu1 %v4186_v12  ;;  %v490_v51 = vld [vmem:[%s5222_s27 + $0x50] sm:$0xff]  ;;  %v4226_v52 = vpack.c.bf16 %v1027_v49, %v1026_v48  ;;  %v1028_v53 = vld [vmem:[#allocation7 + $0x60] sm:$0xff]  ;;  %v1029_v54 = vld [vmem:[#allocation7 + $0x68] sm:$0xff] }
  0xca   : > { %v491_v55 = vld [vmem:[%s5222_s27 + $0x58] sm:$0xff]  ;;  %v492_v56 = vld [vmem:[%s5222_s27 + $0x60] sm:$0xff]  ;;  %v4230_v57 = vpack.c.bf16 %v1029_v54, %v1028_v53  ;;  %v1030_v58 = vld [vmem:[#allocation7 + $0x70] sm:$0xff] }
  0xcb   : > { %v1031_v59 = vld [vmem:[#allocation7 + $0x78] sm:$0xff]  ;;  %v493_v60 = vld [vmem:[%s5222_s27 + $0x68] sm:$0xff]  ;;  %v494_v61 = vld [vmem:[%s5222_s27 + $0x70] sm:$0xff] }
  0xcc   : > { %4189 = vmatpush3.bf16.msra.mxu1 %v4186_v12  ;;  %v4234_v62 = vpack.c.bf16 %v1031_v59, %v1030_v58  ;;  %v495_v63 = vld [vmem:[%s5222_s27 + $0x78] sm:$0xff]  ;;  %v496_v0 = vld [vmem:[%s5222_s27 + $0x80] sm:$0xff]  ;;  %v497_v1 = vld [vmem:[%s5222_s27 + $0x88] sm:$0xff] }
  0xcd   : > { %4191 = vmatprep.subr.bf16.mxu1 %v4190_v15  ;;  %v498_v2 = vld [vmem:[%s5222_s27 + $0x90] sm:$0xff]  ;;  %v499_v3 = vld [vmem:[%s5222_s27 + $0x98] sm:$0xff]  ;;  %v500_v4 = vld [vmem:[%s5222_s27 + $0xa0] sm:$0xff] }
  0xce   : > { %v501_v5 = vld [vmem:[%s5222_s27 + $0xa8] sm:$0xff]  ;;  %v502_v6 = vld [vmem:[%s5222_s27 + $0xb0] sm:$0xff]  ;;  %v503_v7 = vld [vmem:[%s5222_s27 + $0xb8] sm:$0xff] }
  0xcf   : > { %v504_v8 = vld [vmem:[%s5222_s27 + $0xc0] sm:$0xff]  ;;  %v505_v9 = vld [vmem:[%s5222_s27 + $0xc8] sm:$0xff]  ;;  %v506_v10 = vld [vmem:[%s5222_s27 + $0xd0] sm:$0xff] }
  0xd0   : > { %4193 = vmatpush3.bf16.msra.mxu1 %v4190_v15  ;;  %v507_v11 = vld [vmem:[%s5222_s27 + $0xd8] sm:$0xff]  ;;  %v508_v12 = vld [vmem:[%s5222_s27 + $0xe0] sm:$0xff]  ;;  %v509_v13 = vld [vmem:[%s5222_s27 + $0xe8] sm:$0xff] }
  0xd1   : > { %4195 = vmatprep.subr.bf16.mxu1 %v4194_v18  ;;  %v510_v14 = vld [vmem:[%s5222_s27 + $0xf0] sm:$0xff]  ;;  %v511_v15 = vld [vmem:[%s5222_s27 + $0xf8] sm:$0xff]  ;;  %v512_v16 = vld [vmem:[%s5222_s27 + $0x100] sm:$0xff] }
  0xd2   : > { %v513_v17 = vld [vmem:[%s5222_s27 + $0x108] sm:$0xff]  ;;  %v515_v19 = vld [vmem:[%s5222_s27 + $0x118] sm:$0xff]  ;;  %v516_v20 = vld [vmem:[%s5222_s27 + $0x120] sm:$0xff] }
  0xd3   : > { %v518_v22 = vld [vmem:[%s5222_s27 + $0x130] sm:$0xff]  ;;  %v519_v23 = vld [vmem:[%s5222_s27 + $0x138] sm:$0xff]  ;;  %v521_v25 = vld [vmem:[%s5222_s27 + $0x148] sm:$0xff] }
  0xd4   : > { %4197 = vmatpush3.bf16.msra.mxu1 %v4194_v18  ;;  %v514_v18 = vld [vmem:[%s5222_s27 + $0x110] sm:$0xff]  ;;  %v524_v28 = vld [vmem:[%s5222_s27 + $0x160] sm:$0xff]  ;;  %v525_v29 = vld [vmem:[%s5222_s27 + $0x168] sm:$0xff] }
  0xd5   : > { %4199 = vmatprep.subr.bf16.mxu1 %v4198_v21  ;;  %v522_v26 = vld [vmem:[%s5222_s27 + $0x150] sm:$0xff]  ;;  %v529_v33 = vld [vmem:[%s5222_s27 + $0x188] sm:$0xff]  ;;  %v535_v39 = vld [vmem:[%s5222_s27 + $0x1b8] sm:$0xff] }
  0xd6   : > { %v530_v34 = vld [vmem:[%s5222_s27 + $0x190] sm:$0xff]  ;;  %v539_v43 = vld [vmem:[%s5222_s27 + $0x1d8] sm:$0xff]  ;;  %v540_v44 = vld [vmem:[%s5222_s27 + $0x1e0] sm:$0xff] }
  0xd7   : > { %v534_v38 = vld [vmem:[%s5222_s27 + $0x1b0] sm:$0xff]  ;;  %v1488_v48 = vld [vmem:[#allocation8] sm:$0xff]  ;;  %v1489_v49 = vld [vmem:[#allocation8 + $0x8] sm:$0xff] }
  0xd8   : > { %4201 = vmatpush3.bf16.msra.mxu1 %v4198_v21  ;;  %v517_v21 = vld [vmem:[%s5222_s27 + $0x128] sm:$0xff]  ;;  %v1492_v54 = vld [vmem:[#allocation8 + $0x20] sm:$0xff]  ;;  %v1495_v58 = vld [vmem:[#allocation8 + $0x38] sm:$0xff] }
  0xd9   : > { %4203 = vmatprep.subr.bf16.mxu1 %v4202_v24 }
  0xdc   : > { %4205 = vmatpush3.bf16.msra.mxu1 %v4202_v24  ;;  %v520_v24 = vld [vmem:[%s5222_s27 + $0x140] sm:$0xff] }
  0xdd   : > { %4207 = vmatprep.subr.bf16.mxu1 %v4206_v27 }
  0xdf   : > { %3695 = vmatmul.mubr.f32.vlgmr.msra.gmra.mrb[0].mxu1 %v481_v30  ;;  %v526_v30 = vld [vmem:[%s5222_s27 + $0x170] sm:$0xff] }
  0xe0   : > { %3697 = vmatprep.mubr.f32.mxu1 %v482_v31  ;;  %4209 = vmatpush3.bf16.msra.mxu1 %v4206_v27  ;;  %v523_v27 = vld [vmem:[%s5222_s27 + $0x158] sm:$0xff] }
  0xe1   : > { %4211 = vmatprep.subr.bf16.mxu1 %v4210_v32  ;;  %v527_v31 = vld [vmem:[%s5222_s27 + $0x178] sm:$0xff] }
  0xe3   : > { %3698 = vmatmul.mubr.f32.gmra.mrb[2].mxu1 %v483_v35  ;;  %v531_v35 = vld [vmem:[%s5222_s27 + $0x198] sm:$0xff] }
  0xe4   : > { %3700 = vmatprep.mubr.f32.mxu1 %v484_v36  ;;  %4213 = vmatpush3.bf16.msra.mxu1 %v4210_v32  ;;  %v528_v32 = vld [vmem:[%s5222_s27 + $0x180] sm:$0xff] }
  0xe5   : > { %4215 = vmatprep.subr.bf16.mxu1 %v4214_v37  ;;  %v532_v36 = vld [vmem:[%s5222_s27 + $0x1a0] sm:$0xff] }
  0xe7   : > { %3701 = vmatmul.mubr.f32.gmra.mrb[4].mxu1 %v485_v40  ;;  %v536_v40 = vld [vmem:[%s5222_s27 + $0x1c0] sm:$0xff] }
  0xe8   : > { %3703 = vmatprep.mubr.f32.mxu1 %v486_v41  ;;  %4217 = vmatpush3.bf16.msra.mxu1 %v4214_v37  ;;  %v533_v37 = vld [vmem:[%s5222_s27 + $0x1a8] sm:$0xff] }
  0xe9   : > { %4219 = vmatprep.subr.bf16.mxu1 %v4218_v42  ;;  %v537_v41 = vld [vmem:[%s5222_s27 + $0x1c8] sm:$0xff] }
  0xeb   : > { %3704 = vmatmul.mubr.f32.gmra.mrb[6].mxu1 %v487_v45  ;;  %v541_v45 = vld [vmem:[%s5222_s27 + $0x1e8] sm:$0xff] }
  0xec   : > { %3706 = vmatprep.mubr.f32.mxu1 %v488_v46  ;;  %4221 = vmatpush3.bf16.msra.mxu1 %v4218_v42  ;;  %v538_v42 = vld [vmem:[%s5222_s27 + $0x1d0] sm:$0xff] }
  0xed   : > { %4223 = vmatprep.subr.bf16.mxu1 %v4222_v47  ;;  %v542_v46 = vld [vmem:[%s5222_s27 + $0x1f0] sm:$0xff] }
  0xef   : > { %3707 = vmatmul.mubr.f32.gmra.mrb[8].mxu1 %v489_v50  ;;  %v4238_v50 = vpack.c.bf16 %v1489_v49, %v1488_v48 }
  0xf0   : > { %3709 = vmatprep.mubr.f32.mxu1 %v490_v51  ;;  %4225 = vmatpush3.bf16.msra.mxu1 %v4222_v47  ;;  %v543_v47 = vld [vmem:[%s5222_s27 + $0x1f8] sm:$0xff]  ;;  %v1490_v51 = vld [vmem:[#allocation8 + $0x10] sm:$0xff] }
  0xf1   : > { %4227 = vmatprep.subr.bf16.mxu1 %v4226_v52  ;;  %4239 = vmatprep.subr.bf16.mxu0 %v4238_v50 }
  0xf2   : > { %4241 = vmatpush3.bf16.msra.mxu0 %v4238_v50 }
  0xf3   : > { %3710 = vmatmul.mubr.f32.gmra.mrb[10].mxu1 %v491_v55  ;;  %v1493_v55 = vld [vmem:[#allocation8 + $0x28] sm:$0xff] }
  0xf4   : > { %3712 = vmatprep.mubr.f32.mxu1 %v492_v56  ;;  %4229 = vmatpush3.bf16.msra.mxu1 %v4226_v52  ;;  %v1491_v52 = vld [vmem:[#allocation8 + $0x18] sm:$0xff]  ;;  %v4246_v56 = vpack.c.bf16 %v1493_v55, %v1492_v54 }
  0xf5   : > { %4231 = vmatprep.subr.bf16.mxu1 %v4230_v57  ;;  %v4242_v53 = vpack.c.bf16 %v1491_v52, %v1490_v51 }
  0xf7   : > { %3713 = vmatmul.mubr.f32.gmra.mrb[12].mxu1 %v493_v60  ;;  %4243 = vmatprep.subr.bf16.mxu0 %v4242_v53  ;;  %v5307_v60 = vld [vmem:[%s5990_s2] ss:$0 sm:$0xff] }
  0xf8   : > { %3715 = vmatprep.mubr.f32.mxu1 %v494_v61  ;;  %4233 = vmatpush3.bf16.msra.mxu1 %v4230_v57  ;;  %v1494_v57 = vld [vmem:[#allocation8 + $0x30] sm:$0xff] }
  0xf9   : > { %4235 = vmatprep.subr.bf16.mxu1 %v4234_v62  ;;  %4245 = vmatpush3.bf16.msra.mxu0 %v4242_v53  ;;  %v4250_v59 = vpack.c.bf16 %v1495_v58, %v1494_v57 }
  0xfa   : > { %4247 = vmatprep.subr.bf16.mxu0 %v4246_v56 }
  0xfb   : > { %3716 = vmatmul.mubr.f32.gmra.mrb[14].mxu1 %v495_v63  ;;  %v1497_v63 = vld [vmem:[#allocation8 + $0x48] sm:$0xff] }
  0xfc   : > { %3718 = vmatprep.mubr.f32.mxu1 %v496_v0  ;;  %4237 = vmatpush3.bf16.msra.mxu1 %v4234_v62  ;;  %v1496_v62 = vld [vmem:[#allocation8 + $0x40] sm:$0xff] }
  0xfd   : > { %4249 = vmatpush3.bf16.msra.mxu0 %v4246_v56 }
  0xfe   : > { %4251 = vmatprep.subr.bf16.mxu0 %v4250_v59 }
  0xff   : > { %3719 = vmatmul.mubr.f32.gmra.mrb[16].mxu1 %v497_v1 }
 0x100   : > { %3721 = vmatprep.mubr.f32.mxu1 %v498_v2  ;;  %v4254_v2 = vpack.c.bf16 %v1497_v63, %v1496_v62 }
 0x101   : > { %4253 = vmatpush3.bf16.msra.mxu0 %v4250_v59 }
 0x102   : > { %4255 = vmatprep.subr.bf16.mxu0 %v4254_v2 }
 0x103   : > { %3722 = vmatmul.mubr.f32.gmra.mrb[18].mxu1 %v499_v3 }
 0x104   : > { %3724 = vmatprep.mubr.f32.mxu1 %v500_v4  ;;  %v1498_v4 = vld [vmem:[#allocation8 + $0x50] sm:$0xff] }
 0x105   : > { %4257 = vmatpush3.bf16.msra.mxu0 %v4254_v2 }
 0x107   : > { %3725 = vmatmul.mubr.f32.gmra.mrb[20].mxu1 %v501_v5  ;;  %v1499_v5 = vld [vmem:[#allocation8 + $0x58] sm:$0xff] }
 0x108   : > { %3727 = vmatprep.mubr.f32.mxu1 %v502_v6  ;;  %v4258_v6 = vpack.c.bf16 %v1499_v5, %v1498_v4 }
 0x10a   : > { %4259 = vmatprep.subr.bf16.mxu0 %v4258_v6 }
 0x10b   : > { %3728 = vmatmul.mubr.f32.gmra.mrb[22].mxu1 %v503_v7  ;;  %v1500_v7 = vld [vmem:[#allocation8 + $0x60] sm:$0xff]  ;;  %4261 = vmatpush3.bf16.msra.mxu0 %v4258_v6 }
 0x10c   : > { %3730 = vmatprep.mubr.f32.mxu1 %v504_v8  ;;  %v1501_v8 = vld [vmem:[#allocation8 + $0x68] sm:$0xff] }
 0x10f   : > { %3731 = vmatmul.mubr.f32.gmra.mrb[24].mxu1 %v505_v9 }
 0x110   : > { %3733 = vmatprep.mubr.f32.mxu1 %v506_v10 }
 0x113   : > { %3734 = vmatmul.mubr.f32.gmra.mrb[26].mxu1 %v507_v11 }
 0x114   : > { %3736 = vmatprep.mubr.f32.mxu1 %v508_v12 }
 0x117   : > { %3737 = vmatmul.mubr.f32.gmra.mrb[28].mxu1 %v509_v13 }
 0x118   : > { %3739 = vmatprep.mubr.f32.mxu1 %v510_v14  ;;  %v4262_v14 = vpack.c.bf16 %v1501_v8, %v1500_v7 }
 0x11a   : > { %4263 = vmatprep.subr.bf16.mxu0 %v4262_v14 }
 0x11b   : > { %3740 = vmatmul.mubr.f32.gmra.mrb[30].mxu1 %v511_v15  ;;  %4265 = vmatpush3.bf16.msra.mxu0 %v4262_v14 }
 0x11c   : > { %3742 = vmatprep.mubr.f32.mxu1 %v512_v16 }
 0x11f   : > { %3743 = vmatmul.mubr.f32.gmra.mrb[32].mxu1 %v513_v17 }
 0x120   : > { %3745 = vmatprep.mubr.f32.mxu1 %v514_v18 }
 0x123   : > { %3746 = vmatmul.mubr.f32.gmra.mrb[34].mxu1 %v515_v19 }
 0x124   : > { %3748 = vmatprep.mubr.f32.mxu1 %v516_v20 }
 0x127   : > { %3749 = vmatmul.mubr.f32.gmra.mrb[36].mxu1 %v517_v21 }
 0x128   : > { %3751 = vmatprep.mubr.f32.mxu1 %v518_v22 }
 0x12b   : > { %3752 = vmatmul.mubr.f32.gmra.mrb[38].mxu1 %v519_v23 }
 0x12c   : > { %3754 = vmatprep.mubr.f32.mxu1 %v520_v24 }
 0x12f   : > { %3755 = vmatmul.mubr.f32.gmra.mrb[40].mxu1 %v521_v25 }
 0x130   : > { %3757 = vmatprep.mubr.f32.mxu1 %v522_v26 }
 0x133   : > { %3758 = vmatmul.mubr.f32.gmra.mrb[42].mxu1 %v523_v27 }
 0x134   : > { %3760 = vmatprep.mubr.f32.mxu1 %v524_v28 }
 0x137   : > { %3761 = vmatmul.mubr.f32.gmra.mrb[44].mxu1 %v525_v29 }
 0x138   : > { %3763 = vmatprep.mubr.f32.mxu1 %v526_v30 }
 0x13b   : > { %3764 = vmatmul.mubr.f32.gmra.mrb[46].mxu1 %v527_v31 }
 0x13c   : > { %3766 = vmatprep.mubr.f32.mxu1 %v528_v32 }
 0x13f   : > { %3767 = vmatmul.mubr.f32.gmra.mrb[48].mxu1 %v529_v33 }
 0x140   : > { %3769 = vmatprep.mubr.f32.mxu1 %v530_v34 }
 0x143   : > { %3770 = vmatmul.mubr.f32.gmra.mrb[50].mxu1 %v531_v35 }
 0x144   : > { %3772 = vmatprep.mubr.f32.mxu1 %v532_v36 }
 0x147   : > { %3773 = vmatmul.mubr.f32.gmra.mrb[52].mxu1 %v533_v37 }
 0x148   : > { %3775 = vmatprep.mubr.f32.mxu1 %v534_v38 }
 0x14b   : > { %3776 = vmatmul.mubr.f32.gmra.mrb[54].mxu1 %v535_v39 }
 0x14c   : > { %3778 = vmatprep.mubr.f32.mxu1 %v536_v40 }
 0x14f   : > { %3779 = vmatmul.mubr.f32.gmra.mrb[56].mxu1 %v537_v41 }
 0x150   : > { %3781 = vmatprep.mubr.f32.mxu1 %v538_v42 }
 0x153   : > { %3782 = vmatmul.mubr.f32.gmra.mrb[58].mxu1 %v539_v43 }
 0x154   : > { %3784 = vmatprep.mubr.f32.mxu1 %v540_v44 }
 0x157   : > { %3785 = vmatmul.mubr.f32.gmra.mrb[60].mxu1 %v541_v45 }
 0x158   : > { %3787 = vmatprep.mubr.f32.mxu1 %v542_v46 }
 0x15b   : > { %3788 = vmatmul.mubr.f32.gmra.mrb[62].mxu1 %v543_v47 }
 0x1b2   : > { %v3696_v61 = vpop.f32.mrb[0].mxu1 }
 0x1b3   : > { %v639_v0 = vadd.f32 %v3696_v61, %v5307_v60  ;;  %v633_v1 = vpop.f32.mrb[1].mxu1 }
 0x1b4   : > { %v634_v3 = vadd.f32 %v5307_v60, %v633_v1 }
 0x1b5   : > { %v953_v11 = vmax.f32 %v639_v0, 0.0 }
 0x1b6   : > { %v952_v9 = vmax.f32 %v634_v3, 0.0  ;;  %v3699_v10 = vpop.f32.mrb[2].mxu1 }
 0x1b7   : > { %v649_v12 = vadd.f32 %v3699_v10, %v5307_v60  ;;  %v643_v13 = vpop.f32.mrb[3].mxu1 }
 0x1b8   : > { %v644_v15 = vadd.f32 %v5307_v60, %v643_v13  ;;  %3822 = vmatprep.mubr.f32.mxu1 %v952_v9 }
 0x1b9   : > { %v955_v16 = vmax.f32 %v649_v12, 0.0  ;;  %3823 = vmatmul.mubr.f32.vlgmr.msra.gmra.mrb[64].mxu1 %v953_v11 }
 0x1ba   : > { %v954_v17 = vmax.f32 %v644_v15, 0.0  ;;  %v3702_v18 = vpop.f32.mrb[4].mxu1 }
 0x1bb   : > { %v659_v19 = vadd.f32 %v3702_v18, %v5307_v60  ;;  %v653_v20 = vpop.f32.mrb[5].mxu1 }
 0x1bc   : > { %v654_v21 = vadd.f32 %v5307_v60, %v653_v20  ;;  %3825 = vmatprep.mubr.f32.mxu1 %v954_v17 }
 0x1bd   : > { %v957_v22 = vmax.f32 %v659_v19, 0.0  ;;  %3826 = vmatmul.mubr.f32.gmra.mrb[66].mxu1 %v955_v16 }
 0x1be   : > { %v956_v23 = vmax.f32 %v654_v21, 0.0  ;;  %v3705_v24 = vpop.f32.mrb[6].mxu1 }
 0x1bf   : > { %v669_v25 = vadd.f32 %v3705_v24, %v5307_v60  ;;  %v663_v26 = vpop.f32.mrb[7].mxu1 }
 0x1c0   : > { %3828 = vmatprep.mubr.f32.mxu1 %v956_v23  ;;  %v664_v27 = vadd.f32 %v5307_v60, %v663_v26 }
 0x1c1   : > { %3829 = vmatmul.mubr.f32.gmra.mrb[68].mxu1 %v957_v22  ;;  %v959_v28 = vmax.f32 %v669_v25, 0.0 }
 0x1c2   : > { %v958_v29 = vmax.f32 %v664_v27, 0.0  ;;  %v3708_v30 = vpop.f32.mrb[8].mxu1 }
 0x1c3   : > { %v679_v31 = vadd.f32 %v3708_v30, %v5307_v60  ;;  %v673_v32 = vpop.f32.mrb[9].mxu1 }
 0x1c4   : > { %3831 = vmatprep.mubr.f32.mxu1 %v958_v29  ;;  %v674_v33 = vadd.f32 %v5307_v60, %v673_v32 }
 0x1c5   : > { %3832 = vmatmul.mubr.f32.gmra.mrb[70].mxu1 %v959_v28  ;;  %v961_v34 = vmax.f32 %v679_v31, 0.0 }
 0x1c6   : > { %v960_v35 = vmax.f32 %v674_v33, 0.0  ;;  %v3711_v36 = vpop.f32.mrb[10].mxu1 }
 0x1c7   : > { %v689_v37 = vadd.f32 %v3711_v36, %v5307_v60  ;;  %v683_v38 = vpop.f32.mrb[11].mxu1 }
 0x1c8   : > { %3834 = vmatprep.mubr.f32.mxu1 %v960_v35  ;;  %v684_v39 = vadd.f32 %v5307_v60, %v683_v38 }
 0x1c9   : > { %3835 = vmatmul.mubr.f32.gmra.mrb[72].mxu1 %v961_v34  ;;  %v963_v40 = vmax.f32 %v689_v37, 0.0 }
 0x1ca   : > { %v962_v41 = vmax.f32 %v684_v39, 0.0  ;;  %v3714_v42 = vpop.f32.mrb[12].mxu1 }
 0x1cb   : > { %v699_v43 = vadd.f32 %v3714_v42, %v5307_v60  ;;  %v693_v44 = vpop.f32.mrb[13].mxu1 }
 0x1cc   : > { %3837 = vmatprep.mubr.f32.mxu1 %v962_v41  ;;  %v694_v45 = vadd.f32 %v5307_v60, %v693_v44 }
 0x1cd   : > { %3838 = vmatmul.mubr.f32.gmra.mrb[74].mxu1 %v963_v40  ;;  %v965_v46 = vmax.f32 %v699_v43, 0.0 }
 0x1ce   : > { %v964_v47 = vmax.f32 %v694_v45, 0.0  ;;  %v3717_v48 = vpop.f32.mrb[14].mxu1 }
 0x1cf   : > { %v709_v49 = vadd.f32 %v3717_v48, %v5307_v60  ;;  %v703_v50 = vpop.f32.mrb[15].mxu1 }
 0x1d0   : > { %3840 = vmatprep.mubr.f32.mxu1 %v964_v47  ;;  %v704_v51 = vadd.f32 %v5307_v60, %v703_v50 }
 0x1d1   : > { %3841 = vmatmul.mubr.f32.gmra.mrb[76].mxu1 %v965_v46  ;;  %v967_v52 = vmax.f32 %v709_v49, 0.0 }
 0x1d2   : > { %v966_v53 = vmax.f32 %v704_v51, 0.0  ;;  %v3720_v54 = vpop.f32.mrb[16].mxu1 }
 0x1d3   : > { %v719_v55 = vadd.f32 %v3720_v54, %v5307_v60  ;;  %v713_v56 = vpop.f32.mrb[17].mxu1 }
 0x1d4   : > { %3843 = vmatprep.mubr.f32.mxu1 %v966_v53  ;;  %v714_v57 = vadd.f32 %v5307_v60, %v713_v56 }
 0x1d5   : > { %3844 = vmatmul.mubr.f32.gmra.mrb[78].mxu1 %v967_v52  ;;  %v969_v58 = vmax.f32 %v719_v55, 0.0 }
 0x1d6   : > { %v968_v59 = vmax.f32 %v714_v57, 0.0  ;;  %v3723_v61 = vpop.f32.mrb[18].mxu1 }
 0x1d7   : > { %v729_v62 = vadd.f32 %v3723_v61, %v5307_v60  ;;  %v723_v63 = vpop.f32.mrb[19].mxu1 }
 0x1d8   : > { %3846 = vmatprep.mubr.f32.mxu1 %v968_v59  ;;  %v724_v0 = vadd.f32 %v5307_v60, %v723_v63 }
 0x1d9   : > { %3847 = vmatmul.mubr.f32.gmra.mrb[80].mxu1 %v969_v58  ;;  %v971_v1 = vmax.f32 %v729_v62, 0.0 }
 0x1da   : > { %v970_v2 = vmax.f32 %v724_v0, 0.0  ;;  %v3726_v3 = vpop.f32.mrb[20].mxu1 }
 0x1db   : > { %v739_v4 = vadd.f32 %v3726_v3, %v5307_v60  ;;  %v733_v5 = vpop.f32.mrb[21].mxu1 }
 0x1dc   : > { %3849 = vmatprep.mubr.f32.mxu1 %v970_v2  ;;  %v734_v6 = vadd.f32 %v5307_v60, %v733_v5 }
 0x1dd   : > { %3850 = vmatmul.mubr.f32.gmra.mrb[82].mxu1 %v971_v1  ;;  %v973_v7 = vmax.f32 %v739_v4, 0.0 }
 0x1de   : > { %v972_v8 = vmax.f32 %v734_v6, 0.0  ;;  %v3729_v9 = vpop.f32.mrb[22].mxu1 }
 0x1df   : > { %v749_v10 = vadd.f32 %v3729_v9, %v5307_v60  ;;  %v743_v11 = vpop.f32.mrb[23].mxu1 }
 0x1e0   : > { %3852 = vmatprep.mubr.f32.mxu1 %v972_v8  ;;  %v744_v12 = vadd.f32 %v5307_v60, %v743_v11 }
 0x1e1   : > { %3853 = vmatmul.mubr.f32.gmra.mrb[84].mxu1 %v973_v7  ;;  %v975_v13 = vmax.f32 %v749_v10, 0.0 }
 0x1e2   : > { %v974_v14 = vmax.f32 %v744_v12, 0.0  ;;  %v3732_v15 = vpop.f32.mrb[24].mxu1 }
 0x1e3   : > { %v759_v16 = vadd.f32 %v3732_v15, %v5307_v60  ;;  %v753_v17 = vpop.f32.mrb[25].mxu1 }
 0x1e4   : > { %3855 = vmatprep.mubr.f32.mxu1 %v974_v14  ;;  %v754_v18 = vadd.f32 %v5307_v60, %v753_v17  ;;  %v1503_v17 = vld [vmem:[#allocation8 + $0x78] sm:$0xff] }
 0x1e5   : > { %3856 = vmatmul.mubr.f32.gmra.mrb[86].mxu1 %v975_v13  ;;  %v977_v19 = vmax.f32 %v759_v16, 0.0  ;;  %v1502_v16 = vld [vmem:[#allocation8 + $0x70] sm:$0xff] }
 0x1e6   : > { %v976_v20 = vmax.f32 %v754_v18, 0.0  ;;  %v3735_v21 = vpop.f32.mrb[26].mxu1 }
 0x1e7   : > { %v769_v22 = vadd.f32 %v3735_v21, %v5307_v60  ;;  %v763_v23 = vpop.f32.mrb[27].mxu1 }
 0x1e8   : > { %3858 = vmatprep.mubr.f32.mxu1 %v976_v20  ;;  %v764_v24 = vadd.f32 %v5307_v60, %v763_v23 }
 0x1e9   : > { %3859 = vmatmul.mubr.f32.gmra.mrb[88].mxu1 %v977_v19  ;;  %v979_v25 = vmax.f32 %v769_v22, 0.0  ;;  %v4266_v19 = vpack.c.bf16 %v1503_v17, %v1502_v16  ;;  %v1963_v16 = vld [vmem:[#allocation10 + $0x18] sm:$0xff] }
 0x1ea   : > { %v978_v26 = vmax.f32 %v764_v24, 0.0  ;;  %v3738_v27 = vpop.f32.mrb[28].mxu1 }
 0x1eb   : > { %v779_v28 = vadd.f32 %v3738_v27, %v5307_v60  ;;  %v773_v29 = vpop.f32.mrb[29].mxu1  ;;  %4267 = vmatprep.subr.bf16.mxu0 %v4266_v19 }
 0x1ec   : > { %3861 = vmatprep.mubr.f32.mxu1 %v978_v26  ;;  %v774_v30 = vadd.f32 %v5307_v60, %v773_v29  ;;  %4269 = vmatpush3.bf16.msra.mxu0 %v4266_v19  ;;  %v1965_v19 = vld [vmem:[#allocation10 + $0x28] sm:$0xff] }
 0x1ed   : > { %3862 = vmatmul.mubr.f32.gmra.mrb[90].mxu1 %v979_v25  ;;  %v981_v31 = vmax.f32 %v779_v28, 0.0 }
 0x1ee   : > { %v980_v32 = vmax.f32 %v774_v30, 0.0  ;;  %v3741_v33 = vpop.f32.mrb[30].mxu1 }
 0x1ef   : > { %v789_v34 = vadd.f32 %v3741_v33, %v5307_v60  ;;  %v783_v35 = vpop.f32.mrb[31].mxu1 }
 0x1f0   : > { %3864 = vmatprep.mubr.f32.mxu1 %v980_v32  ;;  %v784_v36 = vadd.f32 %v5307_v60, %v783_v35 }
 0x1f1   : > { %3865 = vmatmul.mubr.f32.gmra.mrb[92].mxu1 %v981_v31  ;;  %v983_v37 = vmax.f32 %v789_v34, 0.0 }
 0x1f2   : > { %v982_v38 = vmax.f32 %v784_v36, 0.0  ;;  %v3744_v39 = vpop.f32.mrb[32].mxu1 }
 0x1f3   : > { %v799_v40 = vadd.f32 %v3744_v39, %v5307_v60  ;;  %v793_v41 = vpop.f32.mrb[33].mxu1 }
 0x1f4   : > { %3867 = vmatprep.mubr.f32.mxu1 %v982_v38  ;;  %v794_v42 = vadd.f32 %v5307_v60, %v793_v41 }
 0x1f5   : > { %3868 = vmatmul.mubr.f32.gmra.mrb[94].mxu1 %v983_v37  ;;  %v985_v43 = vmax.f32 %v799_v40, 0.0 }
 0x1f6   : > { %v984_v44 = vmax.f32 %v794_v42, 0.0  ;;  %v3747_v45 = vpop.f32.mrb[34].mxu1 }
 0x1f7   : > { %v809_v46 = vadd.f32 %v3747_v45, %v5307_v60  ;;  %v803_v47 = vpop.f32.mrb[35].mxu1 }
 0x1f8   : > { %3870 = vmatprep.mubr.f32.mxu1 %v984_v44  ;;  %v804_v48 = vadd.f32 %v5307_v60, %v803_v47 }
 0x1f9   : > { %3871 = vmatmul.mubr.f32.gmra.mrb[96].mxu1 %v985_v43  ;;  %v987_v49 = vmax.f32 %v809_v46, 0.0 }
 0x1fa   : > { %v986_v50 = vmax.f32 %v804_v48, 0.0  ;;  %v3750_v51 = vpop.f32.mrb[36].mxu1 }
 0x1fb   : > { %v819_v52 = vadd.f32 %v3750_v51, %v5307_v60  ;;  %v813_v53 = vpop.f32.mrb[37].mxu1 }
 0x1fc   : > { %3873 = vmatprep.mubr.f32.mxu1 %v986_v50  ;;  %v814_v54 = vadd.f32 %v5307_v60, %v813_v53 }
 0x1fd   : > { %3874 = vmatmul.mubr.f32.gmra.mrb[98].mxu1 %v987_v49  ;;  %v989_v55 = vmax.f32 %v819_v52, 0.0 }
 0x1fe   : > { %v988_v56 = vmax.f32 %v814_v54, 0.0  ;;  %v3753_v57 = vpop.f32.mrb[38].mxu1 }
 0x1ff   : > { %v829_v58 = vadd.f32 %v3753_v57, %v5307_v60  ;;  %v823_v59 = vpop.f32.mrb[39].mxu1 }
 0x200   : > { %3876 = vmatprep.mubr.f32.mxu1 %v988_v56  ;;  %v824_v61 = vadd.f32 %v5307_v60, %v823_v59 }
 0x201   : > { %3877 = vmatmul.mubr.f32.gmra.mrb[100].mxu1 %v989_v55  ;;  %v991_v62 = vmax.f32 %v829_v58, 0.0 }
 0x202   : > { %v990_v63 = vmax.f32 %v824_v61, 0.0  ;;  %v3756_v0 = vpop.f32.mrb[40].mxu1 }
 0x203   : > { %v839_v1 = vadd.f32 %v3756_v0, %v5307_v60  ;;  %v833_v2 = vpop.f32.mrb[41].mxu1 }
 0x204   : > { %3879 = vmatprep.mubr.f32.mxu1 %v990_v63  ;;  %v834_v3 = vadd.f32 %v5307_v60, %v833_v2 }
 0x205   : > { %3880 = vmatmul.mubr.f32.gmra.mrb[102].mxu1 %v991_v62  ;;  %v993_v4 = vmax.f32 %v839_v1, 0.0 }
 0x206   : > { %v992_v5 = vmax.f32 %v834_v3, 0.0  ;;  %v3759_v6 = vpop.f32.mrb[42].mxu1 }
 0x207   : > { %v849_v7 = vadd.f32 %v3759_v6, %v5307_v60  ;;  %v843_v8 = vpop.f32.mrb[43].mxu1 }
 0x208   : > { %3882 = vmatprep.mubr.f32.mxu1 %v992_v5  ;;  %v844_v9 = vadd.f32 %v5307_v60, %v843_v8 }
 0x209   : > { %3883 = vmatmul.mubr.f32.gmra.mrb[104].mxu1 %v993_v4  ;;  %v995_v10 = vmax.f32 %v849_v7, 0.0 }
 0x20a   : > { %v994_v11 = vmax.f32 %v844_v9, 0.0  ;;  %v3762_v12 = vpop.f32.mrb[44].mxu1 }
 0x20b   : > { %v859_v13 = vadd.f32 %v3762_v12, %v5307_v60  ;;  %v853_v14 = vpop.f32.mrb[45].mxu1  ;;  %v1960_v12 = vld [vmem:[#allocation10] sm:$0xff] }
 0x20c   : > { %3885 = vmatprep.mubr.f32.mxu1 %v994_v11  ;;  %v854_v15 = vadd.f32 %v5307_v60, %v853_v14 }
 0x20d   : > { %3886 = vmatmul.mubr.f32.gmra.mrb[106].mxu1 %v995_v10  ;;  %v997_v18 = vmax.f32 %v859_v13, 0.0  ;;  %v1961_v13 = vld [vmem:[#allocation10 + $0x8] sm:$0xff] }
 0x20e   : > { %v996_v20 = vmax.f32 %v854_v15, 0.0  ;;  %v3765_v21 = vpop.f32.mrb[46].mxu1  ;;  %v4270_v14 = vpack.c.bf16 %v1961_v13, %v1960_v12  ;;  %v1962_v15 = vld [vmem:[#allocation10 + $0x10] sm:$0xff] }
 0x20f   : > { %v869_v22 = vadd.f32 %v3765_v21, %v5307_v60  ;;  %v863_v23 = vpop.f32.mrb[47].mxu1  ;;  %v4274_v17 = vpack.c.bf16 %v1963_v16, %v1962_v15  ;;  %v1967_v21 = vld [vmem:[#allocation10 + $0x38] sm:$0xff] }
 0x210   : > { %3888 = vmatprep.mubr.f32.mxu1 %v996_v20  ;;  %v864_v24 = vadd.f32 %v5307_v60, %v863_v23  ;;  %4271 = vmatprep.subr.bf16.mxu1 %v4270_v14  ;;  %v1968_v23 = vld [vmem:[#allocation10 + $0x40] sm:$0xff] }
 0x211   : > { %v999_v25 = vmax.f32 %v869_v22, 0.0  ;;  %3889 = vmatmul.mubr.f32.gmra.mrb[108].mxu1 %v997_v18  ;;  %v1964_v18 = vld [vmem:[#allocation10 + $0x20] sm:$0xff] }
 0x212   : > { %v998_v26 = vmax.f32 %v864_v24, 0.0  ;;  %v3768_v27 = vpop.f32.mrb[48].mxu1  ;;  %4273 = vmatpush3.bf16.msra.mxu1 %v4270_v14  ;;  %v4278_v20 = vpack.c.bf16 %v1965_v19, %v1964_v18  ;;  %v1969_v24 = vld [vmem:[#allocation10 + $0x48] sm:$0xff] }
 0x213   : > { %v879_v28 = vadd.f32 %v3768_v27, %v5307_v60  ;;  %v873_v29 = vpop.f32.mrb[49].mxu1  ;;  %4275 = vmatprep.subr.bf16.mxu1 %v4274_v17  ;;  %v1971_v27 = vld [vmem:[#allocation10 + $0x58] sm:$0xff] }
 0x214   : > { %v874_v30 = vadd.f32 %v5307_v60, %v873_v29  ;;  %3891 = vmatprep.mubr.f32.mxu1 %v998_v26  ;;  %v1970_v26 = vld [vmem:[#allocation10 + $0x50] sm:$0xff]  ;;  %v1972_v29 = vld [vmem:[#allocation10 + $0x60] sm:$0xff] }
 0x215   : > { %v1001_v31 = vmax.f32 %v879_v28, 0.0  ;;  %3892 = vmatmul.mubr.f32.gmra.mrb[110].mxu1 %v999_v25  ;;  %v4286_v25 = vpack.c.bf16 %v1969_v24, %v1968_v23  ;;  %v4290_v28 = vpack.c.bf16 %v1971_v27, %v1970_v26 }
 0x216   : > { %v1000_v32 = vmax.f32 %v874_v30, 0.0  ;;  %v3771_v33 = vpop.f32.mrb[50].mxu1  ;;  %4277 = vmatpush3.bf16.msra.mxu1 %v4274_v17  ;;  %v1973_v30 = vld [vmem:[#allocation10 + $0x68] sm:$0xff] }
 0x217   : > { %v889_v34 = vadd.f32 %v3771_v33, %v5307_v60  ;;  %v883_v35 = vpop.f32.mrb[51].mxu1  ;;  %4279 = vmatprep.subr.bf16.mxu1 %v4278_v20 }
 0x218   : > { %v884_v36 = vadd.f32 %v5307_v60, %v883_v35  ;;  %3894 = vmatprep.mubr.f32.mxu1 %v1000_v32  ;;  %v5376_v32 = vld [vmem:[%s5992_s4] ss:$0 sm:$0xff]  ;;  %v1975_v35 = vld [vmem:[#allocation10 + $0x78] sm:$0xff] }
 0x219   : > { %v1003_v37 = vmax.f32 %v889_v34, 0.0  ;;  %3895 = vmatmul.mubr.f32.gmra.mrb[112].mxu1 %v1001_v31  ;;  %v4294_v31 = vpack.c.bf16 %v1973_v30, %v1972_v29  ;;  %v1974_v34 = vld [vmem:[#allocation10 + $0x70] sm:$0xff] }
 0x21a   : > { %v1002_v38 = vmax.f32 %v884_v36, 0.0  ;;  %v3774_v39 = vpop.f32.mrb[52].mxu1  ;;  %4281 = vmatpush3.bf16.msra.mxu1 %v4278_v20 }
 0x21b   : > { %v899_v40 = vadd.f32 %v3774_v39, %v5307_v60  ;;  %v893_v41 = vpop.f32.mrb[53].mxu1 }
 0x21c   : > { %v894_v42 = vadd.f32 %v5307_v60, %v893_v41  ;;  %3897 = vmatprep.mubr.f32.mxu1 %v1002_v38  ;;  %v4298_v38 = vpack.c.bf16 %v1975_v35, %v1974_v34 }
 0x21d   : > { %v1005_v43 = vmax.f32 %v899_v40, 0.0  ;;  %3898 = vmatmul.mubr.f32.gmra.mrb[114].mxu1 %v1003_v37 }
 0x21e   : > { %v1004_v44 = vmax.f32 %v894_v42, 0.0  ;;  %v3777_v45 = vpop.f32.mrb[54].mxu1 }
 0x21f   : > { %v909_v46 = vadd.f32 %v3777_v45, %v5307_v60  ;;  %v903_v47 = vpop.f32.mrb[55].mxu1 }
 0x220   : > { %v904_v48 = vadd.f32 %v5307_v60, %v903_v47  ;;  %3900 = vmatprep.mubr.f32.mxu1 %v1004_v44 }
 0x221   : > { %v1007_v49 = vmax.f32 %v909_v46, 0.0  ;;  %3901 = vmatmul.mubr.f32.gmra.mrb[116].mxu1 %v1005_v43 }
 0x222   : > { %v1006_v50 = vmax.f32 %v904_v48, 0.0  ;;  %v3780_v51 = vpop.f32.mrb[56].mxu1 }
 0x223   : > { %v919_v52 = vadd.f32 %v3780_v51, %v5307_v60  ;;  %v913_v53 = vpop.f32.mrb[57].mxu1 }
 0x224   : > { %v914_v54 = vadd.f32 %v5307_v60, %v913_v53  ;;  %3903 = vmatprep.mubr.f32.mxu1 %v1006_v50 }
 0x225   : > { %v1009_v55 = vmax.f32 %v919_v52, 0.0  ;;  %3904 = vmatmul.mubr.f32.gmra.mrb[118].mxu1 %v1007_v49 }
 0x226   : > { %v1008_v56 = vmax.f32 %v914_v54, 0.0  ;;  %v3783_v57 = vpop.f32.mrb[58].mxu1 }
 0x227   : > { %v929_v58 = vadd.f32 %v3783_v57, %v5307_v60  ;;  %v923_v59 = vpop.f32.mrb[59].mxu1 }
 0x228   : > { %v924_v61 = vadd.f32 %v5307_v60, %v923_v59  ;;  %3906 = vmatprep.mubr.f32.mxu1 %v1008_v56 }
 0x229   : > { %v1011_v62 = vmax.f32 %v929_v58, 0.0  ;;  %3907 = vmatmul.mubr.f32.gmra.mrb[120].mxu1 %v1009_v55 }
 0x22a   : > { %v1010_v63 = vmax.f32 %v924_v61, 0.0  ;;  %v3786_v0 = vpop.f32.mrb[60].mxu1 }
 0x22b   : > { %v939_v1 = vadd.f32 %v3786_v0, %v5307_v60  ;;  %v933_v2 = vpop.f32.mrb[61].mxu1 }
 0x22c   : > { %v934_v3 = vadd.f32 %v5307_v60, %v933_v2  ;;  %3909 = vmatprep.mubr.f32.mxu1 %v1010_v63 }
 0x22d   : > { %v1013_v4 = vmax.f32 %v939_v1, 0.0  ;;  %3910 = vmatmul.mubr.f32.gmra.mrb[122].mxu1 %v1011_v62 }
 0x22e   : > { %v1012_v5 = vmax.f32 %v934_v3, 0.0  ;;  %v3789_v6 = vpop.f32.mrb[62].mxu1 }
 0x22f   : > { %v949_v7 = vadd.f32 %v3789_v6, %v5307_v60  ;;  %v943_v8 = vpop.f32.mrb[63].mxu1 }
 0x230   : > { %v944_v9 = vadd.f32 %v5307_v60, %v943_v8  ;;  %3912 = vmatprep.mubr.f32.mxu1 %v1012_v5  ;;  %v1966_v60 = vld [vmem:[#allocation10 + $0x30] sm:$0xff] }
 0x231   : > { %v1015_v10 = vmax.f32 %v949_v7, 0.0  ;;  %3913 = vmatmul.mubr.f32.gmra.mrb[124].mxu1 %v1013_v4  ;;  %v4282_v22 = vpack.c.bf16 %v1967_v21, %v1966_v60 }
 0x232   : > { %v1014_v11 = vmax.f32 %v944_v9, 0.0 }
 0x233   : > { %4283 = vmatprep.subr.bf16.mxu1 %v4282_v22 }
 0x234   : > { %3915 = vmatprep.mubr.f32.mxu1 %v1014_v11  ;;  %4285 = vmatpush3.bf16.msra.mxu1 %v4282_v22 }
 0x235   : > { %3916 = vmatmul.mubr.f32.gmra.mrb[126].mxu1 %v1015_v10  ;;  %4287 = vmatprep.subr.bf16.mxu1 %v4286_v25 }
 0x238   : > { %4289 = vmatpush3.bf16.msra.mxu1 %v4286_v25 }
 0x239   : > { %4291 = vmatprep.subr.bf16.mxu1 %v4290_v28 }
 0x23c   : > { %4293 = vmatpush3.bf16.msra.mxu1 %v4290_v28 }
 0x23d   : > { %4295 = vmatprep.subr.bf16.mxu1 %v4294_v31 }
 0x240   : > { %4297 = vmatpush3.bf16.msra.mxu1 %v4294_v31 }
 0x241   : > { %4299 = vmatprep.subr.bf16.mxu1 %v4298_v38 }
 0x244   : > { %4301 = vmatpush3.bf16.msra.mxu1 %v4298_v38 }
 0x28c   : > { %v3824_v33 = vpop.f32.mrb[64].mxu1 }
 0x28d   : > { %v1111_v36 = vadd.f32 %v3824_v33, %v5376_v32  ;;  %v1105_v37 = vpop.f32.mrb[65].mxu1 }
 0x28e   : > { %v1106_v39 = vadd.f32 %v5376_v32, %v1105_v37 }
 0x28f   : > { %v1425_v42 = vmax.f32 %v1111_v36, 0.0 }
 0x290   : > { %v3827_v40 = vpop.f32.mrb[66].mxu1  ;;  %v1424_v41 = vmax.f32 %v1106_v39, 0.0 }
 0x291   : > { %v1121_v43 = vadd.f32 %v3827_v40, %v5376_v32  ;;  %v1115_v44 = vpop.f32.mrb[67].mxu1 }
 0x292   : > { %v1116_v45 = vadd.f32 %v5376_v32, %v1115_v44  ;;  %3950 = vmatprep.mubr.f32.mxu0 %v1424_v41 }
 0x293   : > { %v1427_v46 = vmax.f32 %v1121_v43, 0.0  ;;  %3951 = vmatmul.mubr.f32.vlgmr.msra.gmra.mrb[0].mxu0 %v1425_v42 }
 0x294   : > { %v1426_v47 = vmax.f32 %v1116_v45, 0.0  ;;  %v3830_v48 = vpop.f32.mrb[68].mxu1 }
 0x295   : > { %v1131_v49 = vadd.f32 %v3830_v48, %v5376_v32  ;;  %v1125_v50 = vpop.f32.mrb[69].mxu1 }
 0x296   : > { %v1126_v51 = vadd.f32 %v5376_v32, %v1125_v50  ;;  %3953 = vmatprep.mubr.f32.mxu0 %v1426_v47 }
 0x297   : > { %v1429_v52 = vmax.f32 %v1131_v49, 0.0  ;;  %3954 = vmatmul.mubr.f32.gmra.mrb[2].mxu0 %v1427_v46 }
 0x298   : > { %v1428_v53 = vmax.f32 %v1126_v51, 0.0  ;;  %v3833_v54 = vpop.f32.mrb[70].mxu1 }
 0x299   : > { %v1141_v55 = vadd.f32 %v3833_v54, %v5376_v32  ;;  %v1135_v56 = vpop.f32.mrb[71].mxu1 }
 0x29a   : > { %3956 = vmatprep.mubr.f32.mxu0 %v1428_v53  ;;  %v1136_v57 = vadd.f32 %v5376_v32, %v1135_v56 }
 0x29b   : > { %3957 = vmatmul.mubr.f32.gmra.mrb[4].mxu0 %v1429_v52  ;;  %v1431_v58 = vmax.f32 %v1141_v55, 0.0 }
 0x29c   : > { %v1430_v59 = vmax.f32 %v1136_v57, 0.0  ;;  %v3836_v61 = vpop.f32.mrb[72].mxu1 }
 0x29d   : > { %v1151_v62 = vadd.f32 %v3836_v61, %v5376_v32  ;;  %v1145_v63 = vpop.f32.mrb[73].mxu1 }
 0x29e   : > { %3959 = vmatprep.mubr.f32.mxu0 %v1430_v59  ;;  %v1146_v0 = vadd.f32 %v5376_v32, %v1145_v63 }
 0x29f   : > { %3960 = vmatmul.mubr.f32.gmra.mrb[6].mxu0 %v1431_v58  ;;  %v1433_v1 = vmax.f32 %v1151_v62, 0.0 }
 0x2a0   : > { %v1432_v2 = vmax.f32 %v1146_v0, 0.0  ;;  %v3839_v3 = vpop.f32.mrb[74].mxu1 }
 0x2a1   : > { %v1161_v4 = vadd.f32 %v3839_v3, %v5376_v32  ;;  %v1155_v5 = vpop.f32.mrb[75].mxu1 }
 0x2a2   : > { %3962 = vmatprep.mubr.f32.mxu0 %v1432_v2  ;;  %v1156_v6 = vadd.f32 %v5376_v32, %v1155_v5 }
 0x2a3   : > { %3963 = vmatmul.mubr.f32.gmra.mrb[8].mxu0 %v1433_v1  ;;  %v1435_v7 = vmax.f32 %v1161_v4, 0.0 }
 0x2a4   : > { %v1434_v8 = vmax.f32 %v1156_v6, 0.0  ;;  %v3842_v9 = vpop.f32.mrb[76].mxu1 }
 0x2a5   : > { %v1171_v10 = vadd.f32 %v3842_v9, %v5376_v32  ;;  %v1165_v11 = vpop.f32.mrb[77].mxu1 }
 0x2a6   : > { %3965 = vmatprep.mubr.f32.mxu0 %v1434_v8  ;;  %v1166_v12 = vadd.f32 %v5376_v32, %v1165_v11 }
 0x2a7   : > { %3966 = vmatmul.mubr.f32.gmra.mrb[10].mxu0 %v1435_v7  ;;  %v1437_v13 = vmax.f32 %v1171_v10, 0.0 }
 0x2a8   : > { %v1436_v14 = vmax.f32 %v1166_v12, 0.0  ;;  %v3845_v15 = vpop.f32.mrb[78].mxu1 }
 0x2a9   : > { %v1181_v16 = vadd.f32 %v3845_v15, %v5376_v32  ;;  %v1175_v17 = vpop.f32.mrb[79].mxu1 }
 0x2aa   : > { %3968 = vmatprep.mubr.f32.mxu0 %v1436_v14  ;;  %v1176_v18 = vadd.f32 %v5376_v32, %v1175_v17 }
 0x2ab   : > { %3969 = vmatmul.mubr.f32.gmra.mrb[12].mxu0 %v1437_v13  ;;  %v1439_v19 = vmax.f32 %v1181_v16, 0.0 }
 0x2ac   : > { %v1438_v20 = vmax.f32 %v1176_v18, 0.0  ;;  %v3848_v60 = vpop.f32.mrb[80].mxu1 }
 0x2ad   : > { %v1191_v21 = vadd.f32 %v3848_v60, %v5376_v32  ;;  %v1185_v22 = vpop.f32.mrb[81].mxu1 }
 0x2ae   : > { %3971 = vmatprep.mubr.f32.mxu0 %v1438_v20  ;;  %v1186_v23 = vadd.f32 %v5376_v32, %v1185_v22 }
 0x2af   : > { %3972 = vmatmul.mubr.f32.gmra.mrb[14].mxu0 %v1439_v19  ;;  %v1441_v24 = vmax.f32 %v1191_v21, 0.0 }
 0x2b0   : > { %v1440_v25 = vmax.f32 %v1186_v23, 0.0  ;;  %v3851_v26 = vpop.f32.mrb[82].mxu1 }
 0x2b1   : > { %v1201_v27 = vadd.f32 %v3851_v26, %v5376_v32  ;;  %v1195_v28 = vpop.f32.mrb[83].mxu1 }
 0x2b2   : > { %3974 = vmatprep.mubr.f32.mxu0 %v1440_v25  ;;  %v1196_v29 = vadd.f32 %v5376_v32, %v1195_v28 }
 0x2b3   : > { %3975 = vmatmul.mubr.f32.gmra.mrb[16].mxu0 %v1441_v24  ;;  %v1443_v30 = vmax.f32 %v1201_v27, 0.0 }
 0x2b4   : > { %v1442_v31 = vmax.f32 %v1196_v29, 0.0  ;;  %v3854_v33 = vpop.f32.mrb[84].mxu1 }
 0x2b5   : > { %v1211_v34 = vadd.f32 %v3854_v33, %v5376_v32  ;;  %v1205_v35 = vpop.f32.mrb[85].mxu1 }
 0x2b6   : > { %3977 = vmatprep.mubr.f32.mxu0 %v1442_v31  ;;  %v1206_v36 = vadd.f32 %v5376_v32, %v1205_v35 }
 0x2b7   : > { %3978 = vmatmul.mubr.f32.gmra.mrb[18].mxu0 %v1443_v30  ;;  %v1445_v37 = vmax.f32 %v1211_v34, 0.0 }
 0x2b8   : > { %v1444_v38 = vmax.f32 %v1206_v36, 0.0  ;;  %v3857_v39 = vpop.f32.mrb[86].mxu1 }
 0x2b9   : > { %v1221_v40 = vadd.f32 %v3857_v39, %v5376_v32  ;;  %v1215_v41 = vpop.f32.mrb[87].mxu1 }
 0x2ba   : > { %3980 = vmatprep.mubr.f32.mxu0 %v1444_v38  ;;  %v1216_v42 = vadd.f32 %v5376_v32, %v1215_v41 }
 0x2bb   : > { %3981 = vmatmul.mubr.f32.gmra.mrb[20].mxu0 %v1445_v37  ;;  %v1447_v43 = vmax.f32 %v1221_v40, 0.0 }
 0x2bc   : > { %v1446_v44 = vmax.f32 %v1216_v42, 0.0  ;;  %v3860_v45 = vpop.f32.mrb[88].mxu1 }
 0x2bd   : > { %v1231_v46 = vadd.f32 %v3860_v45, %v5376_v32  ;;  %v1225_v47 = vpop.f32.mrb[89].mxu1 }
 0x2be   : > { %3983 = vmatprep.mubr.f32.mxu0 %v1446_v44  ;;  %v1226_v48 = vadd.f32 %v5376_v32, %v1225_v47 }
 0x2bf   : > { %3984 = vmatmul.mubr.f32.gmra.mrb[22].mxu0 %v1447_v43  ;;  %v1449_v49 = vmax.f32 %v1231_v46, 0.0 }
 0x2c0   : > { %v1448_v50 = vmax.f32 %v1226_v48, 0.0  ;;  %v3863_v51 = vpop.f32.mrb[90].mxu1 }
 0x2c1   : > { %v1241_v52 = vadd.f32 %v3863_v51, %v5376_v32  ;;  %v1235_v53 = vpop.f32.mrb[91].mxu1 }
 0x2c2   : > { %3986 = vmatprep.mubr.f32.mxu0 %v1448_v50  ;;  %v1236_v54 = vadd.f32 %v5376_v32, %v1235_v53 }
 0x2c3   : > { %3987 = vmatmul.mubr.f32.gmra.mrb[24].mxu0 %v1449_v49  ;;  %v1451_v55 = vmax.f32 %v1241_v52, 0.0 }
 0x2c4   : > { %v1450_v56 = vmax.f32 %v1236_v54, 0.0  ;;  %v3866_v57 = vpop.f32.mrb[92].mxu1 }
 0x2c5   : > { %v1251_v58 = vadd.f32 %v3866_v57, %v5376_v32  ;;  %v1245_v59 = vpop.f32.mrb[93].mxu1 }
 0x2c6   : > { %3989 = vmatprep.mubr.f32.mxu0 %v1450_v56  ;;  %v1246_v61 = vadd.f32 %v5376_v32, %v1245_v59 }
 0x2c7   : > { %3990 = vmatmul.mubr.f32.gmra.mrb[26].mxu0 %v1451_v55  ;;  %v1453_v62 = vmax.f32 %v1251_v58, 0.0 }
 0x2c8   : > { %v1452_v63 = vmax.f32 %v1246_v61, 0.0  ;;  %v3869_v0 = vpop.f32.mrb[94].mxu1 }
 0x2c9   : > { %v1261_v1 = vadd.f32 %v3869_v0, %v5376_v32  ;;  %v1255_v2 = vpop.f32.mrb[95].mxu1 }
 0x2ca   : > { %3992 = vmatprep.mubr.f32.mxu0 %v1452_v63  ;;  %v1256_v3 = vadd.f32 %v5376_v32, %v1255_v2 }
 0x2cb   : > { %3993 = vmatmul.mubr.f32.gmra.mrb[28].mxu0 %v1453_v62  ;;  %v1455_v4 = vmax.f32 %v1261_v1, 0.0 }
 0x2cc   : > { %v1454_v5 = vmax.f32 %v1256_v3, 0.0  ;;  %v3872_v6 = vpop.f32.mrb[96].mxu1 }
 0x2cd   : > { %v1271_v7 = vadd.f32 %v3872_v6, %v5376_v32  ;;  %v1265_v8 = vpop.f32.mrb[97].mxu1 }
 0x2ce   : > { %3995 = vmatprep.mubr.f32.mxu0 %v1454_v5  ;;  %v1266_v9 = vadd.f32 %v5376_v32, %v1265_v8 }
 0x2cf   : > { %3996 = vmatmul.mubr.f32.gmra.mrb[30].mxu0 %v1455_v4  ;;  %v1457_v10 = vmax.f32 %v1271_v7, 0.0 }
 0x2d0   : > { %v1456_v11 = vmax.f32 %v1266_v9, 0.0  ;;  %v3875_v12 = vpop.f32.mrb[98].mxu1 }
 0x2d1   : > { %v1281_v13 = vadd.f32 %v3875_v12, %v5376_v32  ;;  %v1275_v14 = vpop.f32.mrb[99].mxu1 }
 0x2d2   : > { %3998 = vmatprep.mubr.f32.mxu0 %v1456_v11  ;;  %v1276_v15 = vadd.f32 %v5376_v32, %v1275_v14 }
 0x2d3   : > { %3999 = vmatmul.mubr.f32.gmra.mrb[32].mxu0 %v1457_v10  ;;  %v1459_v16 = vmax.f32 %v1281_v13, 0.0 }
 0x2d4   : > { %v1458_v17 = vmax.f32 %v1276_v15, 0.0  ;;  %v3878_v18 = vpop.f32.mrb[100].mxu1 }
 0x2d5   : > { %v1291_v19 = vadd.f32 %v3878_v18, %v5376_v32  ;;  %v1285_v20 = vpop.f32.mrb[101].mxu1 }
 0x2d6   : > { %4001 = vmatprep.mubr.f32.mxu0 %v1458_v17  ;;  %v1286_v60 = vadd.f32 %v5376_v32, %v1285_v20 }
 0x2d7   : > { %4002 = vmatmul.mubr.f32.gmra.mrb[34].mxu0 %v1459_v16  ;;  %v1461_v21 = vmax.f32 %v1291_v19, 0.0 }
 0x2d8   : > { %v1460_v22 = vmax.f32 %v1286_v60, 0.0  ;;  %v3881_v23 = vpop.f32.mrb[102].mxu1 }
 0x2d9   : > { %v1301_v24 = vadd.f32 %v3881_v23, %v5376_v32  ;;  %v1295_v25 = vpop.f32.mrb[103].mxu1 }
 0x2da   : > { %4004 = vmatprep.mubr.f32.mxu0 %v1460_v22  ;;  %v1296_v26 = vadd.f32 %v5376_v32, %v1295_v25 }
 0x2db   : > { %4005 = vmatmul.mubr.f32.gmra.mrb[36].mxu0 %v1461_v21  ;;  %v1463_v27 = vmax.f32 %v1301_v24, 0.0 }
 0x2dc   : > { %v1462_v28 = vmax.f32 %v1296_v26, 0.0  ;;  %v3884_v29 = vpop.f32.mrb[104].mxu1 }
 0x2dd   : > { %v1311_v30 = vadd.f32 %v3884_v29, %v5376_v32  ;;  %v1305_v31 = vpop.f32.mrb[105].mxu1 }
 0x2de   : > { %4007 = vmatprep.mubr.f32.mxu0 %v1462_v28  ;;  %v1306_v33 = vadd.f32 %v5376_v32, %v1305_v31 }
 0x2df   : > { %4008 = vmatmul.mubr.f32.gmra.mrb[38].mxu0 %v1463_v27  ;;  %v1465_v34 = vmax.f32 %v1311_v30, 0.0 }
 0x2e0   : > { %v1464_v35 = vmax.f32 %v1306_v33, 0.0  ;;  %v3887_v36 = vpop.f32.mrb[106].mxu1 }
 0x2e1   : > { %v1321_v37 = vadd.f32 %v3887_v36, %v5376_v32  ;;  %v1315_v38 = vpop.f32.mrb[107].mxu1 }
 0x2e2   : > { %4010 = vmatprep.mubr.f32.mxu0 %v1464_v35  ;;  %v1316_v39 = vadd.f32 %v5376_v32, %v1315_v38 }
 0x2e3   : > { %4011 = vmatmul.mubr.f32.gmra.mrb[40].mxu0 %v1465_v34  ;;  %v1467_v40 = vmax.f32 %v1321_v37, 0.0 }
 0x2e4   : > { %v1466_v41 = vmax.f32 %v1316_v39, 0.0  ;;  %v3890_v42 = vpop.f32.mrb[108].mxu1  ;;  %v4580_v39 = vld [vmem:[%s5222_s27] sm:$0xff] }
 0x2e5   : > { %v1331_v43 = vadd.f32 %v3890_v42, %v5376_v32  ;;  %v1325_v44 = vpop.f32.mrb[109].mxu1  ;;  %v2433_v42 = vld [vmem:[#allocation11 + $0x8] sm:$0xff] }
 0x2e6   : > { %4013 = vmatprep.mubr.f32.mxu0 %v1466_v41  ;;  %v1326_v45 = vadd.f32 %v5376_v32, %v1325_v44  ;;  %v2432_v41 = vld [vmem:[#allocation11] sm:$0xff]  ;;  %v2434_v44 = vld [vmem:[#allocation11 + $0x10] sm:$0xff] }
 0x2e7   : > { %4014 = vmatmul.mubr.f32.gmra.mrb[42].mxu0 %v1467_v40  ;;  %v1469_v46 = vmax.f32 %v1331_v43, 0.0  ;;  %v4903_v40 = vmov 0.0|0.0   ;;  %v4303_v43 = vpack.c.bf16 %v2433_v42, %v2432_v41 }
 0x2e8   : > { %v1468_v47 = vmax.f32 %v1326_v45, 0.0  ;;  %v3893_v48 = vpop.f32.mrb[110].mxu1  ;;  %4302 = vmatprep.subr.bf16.mxu0 %v4903_v40  ;;  %v2435_v45 = vld [vmem:[#allocation11 + $0x18] sm:$0xff] }
 0x2e9   : > { %v1341_v49 = vadd.f32 %v3893_v48, %v5376_v32  ;;  %v1335_v50 = vpop.f32.mrb[111].mxu1  ;;  %4304 = vmatpush1.bf16.msra.mxu0 %v4303_v43 }
 0x2ea   : > { %4016 = vmatprep.mubr.f32.mxu0 %v1468_v47  ;;  %v1336_v51 = vadd.f32 %v5376_v32, %v1335_v50  ;;  %4305 = vmatprep.subr.bf16.mxu0 %v4903_v40  ;;  %v2437_v47 = vld [vmem:[#allocation11 + $0x28] sm:$0xff]  ;;  %v2439_v50 = vld [vmem:[#allocation11 + $0x38] sm:$0xff] }
 0x2eb   : > { %v1471_v52 = vmax.f32 %v1341_v49, 0.0  ;;  %4017 = vmatmul.mubr.f32.gmra.mrb[44].mxu0 %v1469_v46  ;;  %v2436_v46 = vld [vmem:[#allocation11 + $0x20] sm:$0xff]  ;;  %v2438_v49 = vld [vmem:[#allocation11 + $0x30] sm:$0xff] }
 0x2ec   : > { %v1470_v53 = vmax.f32 %v1336_v51, 0.0  ;;  %v3896_v54 = vpop.f32.mrb[112].mxu1  ;;  %v4309_v48 = vpack.c.bf16 %v2437_v47, %v2436_v46  ;;  %v4312_v51 = vpack.c.bf16 %v2439_v50, %v2438_v49 }
 0x2ed   : > { %v1351_v55 = vadd.f32 %v3896_v54, %v5376_v32  ;;  %v1345_v56 = vpop.f32.mrb[113].mxu1 }
 0x2ee   : > { %v1346_v57 = vadd.f32 %v5376_v32, %v1345_v56  ;;  %4019 = vmatprep.mubr.f32.mxu0 %v1470_v53  ;;  %v2441_v53 = vld [vmem:[#allocation11 + $0x48] sm:$0xff]  ;;  %v2443_v56 = vld [vmem:[#allocation11 + $0x58] sm:$0xff] }
 0x2ef   : > { %v1473_v58 = vmax.f32 %v1351_v55, 0.0  ;;  %4020 = vmatmul.mubr.f32.gmra.mrb[46].mxu0 %v1471_v52  ;;  %v2440_v52 = vld [vmem:[#allocation11 + $0x40] sm:$0xff]  ;;  %v2442_v55 = vld [vmem:[#allocation11 + $0x50] sm:$0xff] }
 0x2f0   : > { %v1472_v59 = vmax.f32 %v1346_v57, 0.0  ;;  %v3899_v61 = vpop.f32.mrb[114].mxu1  ;;  %v4315_v54 = vpack.c.bf16 %v2441_v53, %v2440_v52  ;;  %v4318_v57 = vpack.c.bf16 %v2443_v56, %v2442_v55 }
 0x2f1   : > { %v1361_v62 = vadd.f32 %v3899_v61, %v5376_v32  ;;  %v1355_v63 = vpop.f32.mrb[115].mxu1 }
 0x2f2   : > { %v1356_v0 = vadd.f32 %v5376_v32, %v1355_v63  ;;  %4022 = vmatprep.mubr.f32.mxu0 %v1472_v59  ;;  %v2445_v59 = vld [vmem:[#allocation11 + $0x68] sm:$0xff]  ;;  %v2447_v63 = vld [vmem:[#allocation11 + $0x78] sm:$0xff] }
 0x2f3   : > { %v1475_v1 = vmax.f32 %v1361_v62, 0.0  ;;  %4023 = vmatmul.mubr.f32.gmra.mrb[48].mxu0 %v1473_v58  ;;  %v2444_v58 = vld [vmem:[#allocation11 + $0x60] sm:$0xff]  ;;  %v2446_v62 = vld [vmem:[#allocation11 + $0x70] sm:$0xff] }
 0x2f4   : > { %v1474_v2 = vmax.f32 %v1356_v0, 0.0  ;;  %v3902_v3 = vpop.f32.mrb[116].mxu1  ;;  %v4321_v61 = vpack.c.bf16 %v2445_v59, %v2444_v58  ;;  %v4324_v0 = vpack.c.bf16 %v2447_v63, %v2446_v62 }
 0x2f5   : > { %v1371_v4 = vadd.f32 %v3902_v3, %v5376_v32  ;;  %v1365_v5 = vpop.f32.mrb[117].mxu1 }
 0x2f6   : > { %v1366_v6 = vadd.f32 %v5376_v32, %v1365_v5  ;;  %4025 = vmatprep.mubr.f32.mxu0 %v1474_v2  ;;  %v2449_v2 = vld [vmem:[#allocation11 + $0x88] sm:$0xff]  ;;  %v2451_v5 = vld [vmem:[#allocation11 + $0x98] sm:$0xff] }
 0x2f7   : > { %v1477_v7 = vmax.f32 %v1371_v4, 0.0  ;;  %4026 = vmatmul.mubr.f32.gmra.mrb[50].mxu0 %v1475_v1  ;;  %v2448_v1 = vld [vmem:[#allocation11 + $0x80] sm:$0xff]  ;;  %v2450_v4 = vld [vmem:[#allocation11 + $0x90] sm:$0xff] }
 0x2f8   : > { %v1476_v8 = vmax.f32 %v1366_v6, 0.0  ;;  %v3905_v9 = vpop.f32.mrb[118].mxu1  ;;  %v4327_v3 = vpack.c.bf16 %v2449_v2, %v2448_v1  ;;  %v4330_v6 = vpack.c.bf16 %v2451_v5, %v2450_v4 }
 0x2f9   : > { %v1381_v10 = vadd.f32 %v3905_v9, %v5376_v32  ;;  %v1375_v11 = vpop.f32.mrb[119].mxu1 }
 0x2fa   : > { %v1376_v12 = vadd.f32 %v5376_v32, %v1375_v11  ;;  %4028 = vmatprep.mubr.f32.mxu0 %v1476_v8  ;;  %v2453_v8 = vld [vmem:[#allocation11 + $0xa8] sm:$0xff]  ;;  %v2455_v11 = vld [vmem:[#allocation11 + $0xb8] sm:$0xff] }
 0x2fb   : > { %v1479_v13 = vmax.f32 %v1381_v10, 0.0  ;;  %4029 = vmatmul.mubr.f32.gmra.mrb[52].mxu0 %v1477_v7  ;;  %v2452_v7 = vld [vmem:[#allocation11 + $0xa0] sm:$0xff]  ;;  %v2454_v10 = vld [vmem:[#allocation11 + $0xb0] sm:$0xff] }
 0x2fc   : > { %v1478_v14 = vmax.f32 %v1376_v12, 0.0  ;;  %v3908_v15 = vpop.f32.mrb[120].mxu1  ;;  %v4333_v9 = vpack.c.bf16 %v2453_v8, %v2452_v7  ;;  %v4336_v12 = vpack.c.bf16 %v2455_v11, %v2454_v10 }
 0x2fd   : > { %v1391_v16 = vadd.f32 %v3908_v15, %v5376_v32  ;;  %v1385_v17 = vpop.f32.mrb[121].mxu1 }
 0x2fe   : > { %v1386_v18 = vadd.f32 %v5376_v32, %v1385_v17  ;;  %4031 = vmatprep.mubr.f32.mxu0 %v1478_v14  ;;  %v2457_v14 = vld [vmem:[#allocation11 + $0xc8] sm:$0xff]  ;;  %v2459_v17 = vld [vmem:[#allocation11 + $0xd8] sm:$0xff] }
 0x2ff   : > { %v1481_v19 = vmax.f32 %v1391_v16, 0.0  ;;  %4032 = vmatmul.mubr.f32.gmra.mrb[54].mxu0 %v1479_v13  ;;  %v2456_v13 = vld [vmem:[#allocation11 + $0xc0] sm:$0xff]  ;;  %v2458_v16 = vld [vmem:[#allocation11 + $0xd0] sm:$0xff] }
 0x300   : > { %v1480_v20 = vmax.f32 %v1386_v18, 0.0  ;;  %v3911_v60 = vpop.f32.mrb[122].mxu1  ;;  %v4339_v15 = vpack.c.bf16 %v2457_v14, %v2456_v13  ;;  %v4342_v18 = vpack.c.bf16 %v2459_v17, %v2458_v16 }
 0x301   : > { %v1401_v21 = vadd.f32 %v3911_v60, %v5376_v32  ;;  %v1395_v22 = vpop.f32.mrb[123].mxu1  ;;  %v2460_v60 = vld [vmem:[#allocation11 + $0xe0] sm:$0xff] }
 0x302   : > { %v1396_v23 = vadd.f32 %v5376_v32, %v1395_v22  ;;  %4034 = vmatprep.mubr.f32.mxu0 %v1480_v20 }
 0x303   : > { %v1483_v24 = vmax.f32 %v1401_v21, 0.0  ;;  %4035 = vmatmul.mubr.f32.gmra.mrb[56].mxu0 %v1481_v19  ;;  %v5461_v19 = vld [vmem:[%s5994_s6] ss:$0 sm:$0xff]  ;;  %v2461_v21 = vld [vmem:[#allocation11 + $0xe8] sm:$0xff] }
 0x304   : > { %v1482_v25 = vmax.f32 %v1396_v23, 0.0  ;;  %v3914_v26 = vpop.f32.mrb[124].mxu1 }
 0x305   : > { %v1411_v27 = vadd.f32 %v3914_v26, %v5376_v32  ;;  %v1405_v28 = vpop.f32.mrb[125].mxu1  ;;  %v2462_v26 = vld [vmem:[#allocation11 + $0xf0] sm:$0xff] }
 0x306   : > { %v1406_v29 = vadd.f32 %v5376_v32, %v1405_v28  ;;  %4037 = vmatprep.mubr.f32.mxu0 %v1482_v25 }
 0x307   : > { %v1485_v30 = vmax.f32 %v1411_v27, 0.0  ;;  %4038 = vmatmul.mubr.f32.gmra.mrb[58].mxu0 %v1483_v24  ;;  %v4345_v24 = vpack.c.bf16 %v2461_v21, %v2460_v60  ;;  %v2463_v27 = vld [vmem:[#allocation11 + $0xf8] sm:$0xff] }
 0x308   : > { %v1484_v31 = vmax.f32 %v1406_v29, 0.0  ;;  %v3917_v33 = vpop.f32.mrb[126].mxu1 }
 0x309   : > { %v1421_v34 = vadd.f32 %v3917_v33, %v5376_v32  ;;  %v1415_v35 = vpop.f32.mrb[127].mxu1 }
 0x30a   : > { %v1416_v36 = vadd.f32 %v5376_v32, %v1415_v35  ;;  %4040 = vmatprep.mubr.f32.mxu0 %v1484_v31  ;;  %v4306_v32 = vpack.c.bf16 %v2435_v45, %v2434_v44 }
 0x30b   : > { %v1487_v37 = vmax.f32 %v1421_v34, 0.0  ;;  %4041 = vmatmul.mubr.f32.gmra.mrb[60].mxu0 %v1485_v30  ;;  %v4348_v30 = vpack.c.bf16 %v2463_v27, %v2462_v26 }
 0x30c   : > { %v1486_v38 = vmax.f32 %v1416_v36, 0.0  ;;  %4307 = vmatpush1.bf16.msra.mxu0 %v4306_v32 }
 0x30d   : > { %4308 = vmatprep.subr.bf16.mxu0 %v4903_v40 }
 0x30e   : > { %4043 = vmatprep.mubr.f32.mxu0 %v1486_v38 }
 0x30f   : > { %4044 = vmatmul.mubr.f32.gmra.mrb[62].mxu0 %v1487_v37 }
 0x310   : > { %2535 = vmatprep.mubr.f32.mxu0 %v4580_v39  ;;  %4310 = vmatpush1.bf16.msra.mxu0 %v4309_v48 }
 0x311   : > { %4311 = vmatprep.subr.bf16.mxu0 %v4903_v40 }
 0x314   : > { %4313 = vmatpush1.bf16.msra.mxu0 %v4312_v51 }
 0x315   : > { %4314 = vmatprep.subr.bf16.mxu0 %v4903_v40 }
 0x318   : > { %4316 = vmatpush1.bf16.msra.mxu0 %v4315_v54 }
 0x319   : > { %4317 = vmatprep.subr.bf16.mxu0 %v4903_v40 }
 0x31c   : > { %4319 = vmatpush1.bf16.msra.mxu0 %v4318_v57 }
 0x31d   : > { %4320 = vmatprep.subr.bf16.mxu0 %v4903_v40 }
 0x320   : > { %4322 = vmatpush1.bf16.msra.mxu0 %v4321_v61 }
 0x321   : > { %4323 = vmatprep.subr.bf16.mxu0 %v4903_v40 }
 0x324   : > { %4325 = vmatpush1.bf16.msra.mxu0 %v4324_v0 }
 0x325   : > { %4326 = vmatprep.subr.bf16.mxu0 %v4903_v40 }
 0x328   : > { %4328 = vmatpush1.bf16.msra.mxu0 %v4327_v3 }
 0x329   : > { %4329 = vmatprep.subr.bf16.mxu0 %v4903_v40 }
 0x32c   : > { %4331 = vmatpush1.bf16.msra.mxu0 %v4330_v6 }
 0x32d   : > { %4332 = vmatprep.subr.bf16.mxu0 %v4903_v40 }
 0x330   : > { %4334 = vmatpush1.bf16.msra.mxu0 %v4333_v9 }
 0x331   : > { %4335 = vmatprep.subr.bf16.mxu0 %v4903_v40 }
 0x334   : > { %4337 = vmatpush1.bf16.msra.mxu0 %v4336_v12 }
 0x335   : > { %4338 = vmatprep.subr.bf16.mxu0 %v4903_v40 }
 0x338   : > { %4340 = vmatpush1.bf16.msra.mxu0 %v4339_v15 }
 0x339   : > { %4341 = vmatprep.subr.bf16.mxu0 %v4903_v40 }
 0x33c   : > { %4343 = vmatpush1.bf16.msra.mxu0 %v4342_v18 }
 0x33d   : > { %4344 = vmatprep.subr.bf16.mxu0 %v4903_v40 }
 0x340   : > { %4346 = vmatpush1.bf16.msra.mxu0 %v4345_v24 }
 0x341   : > { %4347 = vmatprep.subr.bf16.mxu0 %v4903_v40 }
 0x344   : > { %4349 = vmatpush1.bf16.msra.mxu0 %v4348_v30 }
 0x366   : > { %v3952_v20 = vpop.f32.mrb[0].mxu0 }
 0x367   : > { %v1583_v22 = vadd.f32 %v3952_v20, %v5461_v19  ;;  %v1577_v23 = vpop.f32.mrb[1].mxu0 }
 0x368   : > { %v1578_v25 = vadd.f32 %v5461_v19, %v1577_v23 }
 0x369   : > { %v1897_v31 = vmax.f32 %v1583_v22, 0.0 }
 0x36a   : > { %v1896_v28 = vmax.f32 %v1578_v25, 0.0  ;;  %v3955_v29 = vpop.f32.mrb[2].mxu0 }
 0x36b   : > { %v1593_v33 = vadd.f32 %v3955_v29, %v5461_v19  ;;  %v1587_v34 = vpop.f32.mrb[3].mxu0 }
 0x36c   : > { %v1588_v35 = vadd.f32 %v5461_v19, %v1587_v34  ;;  %4078 = vmatprep.mubr.f32.mxu1 %v1896_v28 }
 0x36d   : > { %4079 = vmatmul.mubr.f32.vlgmr.msra.gmra.mrb[128].mxu1 %v1897_v31  ;;  %v1899_v38 = vmax.f32 %v1593_v33, 0.0 }
 0x36e   : > { %v1898_v36 = vmax.f32 %v1588_v35, 0.0  ;;  %v3958_v37 = vpop.f32.mrb[4].mxu0 }
 0x36f   : > { %v1603_v39 = vadd.f32 %v3958_v37, %v5461_v19  ;;  %v1597_v41 = vpop.f32.mrb[5].mxu0 }
 0x370   : > { %v1598_v42 = vadd.f32 %v5461_v19, %v1597_v41  ;;  %4081 = vmatprep.mubr.f32.mxu1 %v1898_v36 }
 0x371   : > { %v1901_v40 = vmax.f32 %v1603_v39, 0.0  ;;  %4082 = vmatmul.mubr.f32.gmra.mrb[130].mxu1 %v1899_v38 }
 0x372   : > { %v1900_v43 = vmax.f32 %v1598_v42, 0.0  ;;  %v3961_v44 = vpop.f32.mrb[6].mxu0 }
 0x373   : > { %v1613_v45 = vadd.f32 %v3961_v44, %v5461_v19  ;;  %v1607_v32 = vpop.f32.mrb[7].mxu0 }
 0x374   : > { %4084 = vmatprep.mubr.f32.mxu1 %v1900_v43  ;;  %v1608_v46 = vadd.f32 %v5461_v19, %v1607_v32 }
 0x375   : > { %4085 = vmatmul.mubr.f32.gmra.mrb[132].mxu1 %v1901_v40  ;;  %v1903_v47 = vmax.f32 %v1613_v45, 0.0 }
 0x376   : > { %v1902_v48 = vmax.f32 %v1608_v46, 0.0  ;;  %v3964_v49 = vpop.f32.mrb[8].mxu0 }
 0x377   : > { %v1623_v50 = vadd.f32 %v3964_v49, %v5461_v19  ;;  %v1617_v51 = vpop.f32.mrb[9].mxu0 }
 0x378   : > { %4087 = vmatprep.mubr.f32.mxu1 %v1902_v48  ;;  %v1618_v52 = vadd.f32 %v5461_v19, %v1617_v51 }
 0x379   : > { %4088 = vmatmul.mubr.f32.gmra.mrb[134].mxu1 %v1903_v47  ;;  %v1905_v53 = vmax.f32 %v1623_v50, 0.0 }
 0x37a   : > { %v1904_v54 = vmax.f32 %v1618_v52, 0.0  ;;  %v3967_v55 = vpop.f32.mrb[10].mxu0 }
 0x37b   : > { %v1633_v56 = vadd.f32 %v3967_v55, %v5461_v19  ;;  %v1627_v57 = vpop.f32.mrb[11].mxu0 }
 0x37c   : > { %4090 = vmatprep.mubr.f32.mxu1 %v1904_v54  ;;  %v1628_v58 = vadd.f32 %v5461_v19, %v1627_v57 }
 0x37d   : > { %4091 = vmatmul.mubr.f32.gmra.mrb[136].mxu1 %v1905_v53  ;;  %v1907_v59 = vmax.f32 %v1633_v56, 0.0 }
 0x37e   : > { %v1906_v61 = vmax.f32 %v1628_v58, 0.0  ;;  %v3970_v62 = vpop.f32.mrb[12].mxu0 }
 0x37f   : > { %v1643_v63 = vadd.f32 %v3970_v62, %v5461_v19  ;;  %v1637_v0 = vpop.f32.mrb[13].mxu0 }
 0x380   : > { %4093 = vmatprep.mubr.f32.mxu1 %v1906_v61  ;;  %v1638_v1 = vadd.f32 %v5461_v19, %v1637_v0 }
 0x381   : > { %4094 = vmatmul.mubr.f32.gmra.mrb[138].mxu1 %v1907_v59  ;;  %v1909_v2 = vmax.f32 %v1643_v63, 0.0 }
 0x382   : > { %v1908_v3 = vmax.f32 %v1638_v1, 0.0  ;;  %v3973_v4 = vpop.f32.mrb[14].mxu0 }
 0x383   : > { %v1653_v5 = vadd.f32 %v3973_v4, %v5461_v19  ;;  %v1647_v6 = vpop.f32.mrb[15].mxu0 }
 0x384   : > { %4096 = vmatprep.mubr.f32.mxu1 %v1908_v3  ;;  %v1648_v7 = vadd.f32 %v5461_v19, %v1647_v6 }
 0x385   : > { %4097 = vmatmul.mubr.f32.gmra.mrb[140].mxu1 %v1909_v2  ;;  %v1911_v8 = vmax.f32 %v1653_v5, 0.0 }
 0x386   : > { %v1910_v9 = vmax.f32 %v1648_v7, 0.0  ;;  %v3976_v10 = vpop.f32.mrb[16].mxu0 }
 0x387   : > { %v1663_v11 = vadd.f32 %v3976_v10, %v5461_v19  ;;  %v1657_v12 = vpop.f32.mrb[17].mxu0 }
 0x388   : > { %4099 = vmatprep.mubr.f32.mxu1 %v1910_v9  ;;  %v1658_v13 = vadd.f32 %v5461_v19, %v1657_v12 }
 0x389   : > { %4100 = vmatmul.mubr.f32.gmra.mrb[142].mxu1 %v1911_v8  ;;  %v1913_v14 = vmax.f32 %v1663_v11, 0.0 }
 0x38a   : > { %v1912_v15 = vmax.f32 %v1658_v13, 0.0  ;;  %v3979_v16 = vpop.f32.mrb[18].mxu0 }
 0x38b   : > { %v1673_v17 = vadd.f32 %v3979_v16, %v5461_v19  ;;  %v1667_v18 = vpop.f32.mrb[19].mxu0 }
 0x38c   : > { %4102 = vmatprep.mubr.f32.mxu1 %v1912_v15  ;;  %v1668_v20 = vadd.f32 %v5461_v19, %v1667_v18 }
 0x38d   : > { %4103 = vmatmul.mubr.f32.gmra.mrb[144].mxu1 %v1913_v14  ;;  %v1915_v60 = vmax.f32 %v1673_v17, 0.0 }
 0x38e   : > { %v1914_v21 = vmax.f32 %v1668_v20, 0.0  ;;  %v3982_v22 = vpop.f32.mrb[20].mxu0 }
 0x38f   : > { %v1683_v23 = vadd.f32 %v3982_v22, %v5461_v19  ;;  %v1677_v24 = vpop.f32.mrb[21].mxu0 }
 0x390   : > { %4105 = vmatprep.mubr.f32.mxu1 %v1914_v21  ;;  %v1678_v25 = vadd.f32 %v5461_v19, %v1677_v24 }
 0x391   : > { %4106 = vmatmul.mubr.f32.gmra.mrb[146].mxu1 %v1915_v60  ;;  %v1917_v26 = vmax.f32 %v1683_v23, 0.0 }
 0x392   : > { %v1916_v27 = vmax.f32 %v1678_v25, 0.0  ;;  %v3985_v28 = vpop.f32.mrb[22].mxu0 }
 0x393   : > { %v1693_v29 = vadd.f32 %v3985_v28, %v5461_v19  ;;  %v1687_v30 = vpop.f32.mrb[23].mxu0 }
 0x394   : > { %4108 = vmatprep.mubr.f32.mxu1 %v1916_v27  ;;  %v1688_v31 = vadd.f32 %v5461_v19, %v1687_v30 }
 0x395   : > { %4109 = vmatmul.mubr.f32.gmra.mrb[148].mxu1 %v1917_v26  ;;  %v1919_v33 = vmax.f32 %v1693_v29, 0.0 }
 0x396   : > { %v1918_v34 = vmax.f32 %v1688_v31, 0.0  ;;  %v3988_v35 = vpop.f32.mrb[24].mxu0 }
 0x397   : > { %v1703_v36 = vadd.f32 %v3988_v35, %v5461_v19  ;;  %v1697_v37 = vpop.f32.mrb[25].mxu0 }
 0x398   : > { %4111 = vmatprep.mubr.f32.mxu1 %v1918_v34  ;;  %v1698_v38 = vadd.f32 %v5461_v19, %v1697_v37 }
 0x399   : > { %4112 = vmatmul.mubr.f32.gmra.mrb[150].mxu1 %v1919_v33  ;;  %v1921_v39 = vmax.f32 %v1703_v36, 0.0 }
 0x39a   : > { %v1920_v41 = vmax.f32 %v1698_v38, 0.0  ;;  %v3991_v42 = vpop.f32.mrb[26].mxu0 }
 0x39b   : > { %v1713_v40 = vadd.f32 %v3991_v42, %v5461_v19  ;;  %v1707_v43 = vpop.f32.mrb[27].mxu0 }
 0x39c   : > { %4114 = vmatprep.mubr.f32.mxu1 %v1920_v41  ;;  %v1708_v44 = vadd.f32 %v5461_v19, %v1707_v43 }
 0x39d   : > { %4115 = vmatmul.mubr.f32.gmra.mrb[152].mxu1 %v1921_v39  ;;  %v1923_v45 = vmax.f32 %v1713_v40, 0.0 }
 0x39e   : > { %v1922_v32 = vmax.f32 %v1708_v44, 0.0  ;;  %v3994_v46 = vpop.f32.mrb[28].mxu0 }
 0x39f   : > { %v1723_v47 = vadd.f32 %v3994_v46, %v5461_v19  ;;  %v1717_v48 = vpop.f32.mrb[29].mxu0 }
 0x3a0   : > { %4117 = vmatprep.mubr.f32.mxu1 %v1922_v32  ;;  %v1718_v49 = vadd.f32 %v5461_v19, %v1717_v48 }
 0x3a1   : > { %4118 = vmatmul.mubr.f32.gmra.mrb[154].mxu1 %v1923_v45  ;;  %v1925_v50 = vmax.f32 %v1723_v47, 0.0 }
 0x3a2   : > { %v1924_v51 = vmax.f32 %v1718_v49, 0.0  ;;  %v3997_v52 = vpop.f32.mrb[30].mxu0 }
 0x3a3   : > { %v1733_v53 = vadd.f32 %v3997_v52, %v5461_v19  ;;  %v1727_v54 = vpop.f32.mrb[31].mxu0 }
 0x3a4   : > { %4120 = vmatprep.mubr.f32.mxu1 %v1924_v51  ;;  %v1728_v55 = vadd.f32 %v5461_v19, %v1727_v54 }
 0x3a5   : > { %4121 = vmatmul.mubr.f32.gmra.mrb[156].mxu1 %v1925_v50  ;;  %v1927_v56 = vmax.f32 %v1733_v53, 0.0 }
 0x3a6   : > { %v1926_v57 = vmax.f32 %v1728_v55, 0.0  ;;  %v4000_v58 = vpop.f32.mrb[32].mxu0 }
 0x3a7   : > { %v1743_v59 = vadd.f32 %v4000_v58, %v5461_v19  ;;  %v1737_v61 = vpop.f32.mrb[33].mxu0 }
 0x3a8   : > { %4123 = vmatprep.mubr.f32.mxu1 %v1926_v57  ;;  %v1738_v62 = vadd.f32 %v5461_v19, %v1737_v61 }
 0x3a9   : > { %4124 = vmatmul.mubr.f32.gmra.mrb[158].mxu1 %v1927_v56  ;;  %v1929_v63 = vmax.f32 %v1743_v59, 0.0 }
 0x3aa   : > { %v1928_v0 = vmax.f32 %v1738_v62, 0.0  ;;  %v4003_v1 = vpop.f32.mrb[34].mxu0 }
 0x3ab   : > { %v1753_v2 = vadd.f32 %v4003_v1, %v5461_v19  ;;  %v1747_v3 = vpop.f32.mrb[35].mxu0 }
 0x3ac   : > { %4126 = vmatprep.mubr.f32.mxu1 %v1928_v0  ;;  %v1748_v4 = vadd.f32 %v5461_v19, %v1747_v3 }
 0x3ad   : > { %4127 = vmatmul.mubr.f32.gmra.mrb[160].mxu1 %v1929_v63  ;;  %v1931_v5 = vmax.f32 %v1753_v2, 0.0 }
 0x3ae   : > { %v1930_v6 = vmax.f32 %v1748_v4, 0.0  ;;  %v4006_v7 = vpop.f32.mrb[36].mxu0 }
 0x3af   : > { %v1763_v8 = vadd.f32 %v4006_v7, %v5461_v19  ;;  %v1757_v9 = vpop.f32.mrb[37].mxu0 }
 0x3b0   : > { %4129 = vmatprep.mubr.f32.mxu1 %v1930_v6  ;;  %v1758_v10 = vadd.f32 %v5461_v19, %v1757_v9 }
 0x3b1   : > { %4130 = vmatmul.mubr.f32.gmra.mrb[162].mxu1 %v1931_v5  ;;  %v1933_v11 = vmax.f32 %v1763_v8, 0.0 }
 0x3b2   : > { %v1932_v12 = vmax.f32 %v1758_v10, 0.0  ;;  %v4009_v13 = vpop.f32.mrb[38].mxu0 }
 0x3b3   : > { %v1773_v14 = vadd.f32 %v4009_v13, %v5461_v19  ;;  %v1767_v15 = vpop.f32.mrb[39].mxu0 }
 0x3b4   : > { %4132 = vmatprep.mubr.f32.mxu1 %v1932_v12  ;;  %v1768_v16 = vadd.f32 %v5461_v19, %v1767_v15 }
 0x3b5   : > { %4133 = vmatmul.mubr.f32.gmra.mrb[164].mxu1 %v1933_v11  ;;  %v1935_v17 = vmax.f32 %v1773_v14, 0.0 }
 0x3b6   : > { %v1934_v18 = vmax.f32 %v1768_v16, 0.0  ;;  %v4012_v20 = vpop.f32.mrb[40].mxu0 }
 0x3b7   : > { %v1783_v60 = vadd.f32 %v4012_v20, %v5461_v19  ;;  %v1777_v21 = vpop.f32.mrb[41].mxu0 }
 0x3b8   : > { %4135 = vmatprep.mubr.f32.mxu1 %v1934_v18  ;;  %v1778_v22 = vadd.f32 %v5461_v19, %v1777_v21 }
 0x3b9   : > { %4136 = vmatmul.mubr.f32.gmra.mrb[166].mxu1 %v1935_v17  ;;  %v1937_v23 = vmax.f32 %v1783_v60, 0.0 }
 0x3ba   : > { %v1936_v24 = vmax.f32 %v1778_v22, 0.0  ;;  %v4015_v25 = vpop.f32.mrb[42].mxu0 }
 0x3bb   : > { %v1793_v26 = vadd.f32 %v4015_v25, %v5461_v19  ;;  %v1787_v27 = vpop.f32.mrb[43].mxu0 }
 0x3bc   : > { %4138 = vmatprep.mubr.f32.mxu1 %v1936_v24  ;;  %v1788_v28 = vadd.f32 %v5461_v19, %v1787_v27 }
 0x3bd   : > { %4139 = vmatmul.mubr.f32.gmra.mrb[168].mxu1 %v1937_v23  ;;  %v1939_v29 = vmax.f32 %v1793_v26, 0.0 }
 0x3be   : > { %v1938_v30 = vmax.f32 %v1788_v28, 0.0  ;;  %v4018_v31 = vpop.f32.mrb[44].mxu0  ;;  %v5531_v28 = vld [vmem:[%s6027_s22] ss:$0 sm:$0xff]  ;;  %s3177_s22 = scalar_lea.sflag [#allocation4], %s5216_s26 }
 0x3bf   : > { %v1803_v33 = vadd.f32 %v4018_v31, %v5461_v19  ;;  %v1797_v34 = vpop.f32.mrb[45].mxu0 }
 0x3c0   : > { %4141 = vmatprep.mubr.f32.mxu1 %v1938_v30  ;;  %v1798_v35 = vadd.f32 %v5461_v19, %v1797_v34 }
 0x3c1   : > { %4142 = vmatmul.mubr.f32.gmra.mrb[170].mxu1 %v1939_v29  ;;  %v1941_v36 = vmax.f32 %v1803_v33, 0.0 }
 0x3c2   : > { %v1940_v37 = vmax.f32 %v1798_v35, 0.0  ;;  %v4021_v38 = vpop.f32.mrb[46].mxu0 }
 0x3c3   : > { %v1813_v39 = vadd.f32 %v4021_v38, %v5461_v19  ;;  %v1807_v41 = vpop.f32.mrb[47].mxu0 }
 0x3c4   : > { %4144 = vmatprep.mubr.f32.mxu1 %v1940_v37  ;;  %v1808_v42 = vadd.f32 %v5461_v19, %v1807_v41 }
 0x3c5   : > { %v1943_v40 = vmax.f32 %v1813_v39, 0.0  ;;  %4145 = vmatmul.mubr.f32.gmra.mrb[172].mxu1 %v1941_v36  ;;  %v4581_v36 = vld [vmem:[%s5222_s27 + $0x8] sm:$0xff] }
 0x3c6   : > { %v1942_v43 = vmax.f32 %v1808_v42, 0.0  ;;  %v4024_v44 = vpop.f32.mrb[48].mxu0  ;;  %v4582_v42 = vld [vmem:[%s5222_s27 + $0x10] sm:$0xff] }
 0x3c7   : > { %v1823_v45 = vadd.f32 %v4024_v44, %v5461_v19  ;;  %v1817_v32 = vpop.f32.mrb[49].mxu0 }
 0x3c8   : > { %v1818_v46 = vadd.f32 %v5461_v19, %v1817_v32  ;;  %4147 = vmatprep.mubr.f32.mxu1 %v1942_v43  ;;  %v4583_v32 = vld [vmem:[%s5222_s27 + $0x18] sm:$0xff] }
 0x3c9   : > { %v1945_v47 = vmax.f32 %v1823_v45, 0.0  ;;  %4148 = vmatmul.mubr.f32.gmra.mrb[174].mxu1 %v1943_v40 }
 0x3ca   : > { %v1944_v48 = vmax.f32 %v1818_v46, 0.0  ;;  %v4027_v49 = vpop.f32.mrb[50].mxu0 }
 0x3cb   : > { %v1833_v50 = vadd.f32 %v4027_v49, %v5461_v19  ;;  %v1827_v51 = vpop.f32.mrb[51].mxu0 }
 0x3cc   : > { %v1828_v52 = vadd.f32 %v5461_v19, %v1827_v51  ;;  %4150 = vmatprep.mubr.f32.mxu1 %v1944_v48 }
 0x3cd   : > { %v1947_v53 = vmax.f32 %v1833_v50, 0.0  ;;  %4151 = vmatmul.mubr.f32.gmra.mrb[176].mxu1 %v1945_v47  ;;  %v4584_v50 = vld [vmem:[%s5222_s27 + $0x20] sm:$0xff] }
 0x3ce   : > { %v1946_v54 = vmax.f32 %v1828_v52, 0.0  ;;  %v4030_v55 = vpop.f32.mrb[52].mxu0 }
 0x3cf   : > { %v1843_v56 = vadd.f32 %v4030_v55, %v5461_v19  ;;  %v1837_v57 = vpop.f32.mrb[53].mxu0  ;;  %v4585_v55 = vld [vmem:[%s5222_s27 + $0x28] sm:$0xff] }
 0x3d0   : > { %v1838_v58 = vadd.f32 %v5461_v19, %v1837_v57  ;;  %4153 = vmatprep.mubr.f32.mxu1 %v1946_v54 }
 0x3d1   : > { %v1949_v59 = vmax.f32 %v1843_v56, 0.0  ;;  %4154 = vmatmul.mubr.f32.gmra.mrb[178].mxu1 %v1947_v53 }
 0x3d2   : > { %v1948_v61 = vmax.f32 %v1838_v58, 0.0  ;;  %v4033_v62 = vpop.f32.mrb[54].mxu0 }
 0x3d3   : > { %v1853_v63 = vadd.f32 %v4033_v62, %v5461_v19  ;;  %v1847_v0 = vpop.f32.mrb[55].mxu0 }
 0x3d4   : > { %v1848_v1 = vadd.f32 %v5461_v19, %v1847_v0  ;;  %4156 = vmatprep.mubr.f32.mxu1 %v1948_v61  ;;  %v4586_v61 = vld [vmem:[%s5222_s27 + $0x30] sm:$0xff] }
 0x3d5   : > { %v1951_v2 = vmax.f32 %v1853_v63, 0.0  ;;  %4157 = vmatmul.mubr.f32.gmra.mrb[180].mxu1 %v1949_v59 }
 0x3d6   : > { %v1950_v3 = vmax.f32 %v1848_v1, 0.0  ;;  %v4036_v4 = vpop.f32.mrb[56].mxu0 }
 0x3d7   : > { %v1863_v5 = vadd.f32 %v4036_v4, %v5461_v19  ;;  %v1857_v6 = vpop.f32.mrb[57].mxu0 }
 0x3d8   : > { %v1858_v7 = vadd.f32 %v5461_v19, %v1857_v6  ;;  %4159 = vmatprep.mubr.f32.mxu1 %v1950_v3 }
 0x3d9   : > { %v1953_v8 = vmax.f32 %v1863_v5, 0.0  ;;  %4160 = vmatmul.mubr.f32.gmra.mrb[182].mxu1 %v1951_v2  ;;  %v4587_v2 = vld [vmem:[%s5222_s27 + $0x38] sm:$0xff] }
 0x3da   : > { %v1952_v9 = vmax.f32 %v1858_v7, 0.0  ;;  %v4039_v10 = vpop.f32.mrb[58].mxu0  ;;  %v4588_v7 = vld [vmem:[%s5222_s27 + $0x40] sm:$0xff] }
 0x3db   : > { %v1873_v11 = vadd.f32 %v4039_v10, %v5461_v19  ;;  %v1867_v12 = vpop.f32.mrb[59].mxu0 }
 0x3dc   : > { %v1868_v13 = vadd.f32 %v5461_v19, %v1867_v12  ;;  %4162 = vmatprep.mubr.f32.mxu1 %v1952_v9  ;;  %v4589_v12 = vld [vmem:[%s5222_s27 + $0x48] sm:$0xff] }
 0x3dd   : > { %v1955_v14 = vmax.f32 %v1873_v11, 0.0  ;;  %4163 = vmatmul.mubr.f32.gmra.mrb[184].mxu1 %v1953_v8 }
 0x3de   : > { %v1954_v15 = vmax.f32 %v1868_v13, 0.0  ;;  %v4042_v16 = vpop.f32.mrb[60].mxu0 }
 0x3df   : > { %v1883_v17 = vadd.f32 %v4042_v16, %v5461_v19  ;;  %v1877_v18 = vpop.f32.mrb[61].mxu0 }
 0x3e0   : > { %v1878_v20 = vadd.f32 %v5461_v19, %v1877_v18  ;;  %4165 = vmatprep.mubr.f32.mxu1 %v1954_v15 }
 0x3e1   : > { %v1957_v60 = vmax.f32 %v1883_v17, 0.0  ;;  %4166 = vmatmul.mubr.f32.gmra.mrb[186].mxu1 %v1955_v14  ;;  %v4590_v17 = vld [vmem:[%s5222_s27 + $0x50] sm:$0xff] }
 0x3e2   : > { %v1956_v21 = vmax.f32 %v1878_v20, 0.0  ;;  %v4045_v22 = vpop.f32.mrb[62].mxu0 }
 0x3e3   : > { %v1893_v23 = vadd.f32 %v4045_v22, %v5461_v19  ;;  %v1887_v24 = vpop.f32.mrb[63].mxu0  ;;  %v4591_v22 = vld [vmem:[%s5222_s27 + $0x58] sm:$0xff] }
 0x3e4   : > { %v1888_v25 = vadd.f32 %v5461_v19, %v1887_v24  ;;  %4168 = vmatprep.mubr.f32.mxu1 %v1956_v21 }
 0x3e5   : > { %v1959_v26 = vmax.f32 %v1893_v23, 0.0  ;;  %4169 = vmatmul.mubr.f32.gmra.mrb[188].mxu1 %v1957_v60 }
 0x3e6   : > { %v1958_v27 = vmax.f32 %v1888_v25, 0.0 }
 0x3e8   : > { %4171 = vmatprep.mubr.f32.mxu1 %v1958_v27  ;;  %v4592_v27 = vld [vmem:[%s5222_s27 + $0x60] sm:$0xff] }
 0x3e9   : > { %4172 = vmatmul.mubr.f32.gmra.mrb[190].mxu1 %v1959_v26 }
 0x440   : > { %v4080_v29 = vpop.f32.mrb[128].mxu1 }
 0x441   : > { %v2049_v30 = vpop.f32.mrb[129].mxu1  ;;  %v2055_v33 = vadd.f32 %v4080_v29, %v5531_v28 }
 0x442   : > { %v2050_v31 = vadd.f32 %v5531_v28, %v2049_v30 }
 0x443   : > { %v2369_v37 = vmax.f32 %v2055_v33, 0.0 }
 0x444   : > { %v2368_v19 = vmax.f32 %v2050_v31, 0.0  ;;  %v4083_v34 = vpop.f32.mrb[130].mxu1 }
 0x445   : > { %v2059_v35 = vpop.f32.mrb[131].mxu1  ;;  %v2065_v40 = vadd.f32 %v4083_v34, %v5531_v28 }
 0x446   : > { %2536 = vmatmul.mubr.f32.vlgmr.msra.gmra.mrb[64].mxu0 %v2368_v19  ;;  %v2060_v38 = vadd.f32 %v5531_v28, %v2059_v35  ;;  %v4593_v19 = vld [vmem:[%s5222_s27 + $0x68] sm:$0xff] }
 0x447   : > { %2540 = vmatprep.mubr.f32.mxu0 %v4581_v36  ;;  %v2371_v46 = vmax.f32 %v2065_v40, 0.0 }
 0x448   : > { %v4086_v39 = vpop.f32.mrb[132].mxu1  ;;  %v2370_v43 = vmax.f32 %v2060_v38, 0.0  ;;  %v4594_v38 = vld [vmem:[%s5222_s27 + $0x70] sm:$0xff] }
 0x449   : > { %v2069_v41 = vpop.f32.mrb[133].mxu1  ;;  %v2075_v51 = vadd.f32 %v4086_v39, %v5531_v28 }
 0x44a   : > { %2541 = vmatmul.mubr.f32.gmra.mrb[66].mxu0 %v2369_v37  ;;  %v2070_v47 = vadd.f32 %v5531_v28, %v2069_v41 }
 0x44b   : > { %2545 = vmatprep.mubr.f32.mxu0 %v4582_v42  ;;  %v2373_v56 = vmax.f32 %v2075_v51, 0.0 }
 0x44c   : > { %v4089_v44 = vpop.f32.mrb[134].mxu1  ;;  %v2372_v52 = vmax.f32 %v2070_v47, 0.0  ;;  %v4596_v47 = vld [vmem:[%s5222_s27 + $0x80] sm:$0xff] }
 0x44d   : > { %v2079_v45 = vpop.f32.mrb[135].mxu1  ;;  %v2085_v62 = vadd.f32 %v4089_v44, %v5531_v28 }
 0x44e   : > { %2546 = vmatmul.mubr.f32.gmra.mrb[68].mxu0 %v2370_v43  ;;  %v2080_v57 = vadd.f32 %v5531_v28, %v2079_v45  ;;  %v4595_v43 = vld [vmem:[%s5222_s27 + $0x78] sm:$0xff] }
 0x44f   : > { %2550 = vmatprep.mubr.f32.mxu0 %v4583_v32  ;;  %v2375_v3 = vmax.f32 %v2085_v62, 0.0 }
 0x450   : > { %v4092_v48 = vpop.f32.mrb[136].mxu1  ;;  %v2374_v63 = vmax.f32 %v2080_v57, 0.0  ;;  %v4598_v57 = vld [vmem:[%s5222_s27 + $0x90] sm:$0xff] }
 0x451   : > { %v2089_v49 = vpop.f32.mrb[137].mxu1  ;;  %v2095_v8 = vadd.f32 %v4092_v48, %v5531_v28 }
 0x452   : > { %2551 = vmatmul.mubr.f32.gmra.mrb[70].mxu0 %v2371_v46  ;;  %v2090_v4 = vadd.f32 %v5531_v28, %v2089_v49 }
 0x453   : > { %2555 = vmatprep.mubr.f32.mxu0 %v4584_v50  ;;  %v2377_v13 = vmax.f32 %v2095_v8, 0.0 }
 0x454   : > { %v4095_v53 = vpop.f32.mrb[138].mxu1  ;;  %v2376_v9 = vmax.f32 %v2090_v4, 0.0  ;;  %v4600_v4 = vld [vmem:[%s5222_s27 + $0xa0] sm:$0xff] }
 0x455   : > { %v2099_v54 = vpop.f32.mrb[139].mxu1  ;;  %v2105_v18 = vadd.f32 %v4095_v53, %v5531_v28 }
 0x456   : > { %2556 = vmatmul.mubr.f32.gmra.mrb[72].mxu0 %v2372_v52  ;;  %v2100_v14 = vadd.f32 %v5531_v28, %v2099_v54  ;;  %v4597_v52 = vld [vmem:[%s5222_s27 + $0x88] sm:$0xff] }
 0x457   : > { %2560 = vmatprep.mubr.f32.mxu0 %v4585_v55  ;;  %v2379_v23 = vmax.f32 %v2105_v18, 0.0 }
 0x458   : > { %v4098_v58 = vpop.f32.mrb[140].mxu1  ;;  %v2378_v20 = vmax.f32 %v2100_v14, 0.0  ;;  %v4602_v14 = vld [vmem:[%s5222_s27 + $0xb0] sm:$0xff] }
 0x459   : > { %v2109_v59 = vpop.f32.mrb[141].mxu1  ;;  %v2115_v29 = vadd.f32 %v4098_v58, %v5531_v28 }
 0x45a   : > { %2561 = vmatmul.mubr.f32.gmra.mrb[74].mxu0 %v2373_v56  ;;  %v2110_v24 = vadd.f32 %v5531_v28, %v2109_v59 }
 0x45b   : > { %2565 = vmatprep.mubr.f32.mxu0 %v4586_v61  ;;  %v2381_v34 = vmax.f32 %v2115_v29, 0.0 }
 0x45c   : > { %v4101_v0 = vpop.f32.mrb[142].mxu1  ;;  %v2380_v30 = vmax.f32 %v2110_v24, 0.0 }
 0x45d   : > { %v2119_v1 = vpop.f32.mrb[143].mxu1  ;;  %v2125_v39 = vadd.f32 %v4101_v0, %v5531_v28 }
 0x45e   : > { %2566 = vmatmul.mubr.f32.gmra.mrb[76].mxu0 %v2374_v63  ;;  %v2120_v35 = vadd.f32 %v5531_v28, %v2119_v1  ;;  %v4599_v63 = vld [vmem:[%s5222_s27 + $0x98] sm:$0xff] }
 0x45f   : > { %2570 = vmatprep.mubr.f32.mxu0 %v4587_v2  ;;  %v2383_v44 = vmax.f32 %v2125_v39, 0.0 }
 0x460   : > { %v4104_v5 = vpop.f32.mrb[144].mxu1  ;;  %v2382_v41 = vmax.f32 %v2120_v35, 0.0 }
 0x461   : > { %v2129_v6 = vpop.f32.mrb[145].mxu1  ;;  %v2135_v48 = vadd.f32 %v4104_v5, %v5531_v28 }
 0x462   : > { %2571 = vmatmul.mubr.f32.gmra.mrb[78].mxu0 %v2375_v3  ;;  %v2130_v45 = vadd.f32 %v5531_v28, %v2129_v6 }
 0x463   : > { %2575 = vmatprep.mubr.f32.mxu0 %v4588_v7  ;;  %v2385_v53 = vmax.f32 %v2135_v48, 0.0 }
 0x464   : > { %v5551_v10 = vpop.f32.mrb[146].mxu1  ;;  %v2384_v49 = vmax.f32 %v2130_v45, 0.0 }
 0x465   : > { %v2139_v11 = vpop.f32.mrb[147].mxu1  ;;  %v2145_v58 = vadd.f32 %v5551_v10, %v5531_v28 }
 0x466   : > { %2576 = vmatmul.mubr.f32.gmra.mrb[80].mxu0 %v2376_v9  ;;  %v2140_v54 = vadd.f32 %v5531_v28, %v2139_v11  ;;  %v4601_v9 = vld [vmem:[%s5222_s27 + $0xa8] sm:$0xff] }
 0x467   : > { %2580 = vmatprep.mubr.f32.mxu0 %v4589_v12  ;;  %v2387_v0 = vmax.f32 %v2145_v58, 0.0 }
 0x468   : > { %v5555_v15 = vpop.f32.mrb[148].mxu1  ;;  %v2386_v59 = vmax.f32 %v2140_v54, 0.0 }
 0x469   : > { %v5557_v16 = vpop.f32.mrb[149].mxu1  ;;  %v2155_v5 = vadd.f32 %v5555_v15, %v5531_v28 }
 0x46a   : > { %2581 = vmatmul.mubr.f32.gmra.mrb[82].mxu0 %v2377_v13  ;;  %v2150_v1 = vadd.f32 %v5531_v28, %v5557_v16 }
 0x46b   : > { %2585 = vmatprep.mubr.f32.mxu0 %v4590_v17  ;;  %v2389_v10 = vmax.f32 %v2155_v5, 0.0 }
 0x46c   : > { %v5561_v60 = vpop.f32.mrb[150].mxu1  ;;  %v2388_v6 = vmax.f32 %v2150_v1, 0.0 }
 0x46d   : > { %v5563_v21 = vpop.f32.mrb[151].mxu1  ;;  %v2165_v15 = vadd.f32 %v5561_v60, %v5531_v28  ;;  %v4604_v60 = vld [vmem:[%s5222_s27 + $0xc0] sm:$0xff] }
 0x46e   : > { %2586 = vmatmul.mubr.f32.gmra.mrb[84].mxu0 %v2378_v20  ;;  %v2160_v11 = vadd.f32 %v5531_v28, %v5563_v21  ;;  %v4603_v20 = vld [vmem:[%s5222_s27 + $0xb8] sm:$0xff] }
 0x46f   : > { %2590 = vmatprep.mubr.f32.mxu0 %v4591_v22  ;;  %v2391_v21 = vmax.f32 %v2165_v15, 0.0 }
 0x470   : > { %v5567_v25 = vpop.f32.mrb[152].mxu1  ;;  %v2390_v16 = vmax.f32 %v2160_v11, 0.0 }
 0x471   : > { %v5569_v26 = vpop.f32.mrb[153].mxu1 }
 0x472   : > { %2591 = vmatmul.mubr.f32.gmra.mrb[86].mxu0 %v2379_v23  ;;  %v2170_v22 = vadd.f32 %v5531_v28, %v5569_v26 }
 0x473   : > { %2595 = vmatprep.mubr.f32.mxu0 %v4592_v27  ;;  %v2175_v27 = vadd.f32 %v5567_v25, %v5531_v28  ;;  %v4606_v25 = vld [vmem:[%s5222_s27 + $0xd0] sm:$0xff] }
 0x474   : > { %v5573_v31 = vpop.f32.mrb[154].mxu1  ;;  %v2392_v29 = vmax.f32 %v2170_v22, 0.0  ;;  %v4614_v22 = vld [vmem:[%s5222_s27 + $0x110] sm:$0xff] }
 0x475   : > { %v5575_v33 = vpop.f32.mrb[155].mxu1  ;;  %v2393_v26 = vmax.f32 %v2175_v27, 0.0 }
 0x476   : > { %2596 = vmatmul.mubr.f32.gmra.mrb[88].mxu0 %v2380_v30  ;;  %v2180_v35 = vadd.f32 %v5531_v28, %v5575_v33 }
 0x477   : > { %2600 = vmatprep.mubr.f32.mxu0 %v4593_v19 }
 0x478   : > { %v5579_v36 = vpop.f32.mrb[156].mxu1 }
 0x479   : > { %v5581_v37 = vpop.f32.mrb[157].mxu1 }
 0x47a   : > { %2601 = vmatmul.mubr.f32.gmra.mrb[90].mxu0 %v2381_v34  ;;  %v4605_v34 = vld [vmem:[%s5222_s27 + $0xc8] sm:$0xff]  ;;  %v2190_v48 = vadd.f32 %v5531_v28, %v5581_v37 }
 0x47b   : > { %2605 = vmatprep.mubr.f32.mxu0 %v4594_v38 }
 0x47c   : > { %v5585_v42 = vpop.f32.mrb[158].mxu1  ;;  %v2396_v54 = vmax.f32 %v2190_v48, 0.0  ;;  %v4620_v48 = vld [vmem:[%s5222_s27 + $0x140] sm:$0xff] }
 0x47d   : > { %v5587_v40 = vpop.f32.mrb[159].mxu1 }
 0x47e   : > { %2606 = vmatmul.mubr.f32.gmra.mrb[92].mxu0 %v2382_v41  ;;  %v2185_v41 = vadd.f32 %v5573_v31, %v5531_v28  ;;  %v4608_v31 = vld [vmem:[%s5222_s27 + $0xe0] sm:$0xff] }
 0x47f   : > { %2610 = vmatprep.mubr.f32.mxu0 %v4595_v43  ;;  %v2394_v43 = vmax.f32 %v2180_v35, 0.0 }
 0x480   : > { %v5591_v32 = vpop.f32.mrb[160].mxu1  ;;  %v2395_v33 = vmax.f32 %v2185_v41, 0.0  ;;  %v4618_v41 = vld [vmem:[%s5222_s27 + $0x130] sm:$0xff] }
 0x481   : > { %v5593_v46 = vpop.f32.mrb[161].mxu1 }
 0x482   : > { %2611 = vmatmul.mubr.f32.gmra.mrb[94].mxu0 %v2383_v44  ;;  %v2210_v11 = vadd.f32 %v5531_v28, %v5593_v46 }
 0x483   : > { %2615 = vmatprep.mubr.f32.mxu0 %v4596_v47  ;;  %v4607_v47 = vld [vmem:[%s5222_s27 + $0xd8] sm:$0xff] }
 0x484   : > { %v5597_v50 = vpop.f32.mrb[162].mxu1  ;;  %v2400_v15 = vmax.f32 %v2210_v11, 0.0  ;;  %v4626_v11 = vld [vmem:[%s5222_s27 + $0x170] sm:$0xff] }
 0x485   : > { %v5599_v51 = vpop.f32.mrb[163].mxu1  ;;  %v2225_v46 = vadd.f32 %v5597_v50, %v5531_v28  ;;  %v4617_v50 = vld [vmem:[%s5222_s27 + $0x128] sm:$0xff] }
 0x486   : > { %2616 = vmatmul.mubr.f32.gmra.mrb[96].mxu0 %v2384_v49 }
 0x487   : > { %2620 = vmatprep.mubr.f32.mxu0 %v4597_v52  ;;  %v2403_v27 = vmax.f32 %v2225_v46, 0.0  ;;  %v4630_v46 = vld [vmem:[%s5222_s27 + $0x190] sm:$0xff] }
 0x488   : > { %v5603_v55 = vpop.f32.mrb[164].mxu1 }
 0x489   : > { %v5605_v56 = vpop.f32.mrb[165].mxu1 }
 0x48a   : > { %2621 = vmatmul.mubr.f32.gmra.mrb[98].mxu0 %v2385_v53  ;;  %v2195_v53 = vadd.f32 %v5579_v36, %v5531_v28  ;;  %v4610_v36 = vld [vmem:[%s5222_s27 + $0xf0] sm:$0xff] }
 0x48b   : > { %2625 = vmatprep.mubr.f32.mxu0 %v4598_v57 }
 0x48c   : > { %v5610_v61 = vpop.f32.mrb[166].mxu1  ;;  %v2397_v37 = vmax.f32 %v2195_v53, 0.0 }
 0x48d   : > { %v5612_v62 = vpop.f32.mrb[167].mxu1 }
 0x48e   : > { %2626 = vmatmul.mubr.f32.gmra.mrb[100].mxu0 %v2386_v59  ;;  %v4609_v59 = vld [vmem:[%s5222_s27 + $0xe8] sm:$0xff] }
 0x48f   : > { %2630 = vmatprep.mubr.f32.mxu0 %v4599_v63  ;;  %v2200_v63 = vadd.f32 %v5531_v28, %v5587_v40  ;;  %v4611_v40 = vld [vmem:[%s5222_s27 + $0xf8] sm:$0xff] }
 0x490   : > { %v5617_v2 = vpop.f32.mrb[168].mxu1 }
 0x491   : > { %v5619_v3 = vpop.f32.mrb[169].mxu1  ;;  %v2398_v5 = vmax.f32 %v2200_v63, 0.0 }
 0x492   : > { %2631 = vmatmul.mubr.f32.gmra.mrb[102].mxu0 %v2387_v0 }
 0x493   : > { %2635 = vmatprep.mubr.f32.mxu0 %v4600_v4  ;;  %v2205_v4 = vadd.f32 %v5585_v42, %v5531_v28  ;;  %v2215_v42 = vadd.f32 %v5591_v32, %v5531_v28  ;;  %v4615_v32 = vld [vmem:[%s5222_s27 + $0x118] sm:$0xff] }
 0x494   : > { %v5624_v7 = vpop.f32.mrb[170].mxu1 }
 0x495   : > { %v5626_v8 = vpop.f32.mrb[171].mxu1 }
 0x496   : > { %2636 = vmatmul.mubr.f32.gmra.mrb[104].mxu0 %v2388_v6 }
 0x497   : > { %2640 = vmatprep.mubr.f32.mxu0 %v4601_v9 }
 0x498   : > { %v5631_v12 = vpop.f32.mrb[172].mxu1 }
 0x499   : > { %v5633_v13 = vpop.f32.mrb[173].mxu1 }
 0x49a   : > { %2641 = vmatmul.mubr.f32.gmra.mrb[106].mxu0 %v2389_v10  ;;  %v2399_v10 = vmax.f32 %v2205_v4, 0.0  ;;  %v4624_v4 = vld [vmem:[%s5222_s27 + $0x160] sm:$0xff] }
 0x49b   : > { %2645 = vmatprep.mubr.f32.mxu0 %v4602_v14  ;;  %v4612_v14 = vld [vmem:[%s5222_s27 + $0x100] sm:$0xff] }
 0x49c   : > { %v5638_v17 = vpop.f32.mrb[174].mxu1 }
 0x49d   : > { %v5640_v18 = vpop.f32.mrb[175].mxu1 }
 0x49e   : > { %2646 = vmatmul.mubr.f32.gmra.mrb[108].mxu0 %v2390_v16  ;;  %v4613_v16 = vld [vmem:[%s5222_s27 + $0x108] sm:$0xff] }
 0x49f   : > { %2650 = vmatprep.mubr.f32.mxu0 %v4603_v20  ;;  %v2401_v20 = vmax.f32 %v2215_v42, 0.0 }
 0x4a0   : > { %v5645_v23 = vpop.f32.mrb[176].mxu1 }
 0x4a1   : > { %v5647_v24 = vpop.f32.mrb[177].mxu1 }
 0x4a2   : > { %2651 = vmatmul.mubr.f32.gmra.mrb[110].mxu0 %v2391_v21  ;;  %v2220_v21 = vadd.f32 %v5531_v28, %v5599_v51  ;;  %v2235_v51 = vadd.f32 %v5603_v55, %v5531_v28  ;;  %v4619_v55 = vld [vmem:[%s5222_s27 + $0x138] sm:$0xff] }
 0x4a3   : > { %2655 = vmatprep.mubr.f32.mxu0 %v4604_v60 }
 0x4a4   : > { %v5652_v30 = vpop.f32.mrb[178].mxu1  ;;  %v2402_v60 = vmax.f32 %v2220_v21, 0.0  ;;  %v2405_v35 = vmax.f32 %v2235_v51, 0.0  ;;  %v4633_v51 = vld [vmem:[%s5222_s27 + $0x1a8] sm:$0xff] }
 0x4a5   : > { %v5654_v19 = vpop.f32.mrb[179].mxu1 }
 0x4a6   : > { %2656 = vmatmul.mubr.f32.gmra.mrb[112].mxu0 %v2392_v29  ;;  %v2230_v29 = vadd.f32 %v5531_v28, %v5605_v56  ;;  %v2245_v56 = vadd.f32 %v5610_v61, %v5531_v28  ;;  %v4621_v61 = vld [vmem:[%s5222_s27 + $0x148] sm:$0xff] }
 0x4a7   : > { %2660 = vmatprep.mubr.f32.mxu0 %v4605_v34  ;;  %v4616_v34 = vld [vmem:[%s5222_s27 + $0x120] sm:$0xff] }
 0x4a8   : > { %v5659_v38 = vpop.f32.mrb[180].mxu1 }
 0x4a9   : > { %v5661_v39 = vpop.f32.mrb[181].mxu1 }
 0x4aa   : > { %2661 = vmatmul.mubr.f32.gmra.mrb[114].mxu0 %v2393_v26  ;;  %v2404_v26 = vmax.f32 %v2230_v29, 0.0  ;;  %v4632_v29 = vld [vmem:[%s5222_s27 + $0x1a0] sm:$0xff] }
 0x4ab   : > { %2665 = vmatprep.mubr.f32.mxu0 %v4606_v25  ;;  %v2240_v25 = vadd.f32 %v5531_v28, %v5612_v62  ;;  %v2255_v62 = vadd.f32 %v5617_v2, %v5531_v28  ;;  %v4623_v2 = vld [vmem:[%s5222_s27 + $0x158] sm:$0xff] }
 0x4ac   : > { %v5666_v44 = vpop.f32.mrb[182].mxu1 }
 0x4ad   : > { %v5668_v45 = vpop.f32.mrb[183].mxu1  ;;  %v2409_v53 = vmax.f32 %v2255_v62, 0.0 }
 0x4ae   : > { %2666 = vmatmul.mubr.f32.gmra.mrb[116].mxu0 %v2394_v43  ;;  %v2406_v43 = vmax.f32 %v2240_v25, 0.0 }
 0x4af   : > { %2670 = vmatprep.mubr.f32.mxu0 %v4607_v47  ;;  %v2407_v47 = vmax.f32 %v2245_v56, 0.0 }
 0x4b0   : > { %v5673_v49 = vpop.f32.mrb[184].mxu1 }
 0x4b1   : > { %v5675_v52 = vpop.f32.mrb[185].mxu1 }
 0x4b2   : > { %2671 = vmatmul.mubr.f32.gmra.mrb[118].mxu0 %v2395_v33  ;;  %v2250_v33 = vadd.f32 %v5531_v28, %v5619_v3  ;;  %v2265_v3 = vadd.f32 %v5624_v7, %v5531_v28  ;;  %v4625_v7 = vld [vmem:[%s5222_s27 + $0x168] sm:$0xff]  ;;  %v2330_v62 = vadd.f32 %v5531_v28, %v5675_v52 }
 0x4b3   : > { %2675 = vmatprep.mubr.f32.mxu0 %v4608_v31 }
 0x4b4   : > { %v5680_v57 = vpop.f32.mrb[186].mxu1  ;;  %v2408_v31 = vmax.f32 %v2250_v33, 0.0  ;;  %v2411_v63 = vmax.f32 %v2265_v3, 0.0  ;;  %v2424_v3 = vmax.f32 %v2330_v62, 0.0 }
 0x4b5   : > { %v5682_v58 = vpop.f32.mrb[187].mxu1 }
 0x4b6   : > { %2676 = vmatmul.mubr.f32.gmra.mrb[120].mxu0 %v2396_v54  ;;  %v2260_v54 = vadd.f32 %v5531_v28, %v5626_v8  ;;  %v2275_v8 = vadd.f32 %v5631_v12, %v5531_v28  ;;  %v4627_v12 = vld [vmem:[%s5222_s27 + $0x178] sm:$0xff] }
 0x4b7   : > { %2680 = vmatprep.mubr.f32.mxu0 %v4609_v59  ;;  %v4622_v59 = vld [vmem:[%s5222_s27 + $0x150] sm:$0xff] }
 0x4b8   : > { %v5687_v0 = vpop.f32.mrb[188].mxu1 }
 0x4b9   : > { %v5689_v1 = vpop.f32.mrb[189].mxu1 }
 0x4ba   : > { %2681 = vmatmul.mubr.f32.gmra.mrb[122].mxu0 %v2397_v37  ;;  %v2410_v37 = vmax.f32 %v2260_v54, 0.0  ;;  %v4636_v54 = vld [vmem:[%s5222_s27 + $0x1c0] sm:$0xff] }
 0x4bb   : > { %2685 = vmatprep.mubr.f32.mxu0 %v4610_v36  ;;  %v2270_v36 = vadd.f32 %v5531_v28, %v5633_v13  ;;  %v2285_v13 = vadd.f32 %v5638_v17, %v5531_v28  ;;  %v4629_v17 = vld [vmem:[%s5222_s27 + $0x188] sm:$0xff] }
 0x4bc   : > { %v5694_v6 = vpop.f32.mrb[190].mxu1 }
 0x4bd   : > { %v5696_v9 = vpop.f32.mrb[191].mxu1  ;;  %v2415_v42 = vmax.f32 %v2285_v13, 0.0 }
 0x4be   : > { %2686 = vmatmul.mubr.f32.gmra.mrb[124].mxu0 %v2398_v5  ;;  %v2412_v5 = vmax.f32 %v2270_v36, 0.0  ;;  %v4637_v36 = vld [vmem:[%s5222_s27 + $0x1c8] sm:$0xff] }
 0x4bf   : > { %2690 = vmatprep.mubr.f32.mxu0 %v4611_v40  ;;  %v2413_v40 = vmax.f32 %v2275_v8, 0.0 }
 0x4c2   : > { %2691 = vmatmul.mubr.f32.gmra.mrb[126].mxu0 %v2399_v10  ;;  %v2280_v10 = vadd.f32 %v5531_v28, %v5640_v18  ;;  %v2295_v18 = vadd.f32 %v5645_v23, %v5531_v28 }
 0x4c3   : > { %2695 = vmatprep.mubr.f32.mxu0 %v4612_v14 }
 0x4c4   : > { %v2414_v14 = vmax.f32 %v2280_v10, 0.0  ;;  %v2417_v21 = vmax.f32 %v2295_v18, 0.0 }
 0x4c6   : > { %2696 = vmatmul.mubr.f32.gmra.mrb[128].mxu0 %v2400_v15  ;;  %v2290_v15 = vadd.f32 %v5531_v28, %v5647_v24  ;;  %v2305_v24 = vadd.f32 %v5652_v30, %v5531_v28  ;;  %v5767_v30 = vld [vmem:[%s6028_s24] ss:$0 sm:$0xff] }
 0x4c7   : > { %2700 = vmatprep.mubr.f32.mxu0 %v4613_v16  ;;  %v4628_v16 = vld [vmem:[%s5222_s27 + $0x180] sm:$0xff] }
 0x4c8   : > { %v2419_v23 = vmax.f32 %v2305_v24, 0.0  ;;  %v2350_v24 = vadd.f32 %v5531_v28, %v5689_v1 }
 0x4ca   : > { %2701 = vmatmul.mubr.f32.gmra.mrb[130].mxu0 %v2401_v20  ;;  %v2416_v20 = vmax.f32 %v2290_v15, 0.0 }
 0x4cb   : > { %2705 = vmatprep.mubr.f32.mxu0 %v4614_v22  ;;  %v2300_v22 = vadd.f32 %v5531_v28, %v5654_v19  ;;  %v2315_v19 = vadd.f32 %v5659_v38, %v5531_v28  ;;  %v4634_v38 = vld [vmem:[%s5222_s27 + $0x1b0] sm:$0xff] }
 0x4ce   : > { %2706 = vmatmul.mubr.f32.gmra.mrb[132].mxu0 %v2402_v60  ;;  %v2418_v60 = vmax.f32 %v2300_v22, 0.0  ;;  %v4639_v22 = vld [vmem:[%s5222_s27 + $0x1d8] sm:$0xff] }
 0x4cf   : > { %2710 = vmatprep.mubr.f32.mxu0 %v4615_v32  ;;  %v4631_v32 = vld [vmem:[%s5222_s27 + $0x198] sm:$0xff] }
 0x4d2   : > { %2711 = vmatmul.mubr.f32.gmra.mrb[134].mxu0 %v2403_v27  ;;  %v2310_v27 = vadd.f32 %v5531_v28, %v5661_v39  ;;  %v2320_v39 = vadd.f32 %v5531_v28, %v5668_v45  ;;  %v4635_v45 = vld [vmem:[%s5222_s27 + $0x1b8] sm:$0xff] }
 0x4d3   : > { %2715 = vmatprep.mubr.f32.mxu0 %v4616_v34 }
 0x4d4   : > { %v2420_v34 = vmax.f32 %v2310_v27, 0.0  ;;  %v2422_v56 = vmax.f32 %v2320_v39, 0.0  ;;  %v2428_v39 = vmax.f32 %v2350_v24, 0.0 }
 0x4d6   : > { %2716 = vmatmul.mubr.f32.gmra.mrb[136].mxu0 %v2404_v26  ;;  %v2421_v26 = vmax.f32 %v2315_v19, 0.0 }
 0x4d7   : > { %2720 = vmatprep.mubr.f32.mxu0 %v4617_v50 }
 0x4da   : > { %2721 = vmatmul.mubr.f32.gmra.mrb[138].mxu0 %v2405_v35 }
 0x4db   : > { %2725 = vmatprep.mubr.f32.mxu0 %v4618_v41  ;;  %v2325_v41 = vadd.f32 %v5666_v44, %v5531_v28 }
 0x4de   : > { %2726 = vmatmul.mubr.f32.gmra.mrb[140].mxu0 %v2406_v43 }
 0x4df   : > { %2730 = vmatprep.mubr.f32.mxu0 %v4619_v55 }
 0x4e2   : > { %2731 = vmatmul.mubr.f32.gmra.mrb[142].mxu0 %v2407_v47 }
 0x4e3   : > { %2735 = vmatprep.mubr.f32.mxu0 %v4620_v48  ;;  %v2423_v48 = vmax.f32 %v2325_v41, 0.0 }
 0x4e6   : > { %2736 = vmatmul.mubr.f32.gmra.mrb[144].mxu0 %v2408_v31 }
 0x4e7   : > { %2740 = vmatprep.mubr.f32.mxu0 %v4621_v61 }
 0x4ea   : > { %2741 = vmatmul.mubr.f32.gmra.mrb[146].mxu0 %v2409_v53 }
 0x4eb   : > { %2745 = vmatprep.mubr.f32.mxu0 %v4622_v59  ;;  %v2335_v59 = vadd.f32 %v5673_v49, %v5531_v28 }
 0x4ed   : > { %v2425_v8 = vmax.f32 %v2335_v59, 0.0 }
 0x4ee   : > { %2746 = vmatmul.mubr.f32.gmra.mrb[148].mxu0 %v2410_v37 }
 0x4ef   : > { %2750 = vmatprep.mubr.f32.mxu0 %v4623_v2 }
 0x4f2   : > { %2751 = vmatmul.mubr.f32.gmra.mrb[150].mxu0 %v2411_v63 }
 0x4f3   : > { %2755 = vmatprep.mubr.f32.mxu0 %v4624_v4 }
 0x4f6   : > { %2756 = vmatmul.mubr.f32.gmra.mrb[152].mxu0 %v2412_v5  ;;  %v2340_v5 = vadd.f32 %v5531_v28, %v5682_v58 }
 0x4f7   : > { %2760 = vmatprep.mubr.f32.mxu0 %v4625_v7 }
 0x4f8   : > { %v2426_v15 = vmax.f32 %v2340_v5, 0.0 }
 0x4fa   : > { %2761 = vmatmul.mubr.f32.gmra.mrb[154].mxu0 %v2413_v40 }
 0x4fb   : > { %2765 = vmatprep.mubr.f32.mxu0 %v4626_v11 }
 0x4fe   : > { %2766 = vmatmul.mubr.f32.gmra.mrb[156].mxu0 %v2414_v14  ;;  %v4638_v14 = vld [vmem:[%s5222_s27 + $0x1d0] sm:$0xff] }
 0x4ff   : > { %2770 = vmatprep.mubr.f32.mxu0 %v4627_v12 }
 0x502   : > { %2771 = vmatmul.mubr.f32.gmra.mrb[158].mxu0 %v2415_v42  ;;  %v2345_v42 = vadd.f32 %v5680_v57, %v5531_v28 }
 0x503   : > { %2775 = vmatprep.mubr.f32.mxu0 %v4628_v16 }
 0x506   : > { %2776 = vmatmul.mubr.f32.gmra.mrb[160].mxu0 %v2416_v20 }
 0x507   : > { %2780 = vmatprep.mubr.f32.mxu0 %v4629_v17 }
 0x50a   : > { %2781 = vmatmul.mubr.f32.gmra.mrb[162].mxu0 %v2417_v21 }
 0x50b   : > { %2785 = vmatprep.mubr.f32.mxu0 %v4630_v46  ;;  %v2427_v46 = vmax.f32 %v2345_v42, 0.0 }
 0x50e   : > { %2786 = vmatmul.mubr.f32.gmra.mrb[164].mxu0 %v2418_v60 }
 0x50f   : > { %2790 = vmatprep.mubr.f32.mxu0 %v4631_v32 }
 0x512   : > { %2791 = vmatmul.mubr.f32.gmra.mrb[166].mxu0 %v2419_v23 }
 0x513   : > { %2795 = vmatprep.mubr.f32.mxu0 %v4632_v29 }
 0x516   : > { %2796 = vmatmul.mubr.f32.gmra.mrb[168].mxu0 %v2420_v34  ;;  %v4640_v34 = vld [vmem:[%s5222_s27 + $0x1e0] sm:$0xff] }
 0x517   : > { %2800 = vmatprep.mubr.f32.mxu0 %v4633_v51 }
 0x519   : > { %v2537_v50 = vpop.f32.mrb[64].mxu0 }
 0x51a   : > { %v2538_v35 = vadd.f32 %v5767_v30, %v2537_v50  ;;  %v2539_v25 = vpop.f32.mrb[65].mxu0  ;;  %2801 = vmatmul.mubr.f32.gmra.mrb[170].mxu0 %v2421_v26  ;;  %v2355_v26 = vadd.f32 %v5687_v0, %v5531_v28  ;;  %v2360_v0 = vadd.f32 %v5531_v28, %v5696_v9 }
 0x51b   : > { %2805 = vmatprep.mubr.f32.mxu0 %v4634_v38 }
 0x51c   : > { %v2856_v43 = vmul.f32 0.5, %v2538_v35  ;;  %v2430_v9 = vmax.f32 %v2360_v0, 0.0 }
 0x51d   : > { %v2542_v55 = vpop.f32.mrb[66].mxu0 }
 0x51e   : > { %4452 = vtanh.f32 %v2856_v43  ;;  %v2543_v47 = vadd.f32 %v5767_v30, %v2542_v55  ;;  %v2544_v33 = vpop.f32.mrb[67].mxu0  ;;  %2806 = vmatmul.mubr.f32.gmra.mrb[172].mxu0 %v2422_v56  ;;  %v4641_v56 = vld [vmem:[%s5222_s27 + $0x1e8] sm:$0xff]  ;;  %v2429_v55 = vmax.f32 %v2355_v26, 0.0 }
 0x51f   : > { %2810 = vmatprep.mubr.f32.mxu0 %v4635_v45 }
 0x520   : > { %v2857_v31 = vmul.f32 0.5, %v2543_v47 }
 0x521   : > { %v2547_v61 = vpop.f32.mrb[68].mxu0 }
 0x522   : > { %4454 = vtanh.f32 %v2857_v31  ;;  %v2548_v44 = vadd.f32 %v5767_v30, %v2547_v61  ;;  %v2549_v53 = vpop.f32.mrb[69].mxu0  ;;  %2811 = vmatmul.mubr.f32.gmra.mrb[174].mxu0 %v2423_v48  ;;  %v4642_v61 = vld [vmem:[%s5222_s27 + $0x1f0] sm:$0xff] }
 0x523   : > { %2815 = vmatprep.mubr.f32.mxu0 %v4636_v54  ;;  %v2365_v53 = vadd.f32 %v5694_v6, %v5531_v28 }
 0x524   : > { %v2858_v37 = vmul.f32 0.5, %v2548_v44 }
 0x525   : > { %v2552_v2 = vpop.f32.mrb[70].mxu0 }
 0x526   : > { %4456 = vtanh.f32 %v2858_v37  ;;  %v2553_v63 = vadd.f32 %v5767_v30, %v2552_v2  ;;  %v2554_v52 = vpop.f32.mrb[71].mxu0  ;;  %2816 = vmatmul.mubr.f32.gmra.mrb[176].mxu0 %v2424_v3 }
 0x527   : > { %2820 = vmatprep.mubr.f32.mxu0 %v4637_v36  ;;  %v4643_v52 = vld [vmem:[%s5222_s27 + $0x1f8] sm:$0xff] }
 0x528   : > { %v4453_v4 = vpop.eup %4452  ;;  %v2859_v7 = vmul.f32 0.5, %v2553_v63 }
 0x529   : > { %v2984_v40 = vmul.f32 0.5, %v4453_v4  ;;  %v2557_v49 = vpop.f32.mrb[72].mxu0  ;;  %v2431_v4 = vmax.f32 %v2365_v53, 0.0 }
 0x52a   : > { %4458 = vtanh.f32 %v2859_v7  ;;  %v2558_v10 = vadd.f32 %v5767_v30, %v2557_v49  ;;  %v2559_v11 = vpop.f32.mrb[73].mxu0  ;;  %2821 = vmatmul.mubr.f32.gmra.mrb[178].mxu0 %v2425_v8 }
 0x52b   : > { %v3048_v13 = vadd.f32 0.5, %v2984_v40  ;;  %2825 = vmatprep.mubr.f32.mxu0 %v4638_v14 }
 0x52c   : > { %v4455_v12 = vpop.eup %4454  ;;  %v2860_v16 = vmul.f32 0.5, %v2558_v10 }
 0x52d   : > { %3112 = vst [vmem:[%s5794_s12] sm:$0xff] %v3048_v13  ;;  %v2985_v58 = vmul.f32 0.5, %v4455_v12  ;;  %v2562_v18 = vpop.f32.mrb[74].mxu0 }
 0x52e   : > { %4460 = vtanh.f32 %v2860_v16  ;;  %v2563_v20 = vadd.f32 %v5767_v30, %v2562_v18  ;;  %v2564_v17 = vpop.f32.mrb[75].mxu0  ;;  %2826 = vmatmul.mubr.f32.gmra.mrb[180].mxu0 %v2426_v15 }
 0x52f   : > { %v3049_v21 = vadd.f32 0.5, %v2985_v58  ;;  %2830 = vmatprep.mubr.f32.mxu0 %v4639_v22 }
 0x530   : > { %v4457_v57 = vpop.eup %4456  ;;  %v2861_v60 = vmul.f32 0.5, %v2563_v20 }
 0x531   : > { %3113 = vst [vmem:[%s5794_s12 + $0x8] sm:$0xff] %v3049_v21  ;;  %v2986_v32 = vmul.f32 0.5, %v4457_v57  ;;  %v2567_v23 = vpop.f32.mrb[76].mxu0 }
 0x532   : > { %4462 = vtanh.f32 %v2861_v60  ;;  %v2568_v27 = vadd.f32 %v5767_v30, %v2567_v23  ;;  %v2569_v29 = vpop.f32.mrb[77].mxu0  ;;  %2831 = vmatmul.mubr.f32.gmra.mrb[182].mxu0 %v2427_v46 }
 0x533   : > { %v3050_v19 = vadd.f32 0.5, %v2986_v32  ;;  %2835 = vmatprep.mubr.f32.mxu0 %v4640_v34 }
 0x534   : > { %v4459_v51 = vpop.eup %4458  ;;  %v2862_v1 = vmul.f32 0.5, %v2568_v27 }
 0x535   : > { %3114 = vst [vmem:[%s5794_s12 + $0x10] sm:$0xff] %v3050_v19  ;;  %v2987_v50 = vmul.f32 0.5, %v4459_v51  ;;  %v2572_v35 = vpop.f32.mrb[78].mxu0 }
 0x536   : > { %4464 = vtanh.f32 %v2862_v1  ;;  %v2573_v25 = vadd.f32 %v5767_v30, %v2572_v35  ;;  %v2574_v38 = vpop.f32.mrb[79].mxu0  ;;  %2836 = vmatmul.mubr.f32.gmra.mrb[184].mxu0 %v2428_v39 }
 0x537   : > { %v3051_v41 = vadd.f32 0.5, %v2987_v50  ;;  %2840 = vmatprep.mubr.f32.mxu0 %v4641_v56 }
 0x538   : > { %v4461_v43 = vpop.eup %4460  ;;  %v2863_v47 = vmul.f32 0.5, %v2573_v25 }
 0x539   : > { %3115 = vst [vmem:[%s5794_s12 + $0x18] sm:$0xff] %v3051_v41  ;;  %v2988_v33 = vmul.f32 0.5, %v4461_v43  ;;  %v2577_v45 = vpop.f32.mrb[80].mxu0 }
 0x53a   : > { %4466 = vtanh.f32 %v2863_v47  ;;  %v2578_v48 = vadd.f32 %v5767_v30, %v2577_v45  ;;  %v2579_v62 = vpop.f32.mrb[81].mxu0  ;;  %2841 = vmatmul.mubr.f32.gmra.mrb[186].mxu0 %v2429_v55 }
 0x53b   : > { %v3052_v31 = vadd.f32 0.5, %v2988_v33  ;;  %2845 = vmatprep.mubr.f32.mxu0 %v4642_v61 }
 0x53c   : > { %v4463_v44 = vpop.eup %4462  ;;  %v2864_v54 = vmul.f32 0.5, %v2578_v48 }
 0x53d   : > { %3116 = vst [vmem:[%s5794_s12 + $0x20] sm:$0xff] %v3052_v31  ;;  %v2989_v59 = vmul.f32 0.5, %v4463_v44  ;;  %v2582_v3 = vpop.f32.mrb[82].mxu0 }
 0x53e   : > { %4468 = vtanh.f32 %v2864_v54  ;;  %v2583_v37 = vadd.f32 %v5767_v30, %v2582_v3  ;;  %v2584_v2 = vpop.f32.mrb[83].mxu0  ;;  %2846 = vmatmul.mubr.f32.gmra.mrb[188].mxu0 %v2430_v9 }
 0x53f   : > { %v3053_v63 = vadd.f32 0.5, %v2989_v59  ;;  %2850 = vmatprep.mubr.f32.mxu0 %v4643_v52 }
 0x540   : > { %v4465_v36 = vpop.eup %4464  ;;  %v2865_v8 = vmul.f32 0.5, %v2583_v37 }
 0x541   : > { %3117 = vst [vmem:[%s5794_s12 + $0x28] sm:$0xff] %v3053_v63  ;;  %v2990_v28 = vmul.f32 0.5, %v4465_v36  ;;  %v2587_v6 = vpop.f32.mrb[84].mxu0 }
 0x542   : > { %4470 = vtanh.f32 %v2865_v8  ;;  %v2588_v5 = vadd.f32 %v5767_v30, %v2587_v6  ;;  %v2589_v7 = vpop.f32.mrb[85].mxu0  ;;  %2851 = vmatmul.mubr.f32.gmra.mrb[190].mxu0 %v2431_v4 }
 0x543   : > { %v3054_v40 = vadd.f32 0.5, %v2990_v28 }
 0x544   : > { %v4467_v49 = vpop.eup %4466  ;;  %v2866_v10 = vmul.f32 0.5, %v2588_v5 }
 0x545   : > { %3118 = vst [vmem:[%s5794_s12 + $0x30] sm:$0xff] %v3054_v40  ;;  %v2991_v11 = vmul.f32 0.5, %v4467_v49  ;;  %v2592_v13 = vpop.f32.mrb[86].mxu0 }
 0x546   : > { %4472 = vtanh.f32 %v2866_v10  ;;  %v2593_v14 = vadd.f32 %v5767_v30, %v2592_v13  ;;  %v2594_v12 = vpop.f32.mrb[87].mxu0 }
 0x547   : > { %v3055_v42 = vadd.f32 0.5, %v2991_v11 }
 0x548   : > { %v4469_v15 = vpop.eup %4468  ;;  %v2867_v16 = vmul.f32 0.5, %v2593_v14 }
 0x549   : > { %3119 = vst [vmem:[%s5794_s12 + $0x38] sm:$0xff] %v3055_v42  ;;  %v2992_v58 = vmul.f32 0.5, %v4469_v15  ;;  %v2597_v18 = vpop.f32.mrb[88].mxu0 }
 0x54a   : > { %4474 = vtanh.f32 %v2867_v16  ;;  %v2598_v20 = vadd.f32 %v5767_v30, %v2597_v18  ;;  %v2599_v17 = vpop.f32.mrb[89].mxu0 }
 0x54b   : > { %v3056_v21 = vadd.f32 0.5, %v2992_v58 }
 0x54c   : > { %v4471_v22 = vpop.eup %4470  ;;  %v2868_v57 = vmul.f32 0.5, %v2598_v20 }
 0x54d   : > { %3120 = vst [vmem:[%s5794_s12 + $0x40] sm:$0xff] %v3056_v21  ;;  %v2993_v46 = vmul.f32 0.5, %v4471_v22  ;;  %v2602_v24 = vpop.f32.mrb[90].mxu0 }
 0x54e   : > { %4476 = vtanh.f32 %v2868_v57  ;;  %v2603_v60 = vadd.f32 %v5767_v30, %v2602_v24  ;;  %v2604_v32 = vpop.f32.mrb[91].mxu0 }
 0x54f   : > { %v3057_v23 = vadd.f32 0.5, %v2993_v46 }
 0x550   : > { %v4473_v27 = vpop.eup %4472  ;;  %v2869_v29 = vmul.f32 0.5, %v2603_v60 }
 0x551   : > { %3121 = vst [vmem:[%s5794_s12 + $0x48] sm:$0xff] %v3057_v23  ;;  %v2994_v19 = vmul.f32 0.5, %v4473_v27  ;;  %v2607_v34 = vpop.f32.mrb[92].mxu0 }
 0x552   : > { %4478 = vtanh.f32 %v2869_v29  ;;  %v2608_v51 = vadd.f32 %v5767_v30, %v2607_v34  ;;  %v2609_v26 = vpop.f32.mrb[93].mxu0 }
 0x553   : > { %v3058_v39 = vadd.f32 0.5, %v2994_v19 }
 0x554   : > { %v4475_v1 = vpop.eup %4474  ;;  %v2870_v50 = vmul.f32 0.5, %v2608_v51 }
 0x555   : > { %3122 = vst [vmem:[%s5794_s12 + $0x50] sm:$0xff] %v3058_v39  ;;  %v2995_v35 = vmul.f32 0.5, %v4475_v1  ;;  %v2612_v25 = vpop.f32.mrb[94].mxu0 }
 0x556   : > { %4480 = vtanh.f32 %v2870_v50  ;;  %v2613_v38 = vadd.f32 %v5767_v30, %v2612_v25  ;;  %v2614_v41 = vpop.f32.mrb[95].mxu0 }
 0x557   : > { %v3059_v56 = vadd.f32 0.5, %v2995_v35 }
 0x558   : > { %v4477_v43 = vpop.eup %4476  ;;  %v2871_v55 = vmul.f32 0.5, %v2613_v38 }
 0x559   : > { %3123 = vst [vmem:[%s5794_s12 + $0x58] sm:$0xff] %v3059_v56  ;;  %v2996_v0 = vmul.f32 0.5, %v4477_v43  ;;  %v2617_v47 = vpop.f32.mrb[96].mxu0 }
 0x55a   : > { %4482 = vtanh.f32 %v2871_v55  ;;  %v2618_v33 = vadd.f32 %v5767_v30, %v2617_v47  ;;  %v2619_v45 = vpop.f32.mrb[97].mxu0 }
 0x55b   : > { %v3060_v48 = vadd.f32 0.5, %v2996_v0 }
 0x55c   : > { %v4479_v62 = vpop.eup %4478  ;;  %v2872_v31 = vmul.f32 0.5, %v2618_v33 }
 0x55d   : > { %3124 = vst [vmem:[%s5794_s12 + $0x60] sm:$0xff] %v3060_v48  ;;  %v2997_v61 = vmul.f32 0.5, %v4479_v62  ;;  %v2622_v44 = vpop.f32.mrb[98].mxu0 }
 0x55e   : > { %4484 = vtanh.f32 %v2872_v31  ;;  %v2623_v53 = vadd.f32 %v5767_v30, %v2622_v44  ;;  %v2624_v9 = vpop.f32.mrb[99].mxu0 }
 0x55f   : > { %v3061_v54 = vadd.f32 0.5, %v2997_v61 }
 0x560   : > { %v4481_v59 = vpop.eup %4480  ;;  %v2873_v3 = vmul.f32 0.5, %v2623_v53 }
 0x561   : > { %3125 = vst [vmem:[%s5794_s12 + $0x68] sm:$0xff] %v3061_v54  ;;  %v2998_v37 = vmul.f32 0.5, %v4481_v59  ;;  %v2627_v2 = vpop.f32.mrb[100].mxu0 }
 0x562   : > { %4486 = vtanh.f32 %v2873_v3  ;;  %v2628_v63 = vadd.f32 %v5767_v30, %v2627_v2  ;;  %v2629_v52 = vpop.f32.mrb[101].mxu0 }
 0x563   : > { %v3062_v36 = vadd.f32 0.5, %v2998_v37 }
 0x564   : > { %v4483_v4 = vpop.eup %4482  ;;  %v2874_v8 = vmul.f32 0.5, %v2628_v63 }
 0x565   : > { %3126 = vst [vmem:[%s5794_s12 + $0x70] sm:$0xff] %v3062_v36  ;;  %v2999_v28 = vmul.f32 0.5, %v4483_v4  ;;  %v2632_v6 = vpop.f32.mrb[102].mxu0 }
 0x566   : > { %4488 = vtanh.f32 %v2874_v8  ;;  %v2633_v5 = vadd.f32 %v5767_v30, %v2632_v6  ;;  %v2634_v7 = vpop.f32.mrb[103].mxu0 }
 0x567   : > { %v3063_v40 = vadd.f32 0.5, %v2999_v28 }
 0x568   : > { %v4485_v49 = vpop.eup %4484  ;;  %v2875_v10 = vmul.f32 0.5, %v2633_v5 }
 0x569   : > { %3127 = vst [vmem:[%s5794_s12 + $0x78] sm:$0xff] %v3063_v40  ;;  %v3000_v11 = vmul.f32 0.5, %v4485_v49  ;;  %v2637_v13 = vpop.f32.mrb[104].mxu0 }
 0x56a   : > { %4490 = vtanh.f32 %v2875_v10  ;;  %v2638_v14 = vadd.f32 %v5767_v30, %v2637_v13  ;;  %v2639_v12 = vpop.f32.mrb[105].mxu0 }
 0x56b   : > { %v3064_v42 = vadd.f32 0.5, %v3000_v11 }
 0x56c   : > { %v4487_v15 = vpop.eup %4486  ;;  %v2876_v16 = vmul.f32 0.5, %v2638_v14 }
 0x56d   : > { %3128 = vst [vmem:[%s5794_s12 + $0x80] sm:$0xff] %v3064_v42  ;;  %v3001_v58 = vmul.f32 0.5, %v4487_v15  ;;  %v2642_v18 = vpop.f32.mrb[106].mxu0 }
 0x56e   : > { %4492 = vtanh.f32 %v2876_v16  ;;  %v2643_v20 = vadd.f32 %v5767_v30, %v2642_v18  ;;  %v2644_v17 = vpop.f32.mrb[107].mxu0 }
 0x56f   : > { %v3065_v21 = vadd.f32 0.5, %v3001_v58 }
 0x570   : > { %v4489_v22 = vpop.eup %4488  ;;  %v2877_v57 = vmul.f32 0.5, %v2643_v20 }
 0x571   : > { %3129 = vst [vmem:[%s5794_s12 + $0x88] sm:$0xff] %v3065_v21  ;;  %v3002_v46 = vmul.f32 0.5, %v4489_v22  ;;  %v2647_v24 = vpop.f32.mrb[108].mxu0 }
 0x572   : > { %4494 = vtanh.f32 %v2877_v57  ;;  %v2648_v60 = vadd.f32 %v5767_v30, %v2647_v24  ;;  %v2649_v32 = vpop.f32.mrb[109].mxu0 }
 0x573   : > { %v3066_v23 = vadd.f32 0.5, %v3002_v46 }
 0x574   : > { %v4491_v27 = vpop.eup %4490  ;;  %v2878_v29 = vmul.f32 0.5, %v2648_v60 }
 0x575   : > { %3130 = vst [vmem:[%s5794_s12 + $0x90] sm:$0xff] %v3066_v23  ;;  %v3003_v19 = vmul.f32 0.5, %v4491_v27  ;;  %v2652_v34 = vpop.f32.mrb[110].mxu0 }
 0x576   : > { %4496 = vtanh.f32 %v2878_v29  ;;  %v2653_v51 = vadd.f32 %v5767_v30, %v2652_v34  ;;  %v2654_v26 = vpop.f32.mrb[111].mxu0 }
 0x577   : > { %v3067_v39 = vadd.f32 0.5, %v3003_v19 }
 0x578   : > { %v4493_v1 = vpop.eup %4492  ;;  %v2879_v50 = vmul.f32 0.5, %v2653_v51 }
 0x579   : > { %3131 = vst [vmem:[%s5794_s12 + $0x98] sm:$0xff] %v3067_v39  ;;  %v3004_v35 = vmul.f32 0.5, %v4493_v1  ;;  %v2657_v25 = vpop.f32.mrb[112].mxu0 }
 0x57a   : > { %4498 = vtanh.f32 %v2879_v50  ;;  %v2658_v38 = vadd.f32 %v5767_v30, %v2657_v25  ;;  %v2659_v41 = vpop.f32.mrb[113].mxu0 }
 0x57b   : > { %v3068_v56 = vadd.f32 0.5, %v3004_v35 }
 0x57c   : > { %v4495_v43 = vpop.eup %4494  ;;  %v2880_v55 = vmul.f32 0.5, %v2658_v38 }
 0x57d   : > { %3132 = vst [vmem:[%s5794_s12 + $0xa0] sm:$0xff] %v3068_v56  ;;  %v3005_v0 = vmul.f32 0.5, %v4495_v43  ;;  %v2662_v47 = vpop.f32.mrb[114].mxu0 }
 0x57e   : > { %4500 = vtanh.f32 %v2880_v55  ;;  %v2663_v33 = vadd.f32 %v5767_v30, %v2662_v47  ;;  %v2664_v45 = vpop.f32.mrb[115].mxu0 }
 0x57f   : > { %v3069_v48 = vadd.f32 0.5, %v3005_v0 }
 0x580   : > { %v4497_v62 = vpop.eup %4496  ;;  %v2881_v31 = vmul.f32 0.5, %v2663_v33 }
 0x581   : > { %3133 = vst [vmem:[%s5794_s12 + $0xa8] sm:$0xff] %v3069_v48  ;;  %v3006_v61 = vmul.f32 0.5, %v4497_v62  ;;  %v2667_v44 = vpop.f32.mrb[116].mxu0 }
 0x582   : > { %4502 = vtanh.f32 %v2881_v31  ;;  %v2668_v53 = vadd.f32 %v5767_v30, %v2667_v44  ;;  %v2669_v9 = vpop.f32.mrb[117].mxu0 }
 0x583   : > { %v3070_v54 = vadd.f32 0.5, %v3006_v61 }
 0x584   : > { %v4499_v59 = vpop.eup %4498  ;;  %v2882_v3 = vmul.f32 0.5, %v2668_v53 }
 0x585   : > { %3134 = vst [vmem:[%s5794_s12 + $0xb0] sm:$0xff] %v3070_v54  ;;  %v3007_v37 = vmul.f32 0.5, %v4499_v59  ;;  %v2672_v2 = vpop.f32.mrb[118].mxu0 }
 0x586   : > { %4504 = vtanh.f32 %v2882_v3  ;;  %v2673_v63 = vadd.f32 %v5767_v30, %v2672_v2  ;;  %v2674_v52 = vpop.f32.mrb[119].mxu0 }
 0x587   : > { %v3071_v36 = vadd.f32 0.5, %v3007_v37 }
 0x588   : > { %v4501_v4 = vpop.eup %4500  ;;  %v2883_v8 = vmul.f32 0.5, %v2673_v63 }
 0x589   : > { %3135 = vst [vmem:[%s5794_s12 + $0xb8] sm:$0xff] %v3071_v36  ;;  %v3008_v28 = vmul.f32 0.5, %v4501_v4  ;;  %v2677_v6 = vpop.f32.mrb[120].mxu0 }
 0x58a   : > { %4506 = vtanh.f32 %v2883_v8  ;;  %v2678_v5 = vadd.f32 %v5767_v30, %v2677_v6  ;;  %v2679_v7 = vpop.f32.mrb[121].mxu0 }
 0x58b   : > { %v3072_v40 = vadd.f32 0.5, %v3008_v28 }
 0x58c   : > { %v4503_v49 = vpop.eup %4502  ;;  %v2884_v10 = vmul.f32 0.5, %v2678_v5 }
 0x58d   : > { %3136 = vst [vmem:[%s5794_s12 + $0xc0] sm:$0xff] %v3072_v40  ;;  %v3009_v11 = vmul.f32 0.5, %v4503_v49  ;;  %v2682_v13 = vpop.f32.mrb[122].mxu0 }
 0x58e   : > { %4508 = vtanh.f32 %v2884_v10  ;;  %v2683_v14 = vadd.f32 %v5767_v30, %v2682_v13  ;;  %v2684_v12 = vpop.f32.mrb[123].mxu0 }
 0x58f   : > { %v3073_v42 = vadd.f32 0.5, %v3009_v11 }
 0x590   : > { %v4505_v15 = vpop.eup %4504  ;;  %v2885_v16 = vmul.f32 0.5, %v2683_v14 }
 0x591   : > { %3137 = vst [vmem:[%s5794_s12 + $0xc8] sm:$0xff] %v3073_v42  ;;  %v3010_v58 = vmul.f32 0.5, %v4505_v15  ;;  %v2687_v18 = vpop.f32.mrb[124].mxu0 }
 0x592   : > { %4510 = vtanh.f32 %v2885_v16  ;;  %v2688_v20 = vadd.f32 %v5767_v30, %v2687_v18  ;;  %v2689_v17 = vpop.f32.mrb[125].mxu0 }
 0x593   : > { %v3074_v21 = vadd.f32 0.5, %v3010_v58 }
 0x594   : > { %v4507_v22 = vpop.eup %4506  ;;  %v2886_v57 = vmul.f32 0.5, %v2688_v20 }
 0x595   : > { %3138 = vst [vmem:[%s5794_s12 + $0xd0] sm:$0xff] %v3074_v21  ;;  %v3011_v46 = vmul.f32 0.5, %v4507_v22  ;;  %v2692_v24 = vpop.f32.mrb[126].mxu0 }
 0x596   : > { %4512 = vtanh.f32 %v2886_v57  ;;  %v2693_v60 = vadd.f32 %v5767_v30, %v2692_v24  ;;  %v2694_v32 = vpop.f32.mrb[127].mxu0 }
 0x597   : > { %v3075_v23 = vadd.f32 0.5, %v3011_v46 }
 0x598   : > { %v4509_v27 = vpop.eup %4508  ;;  %v2887_v29 = vmul.f32 0.5, %v2693_v60 }
 0x599   : > { %3139 = vst [vmem:[%s5794_s12 + $0xd8] sm:$0xff] %v3075_v23  ;;  %v3012_v19 = vmul.f32 0.5, %v4509_v27  ;;  %v2697_v34 = vpop.f32.mrb[128].mxu0 }
 0x59a   : > { %4514 = vtanh.f32 %v2887_v29  ;;  %v2698_v51 = vadd.f32 %v5767_v30, %v2697_v34  ;;  %v2699_v26 = vpop.f32.mrb[129].mxu0 }
 0x59b   : > { %v3076_v39 = vadd.f32 0.5, %v3012_v19 }
 0x59c   : > { %v4511_v1 = vpop.eup %4510  ;;  %v2888_v50 = vmul.f32 0.5, %v2698_v51 }
 0x59d   : > { %3140 = vst [vmem:[%s5794_s12 + $0xe0] sm:$0xff] %v3076_v39  ;;  %v3013_v35 = vmul.f32 0.5, %v4511_v1  ;;  %v2702_v25 = vpop.f32.mrb[130].mxu0 }
 0x59e   : > { %4516 = vtanh.f32 %v2888_v50  ;;  %v2703_v38 = vadd.f32 %v5767_v30, %v2702_v25  ;;  %v2704_v41 = vpop.f32.mrb[131].mxu0 }
 0x59f   : > { %v3077_v56 = vadd.f32 0.5, %v3013_v35 }
 0x5a0   : > { %v4513_v43 = vpop.eup %4512  ;;  %v2889_v55 = vmul.f32 0.5, %v2703_v38 }
 0x5a1   : > { %3141 = vst [vmem:[%s5794_s12 + $0xe8] sm:$0xff] %v3077_v56  ;;  %v3014_v0 = vmul.f32 0.5, %v4513_v43  ;;  %v2707_v47 = vpop.f32.mrb[132].mxu0 }
 0x5a2   : > { %4518 = vtanh.f32 %v2889_v55  ;;  %v2708_v33 = vadd.f32 %v5767_v30, %v2707_v47  ;;  %v2709_v45 = vpop.f32.mrb[133].mxu0 }
 0x5a3   : > { %v3078_v48 = vadd.f32 0.5, %v3014_v0 }
 0x5a4   : > { %v4515_v62 = vpop.eup %4514  ;;  %v2890_v31 = vmul.f32 0.5, %v2708_v33 }
 0x5a5   : > { %3142 = vst [vmem:[%s5794_s12 + $0xf0] sm:$0xff] %v3078_v48  ;;  %v3015_v61 = vmul.f32 0.5, %v4515_v62  ;;  %v2712_v44 = vpop.f32.mrb[134].mxu0 }
 0x5a6   : > { %4520 = vtanh.f32 %v2890_v31  ;;  %v2713_v53 = vadd.f32 %v5767_v30, %v2712_v44  ;;  %v2714_v9 = vpop.f32.mrb[135].mxu0 }
 0x5a7   : > { %v3079_v54 = vadd.f32 0.5, %v3015_v61 }
 0x5a8   : > { %v4517_v59 = vpop.eup %4516  ;;  %v2891_v3 = vmul.f32 0.5, %v2713_v53 }
 0x5a9   : > { %3143 = vst [vmem:[%s5794_s12 + $0xf8] sm:$0xff] %v3079_v54  ;;  %v3016_v37 = vmul.f32 0.5, %v4517_v59  ;;  %v2717_v2 = vpop.f32.mrb[136].mxu0 }
 0x5aa   : > { %4522 = vtanh.f32 %v2891_v3  ;;  %v2718_v63 = vadd.f32 %v5767_v30, %v2717_v2  ;;  %v2719_v52 = vpop.f32.mrb[137].mxu0 }
 0x5ab   : > { %v3080_v36 = vadd.f32 0.5, %v3016_v37 }
 0x5ac   : > { %v4519_v4 = vpop.eup %4518  ;;  %v2892_v8 = vmul.f32 0.5, %v2718_v63 }
 0x5ad   : > { %3144 = vst [vmem:[%s5794_s12 + $0x100] sm:$0xff] %v3080_v36  ;;  %v3017_v28 = vmul.f32 0.5, %v4519_v4  ;;  %v2722_v6 = vpop.f32.mrb[138].mxu0 }
 0x5ae   : > { %4524 = vtanh.f32 %v2892_v8  ;;  %v2723_v5 = vadd.f32 %v5767_v30, %v2722_v6  ;;  %v2724_v7 = vpop.f32.mrb[139].mxu0 }
 0x5af   : > { %v3081_v40 = vadd.f32 0.5, %v3017_v28 }
 0x5b0   : > { %v4521_v49 = vpop.eup %4520  ;;  %v2893_v10 = vmul.f32 0.5, %v2723_v5 }
 0x5b1   : > { %3145 = vst [vmem:[%s5794_s12 + $0x108] sm:$0xff] %v3081_v40  ;;  %v3018_v11 = vmul.f32 0.5, %v4521_v49  ;;  %v2727_v13 = vpop.f32.mrb[140].mxu0 }
 0x5b2   : > { %4526 = vtanh.f32 %v2893_v10  ;;  %v2728_v14 = vadd.f32 %v5767_v30, %v2727_v13  ;;  %v2729_v12 = vpop.f32.mrb[141].mxu0 }
 0x5b3   : > { %v3082_v42 = vadd.f32 0.5, %v3018_v11 }
 0x5b4   : > { %v4523_v15 = vpop.eup %4522  ;;  %v2894_v16 = vmul.f32 0.5, %v2728_v14 }
 0x5b5   : > { %3146 = vst [vmem:[%s5794_s12 + $0x110] sm:$0xff] %v3082_v42  ;;  %v3019_v58 = vmul.f32 0.5, %v4523_v15  ;;  %v2732_v18 = vpop.f32.mrb[142].mxu0 }
 0x5b6   : > { %4528 = vtanh.f32 %v2894_v16  ;;  %v2733_v20 = vadd.f32 %v5767_v30, %v2732_v18  ;;  %v2734_v17 = vpop.f32.mrb[143].mxu0 }
 0x5b7   : > { %v3083_v21 = vadd.f32 0.5, %v3019_v58 }
 0x5b8   : > { %v4525_v22 = vpop.eup %4524  ;;  %v2895_v57 = vmul.f32 0.5, %v2733_v20 }
 0x5b9   : > { %3147 = vst [vmem:[%s5794_s12 + $0x118] sm:$0xff] %v3083_v21  ;;  %v3020_v46 = vmul.f32 0.5, %v4525_v22  ;;  %v2737_v24 = vpop.f32.mrb[144].mxu0 }
 0x5ba   : > { %4530 = vtanh.f32 %v2895_v57  ;;  %v2738_v60 = vadd.f32 %v5767_v30, %v2737_v24  ;;  %v2739_v32 = vpop.f32.mrb[145].mxu0 }
 0x5bb   : > { %v3084_v23 = vadd.f32 0.5, %v3020_v46 }
 0x5bc   : > { %v4527_v27 = vpop.eup %4526  ;;  %v2896_v29 = vmul.f32 0.5, %v2738_v60 }
 0x5bd   : > { %3148 = vst [vmem:[%s5794_s12 + $0x120] sm:$0xff] %v3084_v23  ;;  %v3021_v19 = vmul.f32 0.5, %v4527_v27  ;;  %v2742_v34 = vpop.f32.mrb[146].mxu0 }
 0x5be   : > { %4532 = vtanh.f32 %v2896_v29  ;;  %v2743_v51 = vadd.f32 %v5767_v30, %v2742_v34  ;;  %v2744_v26 = vpop.f32.mrb[147].mxu0 }
 0x5bf   : > { %v3085_v39 = vadd.f32 0.5, %v3021_v19 }
 0x5c0   : > { %v4529_v1 = vpop.eup %4528  ;;  %v2897_v50 = vmul.f32 0.5, %v2743_v51 }
 0x5c1   : > { %3149 = vst [vmem:[%s5794_s12 + $0x128] sm:$0xff] %v3085_v39  ;;  %v3022_v35 = vmul.f32 0.5, %v4529_v1  ;;  %v2747_v25 = vpop.f32.mrb[148].mxu0 }
 0x5c2   : > { %4534 = vtanh.f32 %v2897_v50  ;;  %v2748_v38 = vadd.f32 %v5767_v30, %v2747_v25  ;;  %v2749_v41 = vpop.f32.mrb[149].mxu0 }
 0x5c3   : > { %v3086_v56 = vadd.f32 0.5, %v3022_v35 }
 0x5c4   : > { %v4531_v43 = vpop.eup %4530  ;;  %v2898_v55 = vmul.f32 0.5, %v2748_v38 }
 0x5c5   : > { %3150 = vst [vmem:[%s5794_s12 + $0x130] sm:$0xff] %v3086_v56  ;;  %v3023_v0 = vmul.f32 0.5, %v4531_v43  ;;  %v2752_v47 = vpop.f32.mrb[150].mxu0 }
 0x5c6   : > { %4536 = vtanh.f32 %v2898_v55  ;;  %v2753_v33 = vadd.f32 %v5767_v30, %v2752_v47  ;;  %v2754_v45 = vpop.f32.mrb[151].mxu0 }
 0x5c7   : > { %v3087_v48 = vadd.f32 0.5, %v3023_v0 }
 0x5c8   : > { %v4533_v62 = vpop.eup %4532  ;;  %v2899_v31 = vmul.f32 0.5, %v2753_v33 }
 0x5c9   : > { %3151 = vst [vmem:[%s5794_s12 + $0x138] sm:$0xff] %v3087_v48  ;;  %v3024_v61 = vmul.f32 0.5, %v4533_v62  ;;  %v2757_v44 = vpop.f32.mrb[152].mxu0 }
 0x5ca   : > { %4538 = vtanh.f32 %v2899_v31  ;;  %v2758_v53 = vadd.f32 %v5767_v30, %v2757_v44  ;;  %v2759_v9 = vpop.f32.mrb[153].mxu0 }
 0x5cb   : > { %v3088_v54 = vadd.f32 0.5, %v3024_v61 }
 0x5cc   : > { %v4535_v59 = vpop.eup %4534  ;;  %v2900_v3 = vmul.f32 0.5, %v2758_v53 }
 0x5cd   : > { %3152 = vst [vmem:[%s5794_s12 + $0x140] sm:$0xff] %v3088_v54  ;;  %v3025_v37 = vmul.f32 0.5, %v4535_v59  ;;  %v2762_v2 = vpop.f32.mrb[154].mxu0 }
 0x5ce   : > { %4540 = vtanh.f32 %v2900_v3  ;;  %v2763_v63 = vadd.f32 %v5767_v30, %v2762_v2  ;;  %v2764_v52 = vpop.f32.mrb[155].mxu0 }
 0x5cf   : > { %v3089_v36 = vadd.f32 0.5, %v3025_v37 }
 0x5d0   : > { %v4537_v4 = vpop.eup %4536  ;;  %v2901_v8 = vmul.f32 0.5, %v2763_v63  ;;  %v5911_v63 = vld [vmem:[%s6028_s24] ss:$0 sm:$0xff] }
 0x5d1   : > { %3153 = vst [vmem:[%s5794_s12 + $0x148] sm:$0xff] %v3089_v36  ;;  %v3026_v28 = vmul.f32 0.5, %v4537_v4  ;;  %v2767_v6 = vpop.f32.mrb[156].mxu0 }
 0x5d2   : > { %4542 = vtanh.f32 %v2901_v8  ;;  %v2768_v5 = vadd.f32 %v5767_v30, %v2767_v6  ;;  %v2769_v7 = vpop.f32.mrb[157].mxu0 }
 0x5d3   : > { %v3090_v40 = vadd.f32 0.5, %v3026_v28 }
 0x5d4   : > { %v4539_v49 = vpop.eup %4538  ;;  %v2902_v10 = vmul.f32 0.5, %v2768_v5 }
 0x5d5   : > { %3154 = vst [vmem:[%s5794_s12 + $0x150] sm:$0xff] %v3090_v40  ;;  %v3027_v11 = vmul.f32 0.5, %v4539_v49  ;;  %v2772_v13 = vpop.f32.mrb[158].mxu0 }
 0x5d6   : > { %4544 = vtanh.f32 %v2902_v10  ;;  %v2773_v14 = vadd.f32 %v5767_v30, %v2772_v13  ;;  %v2774_v12 = vpop.f32.mrb[159].mxu0 }
 0x5d7   : > { %v3091_v42 = vadd.f32 0.5, %v3027_v11 }
 0x5d8   : > { %v4541_v15 = vpop.eup %4540  ;;  %v2903_v16 = vmul.f32 0.5, %v2773_v14 }
 0x5d9   : > { %3155 = vst [vmem:[%s5794_s12 + $0x158] sm:$0xff] %v3091_v42  ;;  %v3028_v58 = vmul.f32 0.5, %v4541_v15  ;;  %v2777_v18 = vpop.f32.mrb[160].mxu0 }
 0x5da   : > { %4546 = vtanh.f32 %v2903_v16  ;;  %v2778_v20 = vadd.f32 %v5767_v30, %v2777_v18  ;;  %v2779_v17 = vpop.f32.mrb[161].mxu0 }
 0x5db   : > { %v3092_v21 = vadd.f32 0.5, %v3028_v58 }
 0x5dc   : > { %v4543_v22 = vpop.eup %4542  ;;  %v2904_v57 = vmul.f32 0.5, %v2778_v20 }
 0x5dd   : > { %3156 = vst [vmem:[%s5794_s12 + $0x160] sm:$0xff] %v3092_v21  ;;  %v3029_v46 = vmul.f32 0.5, %v4543_v22  ;;  %v2782_v24 = vpop.f32.mrb[162].mxu0 }
 0x5de   : > { %4548 = vtanh.f32 %v2904_v57  ;;  %v2783_v60 = vadd.f32 %v5767_v30, %v2782_v24  ;;  %v2784_v32 = vpop.f32.mrb[163].mxu0 }
 0x5df   : > { %v3093_v23 = vadd.f32 0.5, %v3029_v46 }
 0x5e0   : > { %v4545_v27 = vpop.eup %4544  ;;  %v2905_v29 = vmul.f32 0.5, %v2783_v60 }
 0x5e1   : > { %3157 = vst [vmem:[%s5794_s12 + $0x168] sm:$0xff] %v3093_v23  ;;  %v3030_v19 = vmul.f32 0.5, %v4545_v27  ;;  %v2787_v34 = vpop.f32.mrb[164].mxu0 }
 0x5e2   : > { %4550 = vtanh.f32 %v2905_v29  ;;  %v2788_v51 = vadd.f32 %v5767_v30, %v2787_v34  ;;  %v2789_v26 = vpop.f32.mrb[165].mxu0 }
 0x5e3   : > { %v3094_v39 = vadd.f32 0.5, %v3030_v19 }
 0x5e4   : > { %v4547_v1 = vpop.eup %4546  ;;  %v2906_v50 = vmul.f32 0.5, %v2788_v51 }
 0x5e5   : > { %3158 = vst [vmem:[%s5794_s12 + $0x170] sm:$0xff] %v3094_v39  ;;  %v3031_v35 = vmul.f32 0.5, %v4547_v1  ;;  %v2792_v25 = vpop.f32.mrb[166].mxu0 }
 0x5e6   : > { %4552 = vtanh.f32 %v2906_v50  ;;  %v2793_v38 = vadd.f32 %v5767_v30, %v2792_v25  ;;  %v2794_v41 = vpop.f32.mrb[167].mxu0 }
 0x5e7   : > { %v3095_v56 = vadd.f32 0.5, %v3031_v35 }
 0x5e8   : > { %v4549_v43 = vpop.eup %4548  ;;  %v2907_v55 = vmul.f32 0.5, %v2793_v38 }
 0x5e9   : > { %3159 = vst [vmem:[%s5794_s12 + $0x178] sm:$0xff] %v3095_v56  ;;  %v3032_v0 = vmul.f32 0.5, %v4549_v43  ;;  %v2797_v47 = vpop.f32.mrb[168].mxu0 }
 0x5ea   : > { %4554 = vtanh.f32 %v2907_v55  ;;  %v2798_v33 = vadd.f32 %v5767_v30, %v2797_v47  ;;  %v2799_v45 = vpop.f32.mrb[169].mxu0 }
 0x5eb   : > { %v3096_v48 = vadd.f32 0.5, %v3032_v0 }
 0x5ec   : > { %v4551_v62 = vpop.eup %4550  ;;  %v2908_v31 = vmul.f32 0.5, %v2798_v33 }
 0x5ed   : > { %3160 = vst [vmem:[%s5794_s12 + $0x180] sm:$0xff] %v3096_v48  ;;  %v3033_v61 = vmul.f32 0.5, %v4551_v62  ;;  %v2802_v44 = vpop.f32.mrb[170].mxu0 }
 0x5ee   : > { %4556 = vtanh.f32 %v2908_v31  ;;  %v2803_v53 = vadd.f32 %v5767_v30, %v2802_v44  ;;  %v2804_v9 = vpop.f32.mrb[171].mxu0 }
 0x5ef   : > { %v3097_v54 = vadd.f32 0.5, %v3033_v61 }
 0x5f0   : > { %v4553_v59 = vpop.eup %4552  ;;  %v2909_v3 = vmul.f32 0.5, %v2803_v53 }
 0x5f1   : > { %3161 = vst [vmem:[%s5794_s12 + $0x188] sm:$0xff] %v3097_v54  ;;  %v3034_v37 = vmul.f32 0.5, %v4553_v59  ;;  %v2807_v2 = vpop.f32.mrb[172].mxu0 }
 0x5f2   : > { %4558 = vtanh.f32 %v2909_v3  ;;  %v2808_v52 = vadd.f32 %v5911_v63, %v2807_v2  ;;  %v2809_v36 = vpop.f32.mrb[173].mxu0 }
 0x5f3   : > { %v3098_v4 = vadd.f32 0.5, %v3034_v37 }
 0x5f4   : > { %v4555_v8 = vpop.eup %4554  ;;  %v2910_v30 = vmul.f32 0.5, %v2808_v52 }
 0x5f5   : > { %3162 = vst [vmem:[%s5794_s12 + $0x190] sm:$0xff] %v3098_v4  ;;  %v3035_v28 = vmul.f32 0.5, %v4555_v8  ;;  %v2812_v6 = vpop.f32.mrb[174].mxu0 }
 0x5f6   : > { %4560 = vtanh.f32 %v2910_v30  ;;  %v2813_v5 = vadd.f32 %v5911_v63, %v2812_v6  ;;  %v2814_v7 = vpop.f32.mrb[175].mxu0 }
 0x5f7   : > { %v3099_v40 = vadd.f32 0.5, %v3035_v28 }
 0x5f8   : > { %v4557_v49 = vpop.eup %4556  ;;  %v2911_v10 = vmul.f32 0.5, %v2813_v5 }
 0x5f9   : > { %3163 = vst [vmem:[%s5794_s12 + $0x198] sm:$0xff] %v3099_v40  ;;  %v3036_v11 = vmul.f32 0.5, %v4557_v49  ;;  %v2817_v13 = vpop.f32.mrb[176].mxu0 }
 0x5fa   : > { %4562 = vtanh.f32 %v2911_v10  ;;  %v2818_v14 = vadd.f32 %v5911_v63, %v2817_v13  ;;  %v2819_v12 = vpop.f32.mrb[177].mxu0 }
 0x5fb   : > { %v3100_v42 = vadd.f32 0.5, %v3036_v11 }
 0x5fc   : > { %v4559_v15 = vpop.eup %4558  ;;  %v2912_v16 = vmul.f32 0.5, %v2818_v14 }
 0x5fd   : > { %3164 = vst [vmem:[%s5794_s12 + $0x1a0] sm:$0xff] %v3100_v42  ;;  %v3037_v58 = vmul.f32 0.5, %v4559_v15  ;;  %v2822_v18 = vpop.f32.mrb[178].mxu0 }
 0x5fe   : > { %4564 = vtanh.f32 %v2912_v16  ;;  %v2823_v20 = vadd.f32 %v5911_v63, %v2822_v18  ;;  %v2824_v17 = vpop.f32.mrb[179].mxu0 }
 0x5ff   : > { %v3101_v21 = vadd.f32 0.5, %v3037_v58 }
 0x600   : > { %v4561_v22 = vpop.eup %4560  ;;  %v2913_v57 = vmul.f32 0.5, %v2823_v20 }
 0x601   : > { %3165 = vst [vmem:[%s5794_s12 + $0x1a8] sm:$0xff] %v3101_v21  ;;  %v3038_v46 = vmul.f32 0.5, %v4561_v22  ;;  %v2827_v24 = vpop.f32.mrb[180].mxu0 }
 0x602   : > { %4566 = vtanh.f32 %v2913_v57  ;;  %v2828_v60 = vadd.f32 %v5911_v63, %v2827_v24  ;;  %v2829_v32 = vpop.f32.mrb[181].mxu0 }
 0x603   : > { %v3102_v23 = vadd.f32 0.5, %v3038_v46 }
 0x604   : > { %v4563_v27 = vpop.eup %4562  ;;  %v2914_v29 = vmul.f32 0.5, %v2828_v60 }
 0x605   : > { %3166 = vst [vmem:[%s5794_s12 + $0x1b0] sm:$0xff] %v3102_v23  ;;  %v3039_v19 = vmul.f32 0.5, %v4563_v27  ;;  %v2832_v34 = vpop.f32.mrb[182].mxu0 }
 0x606   : > { %4568 = vtanh.f32 %v2914_v29  ;;  %v2833_v51 = vadd.f32 %v5911_v63, %v2832_v34  ;;  %v2834_v26 = vpop.f32.mrb[183].mxu0 }
 0x607   : > { %v3103_v39 = vadd.f32 0.5, %v3039_v19 }
 0x608   : > { %v4565_v1 = vpop.eup %4564  ;;  %v2915_v50 = vmul.f32 0.5, %v2833_v51 }
 0x609   : > { %3167 = vst [vmem:[%s5794_s12 + $0x1b8] sm:$0xff] %v3103_v39  ;;  %v3040_v35 = vmul.f32 0.5, %v4565_v1  ;;  %v2837_v25 = vpop.f32.mrb[184].mxu0 }
 0x60a   : > { %4570 = vtanh.f32 %v2915_v50  ;;  %v2838_v38 = vadd.f32 %v5911_v63, %v2837_v25  ;;  %v2839_v41 = vpop.f32.mrb[185].mxu0 }
 0x60b   : > { %v3104_v56 = vadd.f32 0.5, %v3040_v35 }
 0x60c   : > { %v4567_v43 = vpop.eup %4566  ;;  %v2916_v55 = vmul.f32 0.5, %v2838_v38 }
 0x60d   : > { %3168 = vst [vmem:[%s5794_s12 + $0x1c0] sm:$0xff] %v3104_v56  ;;  %v3041_v0 = vmul.f32 0.5, %v4567_v43  ;;  %v2842_v47 = vpop.f32.mrb[186].mxu0 }
 0x60e   : > { %4572 = vtanh.f32 %v2916_v55  ;;  %v2843_v33 = vadd.f32 %v5911_v63, %v2842_v47  ;;  %v2844_v45 = vpop.f32.mrb[187].mxu0 }
 0x60f   : > { %v3105_v48 = vadd.f32 0.5, %v3041_v0 }
 0x610   : > { %v4569_v62 = vpop.eup %4568  ;;  %v2917_v31 = vmul.f32 0.5, %v2843_v33 }
 0x611   : > { %3169 = vst [vmem:[%s5794_s12 + $0x1c8] sm:$0xff] %v3105_v48  ;;  %v3042_v61 = vmul.f32 0.5, %v4569_v62  ;;  %v2847_v44 = vpop.f32.mrb[188].mxu0 }
 0x612   : > { %4574 = vtanh.f32 %v2917_v31  ;;  %v2848_v53 = vadd.f32 %v5911_v63, %v2847_v44  ;;  %v2849_v9 = vpop.f32.mrb[189].mxu0 }
 0x613   : > { %v3106_v54 = vadd.f32 0.5, %v3042_v61 }
 0x614   : > { %v4571_v59 = vpop.eup %4570  ;;  %v2918_v3 = vmul.f32 0.5, %v2848_v53 }
 0x615   : > { %3170 = vst [vmem:[%s5794_s12 + $0x1d0] sm:$0xff] %v3106_v54  ;;  %v3043_v37 = vmul.f32 0.5, %v4571_v59  ;;  %v2852_v2 = vpop.f32.mrb[190].mxu0 }
 0x616   : > { %4576 = vtanh.f32 %v2918_v3  ;;  %v2853_v52 = vadd.f32 %v5911_v63, %v2852_v2  ;;  %v2854_v36 = vpop.f32.mrb[191].mxu0 }
 0x617   : > { %v3107_v4 = vadd.f32 0.5, %v3043_v37 }
 0x618   : > { %v4573_v8 = vpop.eup %4572  ;;  %v2919_v30 = vmul.f32 0.5, %v2853_v52 }
 0x619   : > { %3171 = vst [vmem:[%s5794_s12 + $0x1d8] sm:$0xff] %v3107_v4  ;;  %v3044_v28 = vmul.f32 0.5, %v4573_v8 }
 0x61a   : > { %4578 = vtanh.f32 %v2919_v30 }
 0x61b   : > { %v3108_v6 = vadd.f32 0.5, %v3044_v28 }
 0x61c   : > { %v4575_v5 = vpop.eup %4574 }
 0x61d   : > { %3172 = vst [vmem:[%s5794_s12 + $0x1e0] sm:$0xff] %v3108_v6  ;;  %v3045_v7 = vmul.f32 0.5, %v4575_v5 }
 0x61f   : > { %v3109_v40 = vadd.f32 0.5, %v3045_v7 }
 0x620   : > { %v4577_v49 = vpop.eup %4576 }
 0x621   : > { %3173 = vst [vmem:[%s5794_s12 + $0x1e8] sm:$0xff] %v3109_v40  ;;  %v3046_v63 = vmul.f32 0.5, %v4577_v49 }
 0x623   : > { %v3110_v10 = vadd.f32 0.5, %v3046_v63 }
 0x624   : > { %v4579_v11 = vpop.eup %4578 }
 0x625   : > { %3174 = vst [vmem:[%s5794_s12 + $0x1f0] sm:$0xff] %v3110_v10  ;;  %v3047_v13 = vmul.f32 0.5, %v4579_v11 }
 0x627   : > { %v3111_v14 = vadd.f32 0.5, %v3047_v13 }
 0x629   : > { %3175 = vst [vmem:[%s5794_s12 + $0x1f8] sm:$0xff] %v3111_v14 }
 0x62a   : > { %4828 = shalt.err (!%p4825_p8)
}
 0x62b   : > { %s4829_s12 = scalar_lea.hbm %s5941_s28, 8192  ;;  %s4833_s1 = scalar_lea.hbm %s6029_s25, 16384 }
 0x62c   : > { %p4830_p6 = scmp.ne.s32.totalorder %s5941_s28, %s4829_s12  ;;  %p4834_p3 = scmp.lt.u32.totalorder %s5941_s28, %s6029_s25 }
 0x62d   : > { %p4835_p5 = scmp.lt.u32.totalorder %s4833_s1, %s4829_s12  ;;  %p4837_p7 = scmp.lt.u32.totalorder %s4829_s12, %s5941_s28 }
 0x62e   : > { %p4831_p10 = pnand %p4830_p6, %p6030_p4 }
 0x62f   : > { %p4836_p9 = por %p4835_p5, %p4834_p3 }
 0x630   : > { %p4832_p11 = pneg %p4831_p10 }
 0x631   : > { %p4838_p12 = por %p4837_p7, %p4836_p9 }
 0x633   : > { %p4839_p1 = pnand %p4838_p12, %p4832_p11 }
 0x635   : > { %4842 = shalt.err (!%p4839_p1)
}
 0x636   : > { %s4905_s30 = smov 128   ;;  %s4906_s15 = smov 8  }
 0x637   : > { %4372 = dma.vmem_to_hbm [thread:$0]  (%p6030_p4), %s5943_s11, 8192, %s5941_s28, %s3177_s22, %s4905_s30, %s4905_s30, %s4906_s15  }
 0x638 PF: > { %s3205_s29 = sand.u32 1, %s4881_s17   ;;  %p6031_p13 = scmp.ne.s32.totalorder %s6017_s21, 0 }
 0x639   : > { %p6032_p0 = scmp.ge.s32.totalorder %s4893_s20, 2  ;;  %s3206_s12 = scalar_lea.sflag [#allocation4], %s3205_s29 }
 0x63b   : > { %p4395_p2 = pnand %p6032_p0, %p6031_p13 }
 0x63d   : > { %4876 = dma.done.wait (!%p4395_p2), %s3206_s12, 8192  }
 0x63e   : > { %4878 = vsyncadd (!%p4395_p2), %s3206_s12, 4294959104  ;;  %p27_p8 = scmp.ge.s32.totalorder %s5140_s16, 4   ;;  %s6033_s17 = smov %s4885_s18 }
 0x63f   : > { %s6034_s18 = smov %s4889_s19  ;;  %s6035_s19 = smov %s5152_s10 }
 0x640   : > { %s6036_s20 = smov %s5140_s16  ;;  %29 = sbr.rel (!%p27_p8) target bundleno = 13 (0xd), region = 129 }
 0x647   :  { %3211 = vsyncpa [#allocation3], 1 }
 0x648   :  { %3213 = vsyncpa [#allocation3 + $0x1], 1 }
 0x649   :  { %3214 = vsyncpa [#allocation6], 1 }
 0x64a   :  { %3215 = vsyncpa [#allocation9], 1 }
 0x64b   :  { %3216 = vsyncpa [#allocation12], 1 }
 0x64c   :  { %3217 = vsyncpa [#allocation4], 1 }
 0x64d   :  { %3219 = vsyncpa [#allocation4 + $0x1], 1 }

</bundles_post_ra>
